<compile_context>
chip_gen: v7x
topology: tpu7x:2x2x1
jax: 0.10.0
libtpu: 0.0.40
codegen_flags: <defaults>
</compile_context>

<pallas_src>
import functools

import jax
import jax.numpy as jnp
from jax.experimental import pallas as pl
from jax.experimental.pallas import tpu as pltpu

IMG_H = 16
IMG_W = 16
LATENT = 100
LATENT_PAD = 128          # latent padded to the 128-lane boundary
HIDDEN = (256, 512, 1024)
OUT_DIM = IMG_H * IMG_W * 3  # 768
BN_EPS = 1e-5
LEAK = 0.2

# Above this batch size the single-shot kernel's f32 activations start to
# crowd VMEM and we switch to the batch-tiled / two-pass-BN path.
SINGLE_SHOT_MAX_B = 1024
VMEM_LIMIT = 32 * 1024 * 1024


# ---------------------------------------------------------------------------
# Path 1: single-shot whole-model kernel (small batch; everything fits VMEM).
# ---------------------------------------------------------------------------
def _generator_kernel(
    x_ref,
    w1_ref, b1_ref, g1_ref, be1_ref,
    w2_ref, b2_ref, g2_ref, be2_ref,
    w3_ref, b3_ref, g3_ref, be3_ref,
    w4_ref, b4_ref,
    out_ref,
):
    """Whole forward pass in one kernel invocation."""

    def linear_lrelu_bn(h, w_ref, b_ref, g_ref, be_ref):
        # Linear: bf16 x bf16 into the MXU (native fast path), f32 accumulation.
        # Cast the small operand (activations), never upcast the weights.
        y = jnp.dot(h.astype(jnp.bfloat16), w_ref[...],
                    preferred_element_type=jnp.float32) + b_ref[...]
        # LeakyReLU(0.2) (VPU, f32 — v5e has no bf16 VPU/EUP)
        y = jnp.where(y >= 0.0, y, LEAK * y)
        # BatchNorm1d, training mode (batch stats, biased variance), fused:
        #   var   = E[y^2] - mu^2
        #   scale = gamma * rsqrt(var+eps);  shift = beta - mu*scale
        mu = jnp.mean(y, axis=0, keepdims=True)
        ms = jnp.mean(y * y, axis=0, keepdims=True)
        var = jnp.maximum(ms - mu * mu, 0.0)
        scale = g_ref[...] * jax.lax.rsqrt(var + BN_EPS)
        shift = be_ref[...] - mu * scale
        return y * scale + shift

    h = x_ref[...]
    h = linear_lrelu_bn(h, w1_ref, b1_ref, g1_ref, be1_ref)
    h = linear_lrelu_bn(h, w2_ref, b2_ref, g2_ref, be2_ref)
    h = linear_lrelu_bn(h, w3_ref, b3_ref, g3_ref, be3_ref)
    # Final Linear + Tanh (tanh in f32 on the EUP)
    y = jnp.dot(h.astype(jnp.bfloat16), w4_ref[...],
                preferred_element_type=jnp.float32) + b4_ref[...]
    out_ref[...] = jnp.tanh(y)


def _generator_forward_single(x, params):
    B = x.shape[0]
    # Zero-pad latent 100 -> 128 (w1 rows 100..127 are zero, so result exact).
    x_pad = jnp.pad(x, ((0, 0), (0, LATENT_PAD - LATENT)))
    flat_args = (x_pad,) + tuple(params)
    vmem_spec = pl.BlockSpec(memory_space=pltpu.MemorySpace.VMEM)
    out_flat = pl.pallas_call(
        _generator_kernel,
        out_shape=jax.ShapeDtypeStruct((B, OUT_DIM), jnp.float32),
        in_specs=[vmem_spec] * len(flat_args),
        out_specs=vmem_spec,
        # ~3 MB bf16 weights + small activations; fits v7x's 64 MiB physical VMEM.
        compiler_params=pltpu.CompilerParams(vmem_limit_bytes=VMEM_LIMIT),
    )(*flat_args)
    # Same memory order as torch's x.view(B, 3, H, W) on a row-major flat vector.
    return out_flat.reshape(B, 3, IMG_H, IMG_W)


# ---------------------------------------------------------------------------
# Path 2: batch-tiled grid, weights VMEM-resident, two-pass BatchNorm.
# ---------------------------------------------------------------------------
def _tiled_hidden_kernel(x_ref, sc_ref, sh_ref, w_ref, b_ref,
                         y_ref, sum_ref, ssq_ref, *, tm, batch):
    """Per batch-tile: normalize previous layer (precomputed BN scale/shift,
    identity for layer 1), Linear (bf16 MXU) + LeakyReLU, emit this tile's
    partial BatchNorm statistics (sum, sum-of-squares) with padded rows masked.
    """
    h = x_ref[...] * sc_ref[...] + sh_ref[...]
    y = jnp.dot(h.astype(jnp.bfloat16), w_ref[...],
                preferred_element_type=jnp.float32) + b_ref[...]
    y = jnp.where(y >= 0.0, y, LEAK * y)
    y_ref[...] = y
    # Mask zero-padded batch rows out of the statistics.
    row = pl.program_id(0) * tm + jax.lax.broadcasted_iota(jnp.int32, (tm, 1), 0)
    ym = jnp.where(row < batch, y, 0.0)
    n = y.shape[-1]
    sum_ref[...] = jnp.sum(ym, axis=0, keepdims=True).reshape(1, 1, n)
    ssq_ref[...] = jnp.sum(ym * ym, axis=0, keepdims=True).reshape(1, 1, n)


def _tiled_final_kernel(x_ref, sc_ref, sh_ref, w_ref, b_ref, out_ref):
    """Per batch-tile: apply last BN (precomputed scale/shift), Linear, Tanh."""
    h = x_ref[...] * sc_ref[...] + sh_ref[...]
    y = jnp.dot(h.astype(jnp.bfloat16), w_ref[...],
                preferred_element_type=jnp.float32) + b_ref[...]
    out_ref[...] = jnp.tanh(y)


def _hidden_layer_tiled(h, scale, shift, w, b, batch, tm):
    b_pad, k = h.shape
    n = w.shape[1]
    nt = b_pad // tm
    kernel = functools.partial(_tiled_hidden_kernel, tm=tm, batch=batch)
    y, psum, pssq = pl.pallas_call(
        kernel,
        grid=(nt,),
        in_specs=[
            pl.BlockSpec((tm, k), lambda i: (i, 0)),      # activation tile streams
            pl.BlockSpec((1, k), lambda i: (0, 0)),       # BN scale (resident)
            pl.BlockSpec((1, k), lambda i: (0, 0)),       # BN shift (resident)
            pl.BlockSpec((k, n), lambda i: (0, 0)),       # weights: DMA'd once, resident
            pl.BlockSpec((1, n), lambda i: (0, 0)),       # bias (resident)
        ],
        out_specs=(
            pl.BlockSpec((tm, n), lambda i: (i, 0)),
            pl.BlockSpec((1, 1, n), lambda i: (i, 0, 0)),  # per-tile partial sum
            pl.BlockSpec((1, 1, n), lambda i: (i, 0, 0)),  # per-tile partial sumsq
        ),
        out_shape=(
            jax.ShapeDtypeStruct((b_pad, n), jnp.float32),
            jax.ShapeDtypeStruct((nt, 1, n), jnp.float32),
            jax.ShapeDtypeStruct((nt, 1, n), jnp.float32),
        ),
        compiler_params=pltpu.CompilerParams(
            dimension_semantics=("parallel",),
            vmem_limit_bytes=VMEM_LIMIT),
    )(h, scale, shift, w, b)
    return y, psum, pssq


def _final_layer_tiled(h, scale, shift, w, b, tm):
    b_pad, k = h.shape
    n = w.shape[1]
    nt = b_pad // tm
    return pl.pallas_call(
        _tiled_final_kernel,
        grid=(nt,),
        in_specs=[
            pl.BlockSpec((tm, k), lambda i: (i, 0)),
            pl.BlockSpec((1, k), lambda i: (0, 0)),
            pl.BlockSpec((1, k), lambda i: (0, 0)),
            pl.BlockSpec((k, n), lambda i: (0, 0)),
            pl.BlockSpec((1, n), lambda i: (0, 0)),
        ],
        out_specs=pl.BlockSpec((tm, n), lambda i: (i, 0)),
        out_shape=jax.ShapeDtypeStruct((b_pad, n), jnp.float32),
        compiler_params=pltpu.CompilerParams(
            dimension_semantics=("parallel",),
            vmem_limit_bytes=VMEM_LIMIT),
    )(h, scale, shift, w, b)


def _bn_scale_shift(psum, pssq, gamma, beta, batch):
    """Finalize batch-wide BN stats from per-tile partials (tiny JAX glue)."""
    s = jnp.sum(psum, axis=0)      # (1, N)
    ss = jnp.sum(pssq, axis=0)     # (1, N)
    mu = s / batch
    var = jnp.maximum(ss / batch - mu * mu, 0.0)   # biased variance (torch train mode)
    scale = gamma * jax.lax.rsqrt(var + BN_EPS)
    shift = beta - mu * scale
    return scale, shift


def _generator_forward_tiled(x, params, tm):
    """Large-batch path. tm=256 targets v6e/v7x's 256x256 MXU; use tm=128 on v5e."""
    B = x.shape[0]
    b_pad = ((B + tm - 1) // tm) * tm
    x_pad = jnp.pad(x, ((0, b_pad - B), (0, LATENT_PAD - LATENT)))
    (w1, b1, g1, be1, w2, b2, g2, be2, w3, b3, g3, be3, w4, b4) = params

    ones_k = jnp.ones((1, LATENT_PAD), jnp.float32)
    zeros_k = jnp.zeros((1, LATENT_PAD), jnp.float32)

    # Layer 1: Linear + LeakyReLU, per-tile partial BN1 stats.
    y1, s1, q1 = _hidden_layer_tiled(x_pad, ones_k, zeros_k, w1, b1, B, tm)
    sc1, sh1 = _bn_scale_shift(s1, q1, g1, be1, B)
    # Layer 2: BN1 normalize fused with Linear2 + LeakyReLU, partial BN2 stats.
    y2, s2, q2 = _hidden_layer_tiled(y1, sc1, sh1, w2, b2, B, tm)
    sc2, sh2 = _bn_scale_shift(s2, q2, g2, be2, B)
    # Layer 3: BN2 normalize fused with Linear3 + LeakyReLU, partial BN3 stats.
    y3, s3, q3 = _hidden_layer_tiled(y2, sc2, sh2, w3, b3, B, tm)
    sc3, sh3 = _bn_scale_shift(s3, q3, g3, be3, B)
    # Layer 4: BN3 normalize fused with Linear4 + Tanh.
    out_flat = _final_layer_tiled(y3, sc3, sh3, w4, b4, tm)
    return out_flat[:B].reshape(B, 3, IMG_H, IMG_W)


# ---------------------------------------------------------------------------
# Public entry point + params.
# ---------------------------------------------------------------------------
@functools.partial(jax.jit, static_argnames=("tm",))
def generator_forward(x, params, tm=256):
    """x: (B, 100) float32  ->  (B, 3, IMG_H, IMG_W) float32."""
    if x.shape[0] <= SINGLE_SHOT_MAX_B:
        return _generator_forward_single(x, params)
    return _generator_forward_tiled(x, params, tm)


_generator_forward_single_jit = jax.jit(_generator_forward_single)
generator_forward_tiled = jax.jit(_generator_forward_tiled, static_argnames=("tm",))


def init_params(key):
    """Deterministic parameter init matching the module's shapes.

    Linear weights stored as (in, out) in bfloat16 (first layer zero-padded to
    128 input rows); biases / BN gamma / beta as (1, out) in float32.
    """
    dims = (LATENT,) + HIDDEN + (OUT_DIM,)
    params = []
    keys = jax.random.split(key, len(dims) - 1)
    for i, (din, dout) in enumerate(zip(dims[:-1], dims[1:])):
        wk, bk = jax.random.split(keys[i])
        bound = 1.0 / jnp.sqrt(jnp.float32(din))  # torch.nn.Linear default range
        w = jax.random.uniform(wk, (din, dout), jnp.float32, -bound, bound)
        if i == 0:  # pad contraction dim 100 -> 128 with zero rows
            w = jnp.pad(w, ((0, LATENT_PAD - LATENT), (0, 0)))
        b = jax.random.uniform(bk, (1, dout), jnp.float32, -bound, bound)
        params.extend([w.astype(jnp.bfloat16), b])
        if i < len(dims) - 2:  # batchnorm after all but the last linear
            gamma = jnp.ones((1, dout), jnp.float32)
            beta = jnp.zeros((1, dout), jnp.float32)
            params.extend([gamma, beta])
    return tuple(params)


if __name__ == "__main__":
    key = jax.random.PRNGKey(0)
    xk, pk, xk2 = jax.random.split(key, 3)

    params = init_params(pk)

    # Small-batch path: single-shot whole-model kernel.
    B = 8
    x = jax.random.normal(xk, (B, LATENT), jnp.float32)
    out = jax.block_until_ready(generator_forward(x, params))
    assert out.shape == (B, 3, IMG_H, IMG_W), out.shape
    assert out.dtype == jnp.float32
    assert bool(jnp.all(jnp.isfinite(out)))
    assert bool(jnp.all(jnp.abs(out) <= 1.0))  # tanh output range

    # Batch-tiled path (resident weights, two-pass BN): cross-check against the
    # single-shot kernel on a batch that is not a multiple of the tile size.
    B2 = 504
    x2 = jax.random.normal(xk2, (B2, LATENT), jnp.float32)
    out_ref = jax.block_until_ready(_generator_forward_single_jit(x2, params))
    out_tiled = jax.block_until_ready(generator_forward_tiled(x2, params, tm=256))
    assert out_tiled.shape == (B2, 3, IMG_H, IMG_W), out_tiled.shape
    assert bool(jnp.all(jnp.isfinite(out_tiled)))
    max_err = float(jnp.max(jnp.abs(out_tiled - out_ref)))
    assert max_err < 5e-3, max_err

    print("KERNEL_OK")
</pallas_src>

<mosaic_0001>
module attributes {stable_mosaic.version = 11 : i64} {
  func.func @_generator_kernel(%arg0: memref<8x128xf32, #tpu.memory_space<vmem>>, %arg1: memref<128x256xbf16, #tpu.memory_space<vmem>>, %arg2: memref<1x256xf32, #tpu.memory_space<vmem>>, %arg3: memref<1x256xf32, #tpu.memory_space<vmem>>, %arg4: memref<1x256xf32, #tpu.memory_space<vmem>>, %arg5: memref<256x512xbf16, #tpu.memory_space<vmem>>, %arg6: memref<1x512xf32, #tpu.memory_space<vmem>>, %arg7: memref<1x512xf32, #tpu.memory_space<vmem>>, %arg8: memref<1x512xf32, #tpu.memory_space<vmem>>, %arg9: memref<512x1024xbf16, #tpu.memory_space<vmem>>, %arg10: memref<1x1024xf32, #tpu.memory_space<vmem>>, %arg11: memref<1x1024xf32, #tpu.memory_space<vmem>>, %arg12: memref<1x1024xf32, #tpu.memory_space<vmem>>, %arg13: memref<1024x768xbf16, #tpu.memory_space<vmem>>, %arg14: memref<1x768xf32, #tpu.memory_space<vmem>>, %arg15: memref<8x768xf32, #tpu.memory_space<vmem>>) attributes {dimension_semantics = [], scalar_prefetch = 0 : i64, scratch_operands = 0 : i64, tpu.core_type = #tpu.core_type<tc>} {
    %c0 = arith.constant 0 : index
    %c0_0 = arith.constant 0 : index
    %0 = vector.load %arg0[%c0, %c0_0] : memref<8x128xf32, #tpu.memory_space<vmem>>, vector<8x128xf32>
    %1 = arith.truncf %0 : vector<8x128xf32> to vector<8x128xbf16>
    %c0_1 = arith.constant 0 : index
    %c0_2 = arith.constant 0 : index
    %2 = vector.load %arg1[%c0_1, %c0_2] : memref<128x256xbf16, #tpu.memory_space<vmem>>, vector<128x256xbf16>
    %cst = arith.constant dense<0.000000e+00> : vector<8x256xf32>
    %3 = tpu.matmul %1, %2, %cst {dimension_numbers = #tpu.dot_dimension_numbers<[1], [0], [0], [1], [0, 0, 1, 1], [], []>} : vector<8x128xbf16>, vector<128x256xbf16>, vector<8x256xf32> -> vector<8x256xf32>
    %c0_3 = arith.constant 0 : index
    %c0_4 = arith.constant 0 : index
    %4 = vector.load %arg2[%c0_3, %c0_4] : memref<1x256xf32, #tpu.memory_space<vmem>>, vector<1x256xf32>
    %5 = vector.broadcast %4 : vector<1x256xf32> to vector<8x256xf32>
    %6 = arith.addf %3, %5 : vector<8x256xf32>
    %cst_5 = arith.constant 0.000000e+00 : f32
    %7 = vector.broadcast %cst_5 : f32 to vector<8x256xf32>
    %8 = arith.cmpf oge, %6, %7 : vector<8x256xf32>
    %cst_6 = arith.constant 2.000000e-01 : f32
    %9 = vector.broadcast %cst_6 : f32 to vector<8x256xf32>
    %10 = arith.mulf %9, %6 : vector<8x256xf32>
    %11 = arith.select %8, %6, %10 : vector<8x256xi1>, vector<8x256xf32>
    %cst_7 = arith.constant dense<0.000000e+00> : vector<256xf32>
    %12 = vector.multi_reduction <add>, %11, %cst_7 [0] : vector<8x256xf32> to vector<256xf32>
    %13 = vector.shape_cast %12 : vector<256xf32> to vector<1x256xf32>
    %cst_8 = arith.constant 8.000000e+00 : f32
    %14 = vector.broadcast %cst_8 : f32 to vector<1x256xf32>
    %15 = arith.divf %13, %14 : vector<1x256xf32>
    %16 = arith.mulf %11, %11 : vector<8x256xf32>
    %cst_9 = arith.constant dense<0.000000e+00> : vector<256xf32>
    %17 = vector.multi_reduction <add>, %16, %cst_9 [0] : vector<8x256xf32> to vector<256xf32>
    %18 = vector.shape_cast %17 : vector<256xf32> to vector<1x256xf32>
    %cst_10 = arith.constant 8.000000e+00 : f32
    %19 = vector.broadcast %cst_10 : f32 to vector<1x256xf32>
    %20 = arith.divf %18, %19 : vector<1x256xf32>
    %21 = arith.mulf %15, %15 : vector<1x256xf32>
    %22 = arith.subf %20, %21 : vector<1x256xf32>
    %cst_11 = arith.constant 0.000000e+00 : f32
    %23 = vector.broadcast %cst_11 : f32 to vector<1x256xf32>
    %24 = arith.maximumf %22, %23 : vector<1x256xf32>
    %c0_12 = arith.constant 0 : index
    %c0_13 = arith.constant 0 : index
    %25 = vector.load %arg3[%c0_12, %c0_13] : memref<1x256xf32, #tpu.memory_space<vmem>>, vector<1x256xf32>
    %cst_14 = arith.constant 9.99999974E-6 : f32
    %26 = vector.broadcast %cst_14 : f32 to vector<1x256xf32>
    %27 = arith.addf %24, %26 : vector<1x256xf32>
    %28 = math.rsqrt %27 : vector<1x256xf32>
    %29 = arith.mulf %25, %28 : vector<1x256xf32>
    %c0_15 = arith.constant 0 : index
    %c0_16 = arith.constant 0 : index
    %30 = vector.load %arg4[%c0_15, %c0_16] : memref<1x256xf32, #tpu.memory_space<vmem>>, vector<1x256xf32>
    %31 = arith.mulf %15, %29 : vector<1x256xf32>
    %32 = arith.subf %30, %31 : vector<1x256xf32>
    %33 = vector.broadcast %29 : vector<1x256xf32> to vector<8x256xf32>
    %34 = arith.mulf %11, %33 : vector<8x256xf32>
    %35 = vector.broadcast %32 : vector<1x256xf32> to vector<8x256xf32>
    %36 = arith.addf %34, %35 : vector<8x256xf32>
    %37 = arith.truncf %36 : vector<8x256xf32> to vector<8x256xbf16>
    %c0_17 = arith.constant 0 : index
    %c0_18 = arith.constant 0 : index
    %38 = vector.load %arg5[%c0_17, %c0_18] : memref<256x512xbf16, #tpu.memory_space<vmem>>, vector<256x512xbf16>
    %cst_19 = arith.constant dense<0.000000e+00> : vector<8x512xf32>
    %39 = tpu.matmul %37, %38, %cst_19 {dimension_numbers = #tpu.dot_dimension_numbers<[1], [0], [0], [1], [0, 0, 1, 1], [], []>} : vector<8x256xbf16>, vector<256x512xbf16>, vector<8x512xf32> -> vector<8x512xf32>
    %c0_20 = arith.constant 0 : index
    %c0_21 = arith.constant 0 : index
    %40 = vector.load %arg6[%c0_20, %c0_21] : memref<1x512xf32, #tpu.memory_space<vmem>>, vector<1x512xf32>
    %41 = vector.broadcast %40 : vector<1x512xf32> to vector<8x512xf32>
    %42 = arith.addf %39, %41 : vector<8x512xf32>
    %cst_22 = arith.constant 0.000000e+00 : f32
    %43 = vector.broadcast %cst_22 : f32 to vector<8x512xf32>
    %44 = arith.cmpf oge, %42, %43 : vector<8x512xf32>
    %cst_23 = arith.constant 2.000000e-01 : f32
    %45 = vector.broadcast %cst_23 : f32 to vector<8x512xf32>
    %46 = arith.mulf %45, %42 : vector<8x512xf32>
    %47 = arith.select %44, %42, %46 : vector<8x512xi1>, vector<8x512xf32>
    %cst_24 = arith.constant dense<0.000000e+00> : vector<512xf32>
    %48 = vector.multi_reduction <add>, %47, %cst_24 [0] : vector<8x512xf32> to vector<512xf32>
    %49 = vector.shape_cast %48 : vector<512xf32> to vector<1x512xf32>
    %cst_25 = arith.constant 8.000000e+00 : f32
    %50 = vector.broadcast %cst_25 : f32 to vector<1x512xf32>
    %51 = arith.divf %49, %50 : vector<1x512xf32>
    %52 = arith.mulf %47, %47 : vector<8x512xf32>
    %cst_26 = arith.constant dense<0.000000e+00> : vector<512xf32>
    %53 = vector.multi_reduction <add>, %52, %cst_26 [0] : vector<8x512xf32> to vector<512xf32>
    %54 = vector.shape_cast %53 : vector<512xf32> to vector<1x512xf32>
    %cst_27 = arith.constant 8.000000e+00 : f32
    %55 = vector.broadcast %cst_27 : f32 to vector<1x512xf32>
    %56 = arith.divf %54, %55 : vector<1x512xf32>
    %57 = arith.mulf %51, %51 : vector<1x512xf32>
    %58 = arith.subf %56, %57 : vector<1x512xf32>
    %cst_28 = arith.constant 0.000000e+00 : f32
    %59 = vector.broadcast %cst_28 : f32 to vector<1x512xf32>
    %60 = arith.maximumf %58, %59 : vector<1x512xf32>
    %c0_29 = arith.constant 0 : index
    %c0_30 = arith.constant 0 : index
    %61 = vector.load %arg7[%c0_29, %c0_30] : memref<1x512xf32, #tpu.memory_space<vmem>>, vector<1x512xf32>
    %cst_31 = arith.constant 9.99999974E-6 : f32
    %62 = vector.broadcast %cst_31 : f32 to vector<1x512xf32>
    %63 = arith.addf %60, %62 : vector<1x512xf32>
    %64 = math.rsqrt %63 : vector<1x512xf32>
    %65 = arith.mulf %61, %64 : vector<1x512xf32>
    %c0_32 = arith.constant 0 : index
    %c0_33 = arith.constant 0 : index
    %66 = vector.load %arg8[%c0_32, %c0_33] : memref<1x512xf32, #tpu.memory_space<vmem>>, vector<1x512xf32>
    %67 = arith.mulf %51, %65 : vector<1x512xf32>
    %68 = arith.subf %66, %67 : vector<1x512xf32>
    %69 = vector.broadcast %65 : vector<1x512xf32> to vector<8x512xf32>
    %70 = arith.mulf %47, %69 : vector<8x512xf32>
    %71 = vector.broadcast %68 : vector<1x512xf32> to vector<8x512xf32>
    %72 = arith.addf %70, %71 : vector<8x512xf32>
    %73 = arith.truncf %72 : vector<8x512xf32> to vector<8x512xbf16>
    %c0_34 = arith.constant 0 : index
    %c0_35 = arith.constant 0 : index
    %74 = vector.load %arg9[%c0_34, %c0_35] : memref<512x1024xbf16, #tpu.memory_space<vmem>>, vector<512x1024xbf16>
    %cst_36 = arith.constant dense<0.000000e+00> : vector<8x1024xf32>
    %75 = tpu.matmul %73, %74, %cst_36 {dimension_numbers = #tpu.dot_dimension_numbers<[1], [0], [0], [1], [0, 0, 1, 1], [], []>} : vector<8x512xbf16>, vector<512x1024xbf16>, vector<8x1024xf32> -> vector<8x1024xf32>
    %c0_37 = arith.constant 0 : index
    %c0_38 = arith.constant 0 : index
    %76 = vector.load %arg10[%c0_37, %c0_38] : memref<1x1024xf32, #tpu.memory_space<vmem>>, vector<1x1024xf32>
    %77 = vector.broadcast %76 : vector<1x1024xf32> to vector<8x1024xf32>
    %78 = arith.addf %75, %77 : vector<8x1024xf32>
    %cst_39 = arith.constant 0.000000e+00 : f32
    %79 = vector.broadcast %cst_39 : f32 to vector<8x1024xf32>
    %80 = arith.cmpf oge, %78, %79 : vector<8x1024xf32>
    %cst_40 = arith.constant 2.000000e-01 : f32
    %81 = vector.broadcast %cst_40 : f32 to vector<8x1024xf32>
    %82 = arith.mulf %81, %78 : vector<8x1024xf32>
    %83 = arith.select %80, %78, %82 : vector<8x1024xi1>, vector<8x1024xf32>
    %cst_41 = arith.constant dense<0.000000e+00> : vector<1024xf32>
    %84 = vector.multi_reduction <add>, %83, %cst_41 [0] : vector<8x1024xf32> to vector<1024xf32>
    %85 = vector.shape_cast %84 : vector<1024xf32> to vector<1x1024xf32>
    %cst_42 = arith.constant 8.000000e+00 : f32
    %86 = vector.broadcast %cst_42 : f32 to vector<1x1024xf32>
    %87 = arith.divf %85, %86 : vector<1x1024xf32>
    %88 = arith.mulf %83, %83 : vector<8x1024xf32>
    %cst_43 = arith.constant dense<0.000000e+00> : vector<1024xf32>
    %89 = vector.multi_reduction <add>, %88, %cst_43 [0] : vector<8x1024xf32> to vector<1024xf32>
    %90 = vector.shape_cast %89 : vector<1024xf32> to vector<1x1024xf32>
    %cst_44 = arith.constant 8.000000e+00 : f32
    %91 = vector.broadcast %cst_44 : f32 to vector<1x1024xf32>
    %92 = arith.divf %90, %91 : vector<1x1024xf32>
    %93 = arith.mulf %87, %87 : vector<1x1024xf32>
    %94 = arith.subf %92, %93 : vector<1x1024xf32>
    %cst_45 = arith.constant 0.000000e+00 : f32
    %95 = vector.broadcast %cst_45 : f32 to vector<1x1024xf32>
    %96 = arith.maximumf %94, %95 : vector<1x1024xf32>
    %c0_46 = arith.constant 0 : index
    %c0_47 = arith.constant 0 : index
    %97 = vector.load %arg11[%c0_46, %c0_47] : memref<1x1024xf32, #tpu.memory_space<vmem>>, vector<1x1024xf32>
    %cst_48 = arith.constant 9.99999974E-6 : f32
    %98 = vector.broadcast %cst_48 : f32 to vector<1x1024xf32>
    %99 = arith.addf %96, %98 : vector<1x1024xf32>
    %100 = math.rsqrt %99 : vector<1x1024xf32>
    %101 = arith.mulf %97, %100 : vector<1x1024xf32>
    %c0_49 = arith.constant 0 : index
    %c0_50 = arith.constant 0 : index
    %102 = vector.load %arg12[%c0_49, %c0_50] : memref<1x1024xf32, #tpu.memory_space<vmem>>, vector<1x1024xf32>
    %103 = arith.mulf %87, %101 : vector<1x1024xf32>
    %104 = arith.subf %102, %103 : vector<1x1024xf32>
    %105 = vector.broadcast %101 : vector<1x1024xf32> to vector<8x1024xf32>
    %106 = arith.mulf %83, %105 : vector<8x1024xf32>
    %107 = vector.broadcast %104 : vector<1x1024xf32> to vector<8x1024xf32>
    %108 = arith.addf %106, %107 : vector<8x1024xf32>
    %109 = arith.truncf %108 : vector<8x1024xf32> to vector<8x1024xbf16>
    %c0_51 = arith.constant 0 : index
    %c0_52 = arith.constant 0 : index
    %110 = vector.load %arg13[%c0_51, %c0_52] : memref<1024x768xbf16, #tpu.memory_space<vmem>>, vector<1024x768xbf16>
    %cst_53 = arith.constant dense<0.000000e+00> : vector<8x768xf32>
    %111 = tpu.matmul %109, %110, %cst_53 {dimension_numbers = #tpu.dot_dimension_numbers<[1], [0], [0], [1], [0, 0, 1, 1], [], []>} : vector<8x1024xbf16>, vector<1024x768xbf16>, vector<8x768xf32> -> vector<8x768xf32>
    %c0_54 = arith.constant 0 : index
    %c0_55 = arith.constant 0 : index
    %112 = vector.load %arg14[%c0_54, %c0_55] : memref<1x768xf32, #tpu.memory_space<vmem>>, vector<1x768xf32>
    %113 = vector.broadcast %112 : vector<1x768xf32> to vector<8x768xf32>
    %114 = arith.addf %111, %113 : vector<8x768xf32>
    %115 = math.tanh %114 : vector<8x768xf32>
    %c0_56 = arith.constant 0 : index
    %c0_57 = arith.constant 0 : index
    %116 = vector.load %arg15[%c0_56, %c0_57] : memref<8x768xf32, #tpu.memory_space<vmem>>, vector<8x768xf32>
    tpu.vector_store %arg15[%c0_56, %c0_57], %115 {strides = array<i32>} : memref<8x768xf32, #tpu.memory_space<vmem>>, vector<8x768xf32>,
    return
  }
}

</mosaic_0001>

<bundles_post_ra>
// kernel: generator_forward.1
= control target key start
LH: loop header
LB: loop body
LE: loop exit
PB: predicated region body
PF: predicated region fallthrough
CT: control target
= control target key end

     0   :  { %20 = vsyncpa [#allocation3], 0  ;;  %s8896_s0 = inlined_call_operand.vmem [shape: f32[8,128], index: 0, kind: input, shape index: {}]   ;;  %s8897_s1 = inlined_call_operand.hbm [shape: bf16[128,256], index: 1, kind: input, shape index: {}]   ;;  %s8898_s2 = inlined_call_operand.hbm [shape: f32[1,256], index: 2, kind: input, shape index: {}]   ;;  %s8899_s3 = inlined_call_operand.hbm [shape: f32[1,256], index: 3, kind: input, shape index: {}]   ;;  %s8900_s4 = inlined_call_operand.hbm [shape: f32[1,256], index: 4, kind: input, shape index: {}]   ;;  %s8901_s5 = inlined_call_operand.hbm [shape: bf16[256,512], index: 5, kind: input, shape index: {}]   ;;  %s8902_s6 = inlined_call_operand.hbm [shape: f32[1,512], index: 6, kind: input, shape index: {}]   ;;  %s8903_s7 = inlined_call_operand.hbm [shape: f32[1,512], index: 7, kind: input, shape index: {}]   ;;  %s8904_s8 = inlined_call_operand.hbm [shape: f32[1,512], index: 8, kind: input, shape index: {}]   ;;  %s8905_s9 = inlined_call_operand.hbm [shape: bf16[512,1024], index: 9, kind: input, shape index: {}]   ;;  %s8906_s10 = inlined_call_operand.hbm [shape: f32[1,1024], index: 10, kind: input, shape index: {}]   ;;  %s8907_s11 = inlined_call_operand.hbm [shape: f32[1,1024], index: 11, kind: input, shape index: {}]   ;;  %s8908_s12 = inlined_call_operand.hbm [shape: f32[1,1024], index: 12, kind: input, shape index: {}]   ;;  %s8909_s13 = inlined_call_operand.hbm [shape: bf16[1024,768], index: 13, kind: input, shape index: {}]   ;;  %s8910_s14 = inlined_call_operand.hbm [shape: f32[1,768], index: 14, kind: input, shape index: {}]   ;;  %s8911_s15 = inlined_call_operand.vmem [shape: f32[8,768], index: 15, kind: output, shape index: {}]  }
   0x1   :  { %21 = vsyncpa [#allocation5], 0 }
   0x2   :  { %22 = vsyncpa [#allocation8], 0 }
   0x3   :  { %23 = vsyncpa [#allocation11], 0 }
   0x4   :  { %24 = vsyncpa [#allocation14], 0 }
   0x5   :  { %25 = vsyncpa [#allocation17], 0 }
   0x6   :  { %26 = vsyncpa [#allocation20], 0 }
   0x7   :  { %27 = vsyncpa [#allocation23], 0  ;;  %s8233_s18 = smov [#allocation4]   ;;  %s8234_s20 = smov [#allocation7]  }
   0x8   :  { %s48_s19 = sshll.u32 %s8233_s18, 4  ;;  %s68_s21 = sshll.u32 %s8234_s20, 4  ;;  %s49_s19 = int_to_ptr.vmem [resolvable:$true] %s48_s19  ;;  %s69_s21 = int_to_ptr.vmem [resolvable:$true] %s68_s21 }
   0x9   :  { %s7909_s24 = scalar_lea.hbm %s8898_s2, 32 }
   0xa   :  { %p7910_p0 = scmp.ne.s32.totalorder %s8898_s2, %s7909_s24  ;;  %p7913_p1 = scmp.lt.u32.totalorder %s7909_s24, %s8898_s2 }
   0xc   :  { %p7915_p2 = pnand %p7913_p1, %p7910_p0 }
   0xe   :  { %7918 = shalt.err (!%p7915_p2)
}
   0xf   :  { %s7919_s29 = scalar_lea.vmem %s49_s19, 32  ;;  %p7924_p4 = scmp.lt.s32.totalorder %s49_s19, %s49_s19 }
  0x10   :  { %p7920_p3 = scmp.ne.s32.totalorder %s49_s19, %s7919_s29  ;;  %p7925_p5 = scmp.lt.s32.totalorder %s7919_s29, %s7919_s29 }
  0x12   :  { %p7926_p6 = por %p7925_p5, %p7924_p4 }
  0x14   :  { %p7927_p7 = pnand %p7926_p6, %p7920_p3 }
  0x16   :  { %7930 = shalt.err (!%p7927_p7)
}
  0x17   :  { %51 = dma.hbm_to_vmem [thread:$0]  %s8898_s2, 32, %s49_s19, [#allocation5]  }
  0x18   :  { %s7931_s20 = scalar_lea.hbm %s8900_s4, 32 }
  0x19   :  { %p7932_p8 = scmp.ne.s32.totalorder %s8900_s4, %s7931_s20  ;;  %p7935_p9 = scmp.lt.u32.totalorder %s7931_s20, %s8900_s4 }
  0x1b   :  { %p7937_p10 = pnand %p7935_p9, %p7932_p8 }
  0x1d   :  { %7940 = shalt.err (!%p7937_p10)
}
  0x1e   :  { %s7941_s26 = scalar_lea.vmem %s69_s21, 32  ;;  %p7946_p12 = scmp.lt.s32.totalorder %s69_s21, %s69_s21 }
  0x1f   :  { %p7942_p11 = scmp.ne.s32.totalorder %s69_s21, %s7941_s26  ;;  %p7947_p13 = scmp.lt.s32.totalorder %s7941_s26, %s7941_s26 }
  0x21   :  { %p7948_p0 = por %p7947_p13, %p7946_p12 }
  0x23   :  { %p7949_p1 = pnand %p7948_p0, %p7942_p11 }
  0x25   :  { %7952 = shalt.err (!%p7949_p1)
}
  0x26   :  { %71 = dma.hbm_to_vmem [thread:$0]  %s8900_s4, 32, %s69_s21, [#allocation8]  }
  0x27   :  { %s8235_s27 = smov [#allocation10]   ;;  %s8236_s29 = smov [#allocation13]  }
  0x28   :  { %s90_s28 = sshll.u32 %s8235_s27, 4  ;;  %s110_s30 = sshll.u32 %s8236_s29, 4  ;;  %s91_s28 = int_to_ptr.vmem [resolvable:$true] %s90_s28  ;;  %s111_s30 = int_to_ptr.vmem [resolvable:$true] %s110_s30 }
  0x29   :  { %s7953_s18 = scalar_lea.hbm %s8902_s6, 64 }
  0x2a   :  { %p7954_p2 = scmp.ne.s32.totalorder %s8902_s6, %s7953_s18  ;;  %p7957_p3 = scmp.lt.u32.totalorder %s7953_s18, %s8902_s6 }
  0x2c   :  { %p7959_p4 = pnand %p7957_p3, %p7954_p2 }
  0x2e   :  { %7962 = shalt.err (!%p7959_p4)
}
  0x2f   :  { %s7963_s4 = scalar_lea.vmem %s91_s28, 64  ;;  %p7968_p6 = scmp.lt.s32.totalorder %s91_s28, %s91_s28 }
  0x30   :  { %p7964_p5 = scmp.ne.s32.totalorder %s91_s28, %s7963_s4  ;;  %p7969_p7 = scmp.lt.s32.totalorder %s7963_s4, %s7963_s4 }
  0x32   :  { %p7970_p8 = por %p7969_p7, %p7968_p6 }
  0x34   :  { %p7971_p9 = pnand %p7970_p8, %p7964_p5 }
  0x36   :  { %7974 = shalt.err (!%p7971_p9)
}
  0x37   :  { %93 = dma.hbm_to_vmem [thread:$0]  %s8902_s6, 64, %s91_s28, [#allocation11]  }
  0x38   :  { %s7975_s19 = scalar_lea.hbm %s8904_s8, 64 }
  0x39   :  { %p7976_p10 = scmp.ne.s32.totalorder %s8904_s8, %s7975_s19  ;;  %p7979_p11 = scmp.lt.u32.totalorder %s7975_s19, %s8904_s8 }
  0x3b   :  { %p7981_p12 = pnand %p7979_p11, %p7976_p10 }
  0x3d   :  { %7984 = shalt.err (!%p7981_p12)
}
  0x3e   :  { %s7985_s18 = scalar_lea.vmem %s111_s30, 64  ;;  %p7990_p0 = scmp.lt.s32.totalorder %s111_s30, %s111_s30 }
  0x3f   :  { %p7986_p13 = scmp.ne.s32.totalorder %s111_s30, %s7985_s18  ;;  %p7991_p1 = scmp.lt.s32.totalorder %s7985_s18, %s7985_s18 }
  0x41   :  { %p7992_p2 = por %p7991_p1, %p7990_p0 }
  0x43   :  { %p7993_p3 = pnand %p7992_p2, %p7986_p13 }
  0x45   :  { %7996 = shalt.err (!%p7993_p3)
}
  0x46   :  { %113 = dma.hbm_to_vmem [thread:$0]  %s8904_s8, 64, %s111_s30, [#allocation14]  }
  0x47   :  { %s8237_s20 = smov [#allocation16]   ;;  %s8238_s23 = smov [#allocation19]  }
  0x48   :  { %s132_s22 = sshll.u32 %s8237_s20, 4  ;;  %s152_s24 = sshll.u32 %s8238_s23, 4  ;;  %s133_s22 = int_to_ptr.vmem [resolvable:$true] %s132_s22  ;;  %s153_s24 = int_to_ptr.vmem [resolvable:$true] %s152_s24 }
  0x49   :  { %s7997_s25 = scalar_lea.hbm %s8906_s10, 128 }
  0x4a   :  { %p7998_p4 = scmp.ne.s32.totalorder %s8906_s10, %s7997_s25  ;;  %p8001_p5 = scmp.lt.u32.totalorder %s7997_s25, %s8906_s10 }
  0x4c   :  { %p8003_p6 = pnand %p8001_p5, %p7998_p4 }
  0x4e   :  { %8006 = shalt.err (!%p8003_p6)
}
  0x4f   :  { %s8007_s8 = scalar_lea.vmem %s133_s22, 128  ;;  %p8012_p8 = scmp.lt.s32.totalorder %s133_s22, %s133_s22 }
  0x50   :  { %p8008_p7 = scmp.ne.s32.totalorder %s133_s22, %s8007_s8  ;;  %p8013_p9 = scmp.lt.s32.totalorder %s8007_s8, %s8007_s8 }
  0x52   :  { %p8014_p10 = por %p8013_p9, %p8012_p8 }
  0x54   :  { %p8015_p11 = pnand %p8014_p10, %p8008_p7 }
  0x56   :  { %8018 = shalt.err (!%p8015_p11)
}
  0x57   :  { %135 = dma.hbm_to_vmem [thread:$0]  %s8906_s10, 128, %s133_s22, [#allocation17]  }
  0x58   :  { %s8019_s18 = scalar_lea.hbm %s8908_s12, 128 }
  0x59   :  { %p8020_p12 = scmp.ne.s32.totalorder %s8908_s12, %s8019_s18  ;;  %p8023_p13 = scmp.lt.u32.totalorder %s8019_s18, %s8908_s12 }
  0x5b   :  { %p8025_p0 = pnand %p8023_p13, %p8020_p12 }
  0x5d   :  { %8028 = shalt.err (!%p8025_p0)
}
  0x5e   :  { %s8029_s4 = scalar_lea.vmem %s153_s24, 128  ;;  %p8034_p2 = scmp.lt.s32.totalorder %s153_s24, %s153_s24 }
  0x5f   :  { %p8030_p1 = scmp.ne.s32.totalorder %s153_s24, %s8029_s4  ;;  %p8035_p3 = scmp.lt.s32.totalorder %s8029_s4, %s8029_s4 }
  0x61   :  { %p8036_p4 = por %p8035_p3, %p8034_p2 }
  0x63   :  { %p8037_p5 = pnand %p8036_p4, %p8030_p1 }
  0x65   :  { %8040 = shalt.err (!%p8037_p5)
}
  0x66   :  { %155 = dma.hbm_to_vmem [thread:$0]  %s8908_s12, 128, %s153_s24, [#allocation20]  }
  0x67   :  { %s8239_s21 = smov [#allocation2]   ;;  %s8041_s19 = scalar_lea.hbm %s8897_s1, 2048 }
  0x68   :  { %s35_s25 = sshll.u32 %s8239_s21, 4  ;;  %p8042_p6 = scmp.ne.s32.totalorder %s8897_s1, %s8041_s19  ;;  %s36_s25 = int_to_ptr.vmem [resolvable:$true] %s35_s25 }
  0x69   :  { %p8045_p7 = scmp.lt.u32.totalorder %s8041_s19, %s8897_s1 }
  0x6b   :  { %p8047_p8 = pnand %p8045_p7, %p8042_p6 }
  0x6d   :  { %8050 = shalt.err (!%p8047_p8)
}
  0x6e   :  { %s8051_s16 = scalar_lea.vmem %s36_s25, 2048  ;;  %p8056_p10 = scmp.lt.s32.totalorder %s36_s25, %s36_s25 }
  0x6f   :  { %p8052_p9 = scmp.ne.s32.totalorder %s36_s25, %s8051_s16  ;;  %p8057_p11 = scmp.lt.s32.totalorder %s8051_s16, %s8051_s16 }
  0x71   :  { %p8058_p12 = por %p8057_p11, %p8056_p10 }
  0x73   :  { %p8059_p13 = pnand %p8058_p12, %p8052_p9 }
  0x75   :  { %8062 = shalt.err (!%p8059_p13)
}
  0x76   :  { %s8240_s12 = smov 128   ;;  %s8241_s24 = smov 8  }
  0x77   :  { %41 = dma.hbm_to_vmem [thread:$0]  %s8897_s1, 2048, %s36_s25, [#allocation3], %s8240_s12, %s8240_s12, %s8241_s24  }
  0x78   :  { %s8242_s6 = smov [#allocation6]   ;;  %s8243_s20 = smov [#allocation9]  }
  0x79   :  { %s58_s28 = sshll.u32 %s8242_s6, 4  ;;  %s77_s23 = sshll.u32 %s8243_s20, 4  ;;  %s59_s28 = int_to_ptr.vmem [resolvable:$true] %s58_s28  ;;  %s78_s23 = int_to_ptr.vmem [resolvable:$true] %s77_s23 }
  0x7a   :  { %s8063_s22 = scalar_lea.hbm %s8899_s3, 32 }
  0x7b   :  { %p8064_p0 = scmp.ne.s32.totalorder %s8899_s3, %s8063_s22  ;;  %p8067_p1 = scmp.lt.u32.totalorder %s8063_s22, %s8899_s3 }
  0x7d   :  { %p8069_p2 = pnand %p8067_p1, %p8064_p0 }
  0x7f   :  { %8072 = shalt.err (!%p8069_p2)
}
  0x80   :  { %s8073_s1 = scalar_lea.vmem %s59_s28, 32  ;;  %p8078_p4 = scmp.lt.s32.totalorder %s59_s28, %s59_s28 }
  0x81   :  { %p8074_p3 = scmp.ne.s32.totalorder %s59_s28, %s8073_s1  ;;  %p8079_p5 = scmp.lt.s32.totalorder %s8073_s1, %s8073_s1 }
  0x83   :  { %p8080_p6 = por %p8079_p5, %p8078_p4 }
  0x85   :  { %p8081_p7 = pnand %p8080_p6, %p8074_p3 }
  0x87   :  { %8084 = shalt.err (!%p8081_p7)
}
  0x88   :  { %61 = dma.hbm_to_vmem [thread:$0]  %s8899_s3, 32, %s59_s28, [#allocation5]  }
  0x89   :  { %s8085_s29 = scalar_lea.hbm %s8901_s5, 8192 }
  0x8a   :  { %p8086_p8 = scmp.ne.s32.totalorder %s8901_s5, %s8085_s29  ;;  %p8089_p9 = scmp.lt.u32.totalorder %s8085_s29, %s8901_s5 }
  0x8c   :  { %p8091_p10 = pnand %p8089_p9, %p8086_p8 }
  0x8e   :  { %8094 = shalt.err (!%p8091_p10)
}
  0x8f   :  { %s8095_s18 = scalar_lea.vmem %s78_s23, 8192  ;;  %p8100_p12 = scmp.lt.s32.totalorder %s78_s23, %s78_s23 }
  0x90   :  { %p8096_p11 = scmp.ne.s32.totalorder %s78_s23, %s8095_s18  ;;  %p8101_p13 = scmp.lt.s32.totalorder %s8095_s18, %s8095_s18 }
  0x92   :  { %p8102_p0 = por %p8101_p13, %p8100_p12 }
  0x94   :  { %p8103_p1 = pnand %p8102_p0, %p8096_p11 }
  0x96   :  { %8106 = shalt.err (!%p8103_p1)
}
  0x97   :  { %s8244_s3 = smov 256   ;;  %s8245_s6 = smov 16  }
  0x98   :  { %83 = dma.hbm_to_vmem [thread:$0]  %s8901_s5, 8192, %s78_s23, [#allocation8], %s8244_s3, %s8244_s3, %s8245_s6  }
  0x99   :  { %s8246_s4 = smov [#allocation12]   ;;  %s8247_s22 = smov [#allocation15]  }
  0x9a   :  { %s100_s10 = sshll.u32 %s8246_s4, 4  ;;  %s119_s21 = sshll.u32 %s8247_s22, 4  ;;  %s101_s10 = int_to_ptr.vmem [resolvable:$true] %s100_s10  ;;  %s120_s21 = int_to_ptr.vmem [resolvable:$true] %s119_s21 }
  0x9b   :  { %s8107_s19 = scalar_lea.hbm %s8903_s7, 64 }
  0x9c   :  { %p8108_p2 = scmp.ne.s32.totalorder %s8903_s7, %s8107_s19  ;;  %p8111_p3 = scmp.lt.u32.totalorder %s8107_s19, %s8903_s7 }
  0x9e   :  { %p8113_p4 = pnand %p8111_p3, %p8108_p2 }
  0xa0   :  { %8116 = shalt.err (!%p8113_p4)
}
  0xa1   :  { %s8117_s5 = scalar_lea.vmem %s101_s10, 64  ;;  %p8122_p6 = scmp.lt.s32.totalorder %s101_s10, %s101_s10 }
  0xa2   :  { %p8118_p5 = scmp.ne.s32.totalorder %s101_s10, %s8117_s5  ;;  %p8123_p7 = scmp.lt.s32.totalorder %s8117_s5, %s8117_s5 }
  0xa4   :  { %p8124_p8 = por %p8123_p7, %p8122_p6 }
  0xa6   :  { %p8125_p9 = pnand %p8124_p8, %p8118_p5 }
  0xa8   :  { %8128 = shalt.err (!%p8125_p9)
}
  0xa9   :  { %103 = dma.hbm_to_vmem [thread:$0]  %s8903_s7, 64, %s101_s10, [#allocation11]  }
  0xaa   :  { %s8129_s12 = scalar_lea.hbm %s8905_s9, 32768 }
  0xab   :  { %p8130_p10 = scmp.ne.s32.totalorder %s8905_s9, %s8129_s12  ;;  %p8133_p11 = scmp.lt.u32.totalorder %s8129_s12, %s8905_s9 }
  0xad   :  { %p8135_p12 = pnand %p8133_p11, %p8130_p10 }
  0xaf   :  { %8138 = shalt.err (!%p8135_p12)
}
  0xb0   :  { %s8139_s6 = scalar_lea.vmem %s120_s21, 32768  ;;  %p8144_p0 = scmp.lt.s32.totalorder %s120_s21, %s120_s21 }
  0xb1   :  { %p8140_p13 = scmp.ne.s32.totalorder %s120_s21, %s8139_s6  ;;  %p8145_p1 = scmp.lt.s32.totalorder %s8139_s6, %s8139_s6 }
  0xb3   :  { %p8146_p2 = por %p8145_p1, %p8144_p0 }
  0xb5   :  { %p8147_p3 = pnand %p8146_p2, %p8140_p13 }
  0xb7   :  { %8150 = shalt.err (!%p8147_p3)
}
  0xb8   :  { %s8248_s7 = smov 512   ;;  %s8249_s28 = smov 32  }
  0xb9   :  { %125 = dma.hbm_to_vmem [thread:$0]  %s8905_s9, 32768, %s120_s21, [#allocation14], %s8248_s7, %s8248_s7, %s8249_s28  }
  0xba   :  { %s8250_s10 = smov [#allocation18]   ;;  %s8251_s26 = smov [#allocation21]  }
  0xbb   :  { %s142_s22 = sshll.u32 %s8250_s10, 4  ;;  %s161_s2 = sshll.u32 %s8251_s26, 4  ;;  %s143_s22 = int_to_ptr.vmem [resolvable:$true] %s142_s22  ;;  %s162_s2 = int_to_ptr.vmem [resolvable:$true] %s161_s2 }
  0xbc   :  { %s8151_s25 = scalar_lea.hbm %s8907_s11, 128 }
  0xbd   :  { %p8152_p4 = scmp.ne.s32.totalorder %s8907_s11, %s8151_s25  ;;  %p8155_p5 = scmp.lt.u32.totalorder %s8151_s25, %s8907_s11 }
  0xbf   :  { %p8157_p6 = pnand %p8155_p5, %p8152_p4 }
  0xc1   :  { %8160 = shalt.err (!%p8157_p6)
}
  0xc2   :  { %s8161_s9 = scalar_lea.vmem %s143_s22, 128  ;;  %p8166_p8 = scmp.lt.s32.totalorder %s143_s22, %s143_s22 }
  0xc3   :  { %p8162_p7 = scmp.ne.s32.totalorder %s143_s22, %s8161_s9  ;;  %p8167_p9 = scmp.lt.s32.totalorder %s8161_s9, %s8161_s9 }
  0xc5   :  { %p8168_p10 = por %p8167_p9, %p8166_p8 }
  0xc7   :  { %p8169_p11 = pnand %p8168_p10, %p8162_p7 }
  0xc9   :  { %8172 = shalt.err (!%p8169_p11)
}
  0xca   :  { %145 = dma.hbm_to_vmem [thread:$0]  %s8907_s11, 128, %s143_s22, [#allocation17]  }
  0xcb   :  { %s8173_s12 = scalar_lea.hbm %s8909_s13, 49152 }
  0xcc   :  { %p8174_p12 = scmp.ne.s32.totalorder %s8909_s13, %s8173_s12  ;;  %p8177_p13 = scmp.lt.u32.totalorder %s8173_s12, %s8909_s13 }
  0xce   :  { %p8179_p0 = pnand %p8177_p13, %p8174_p12 }
  0xd0   :  { %8182 = shalt.err (!%p8179_p0)
}
  0xd1   :  { %s8183_s6 = scalar_lea.vmem %s162_s2, 49152  ;;  %p8188_p2 = scmp.lt.s32.totalorder %s162_s2, %s162_s2 }
  0xd2   :  { %p8184_p1 = scmp.ne.s32.totalorder %s162_s2, %s8183_s6  ;;  %p8189_p3 = scmp.lt.s32.totalorder %s8183_s6, %s8183_s6 }
  0xd4   :  { %p8190_p4 = por %p8189_p3, %p8188_p2 }
  0xd6   :  { %p8191_p5 = pnand %p8190_p4, %p8184_p1 }
  0xd8   :  { %8194 = shalt.err (!%p8191_p5)
}
  0xd9   :  { %s8252_s11 = smov 384   ;;  %s8253_s7 = smov 24  }
  0xda   :  { %167 = dma.hbm_to_vmem [thread:$0]  %s8909_s13, 49152, %s162_s2, [#allocation20], %s8252_s11, %s8252_s11, %s8253_s7  }
  0xdb   :  { %s8254_s4 = smov [#allocation22]   ;;  %s8195_s19 = scalar_lea.hbm %s8910_s14, 96 }
  0xdc   :  { %s174_s10 = sshll.u32 %s8254_s4, 4  ;;  %p8196_p6 = scmp.ne.s32.totalorder %s8910_s14, %s8195_s19  ;;  %s175_s10 = int_to_ptr.vmem [resolvable:$true] %s174_s10 }
  0xdd   :  { %p8199_p7 = scmp.lt.u32.totalorder %s8195_s19, %s8910_s14 }
  0xdf   :  { %p8201_p8 = pnand %p8199_p7, %p8196_p6 }
  0xe1   :  { %8204 = shalt.err (!%p8201_p8)
}
  0xe2   :  { %s8205_s5 = scalar_lea.vmem %s175_s10, 96  ;;  %p8210_p10 = scmp.lt.s32.totalorder %s175_s10, %s175_s10 }
  0xe3   :  { %p8206_p9 = scmp.ne.s32.totalorder %s175_s10, %s8205_s5  ;;  %p8211_p11 = scmp.lt.s32.totalorder %s8205_s5, %s8205_s5 }
  0xe5   :  { %p8212_p12 = por %p8211_p11, %p8210_p10 }
  0xe7   :  { %p8213_p13 = pnand %p8212_p12, %p8206_p9 }
  0xe9   :  { %8216 = shalt.err (!%p8213_p13)
}
  0xea   :  { %177 = dma.hbm_to_vmem [thread:$0]  %s8910_s14, 96, %s175_s10, [#allocation23]  }
  0xeb   :  { %8217 = dma.done.wait [#allocation3], 2048  }
  0xec   :  { %8218 = vsyncadd [#allocation3], 4294965248 }
  0xed   :  { %8219 = dma.done.wait [#allocation5], 64  }
  0xee   :  { %8220 = vsyncadd [#allocation5], 4294967232 }
  0xef   :  { %8221 = dma.done.wait [#allocation8], 8224  }
  0xf0   :  { %8222 = vsyncadd [#allocation8], 4294959072 }
  0xf1   :  { %8223 = dma.done.wait [#allocation11], 128  }
  0xf2   :  { %8224 = vsyncadd [#allocation11], 4294967168 }
  0xf3   :  { %8225 = dma.done.wait [#allocation14], 32832  }
  0xf4   :  { %8226 = vsyncadd [#allocation14], 4294934464 }
  0xf5   :  { %8227 = dma.done.wait [#allocation17], 256  }
  0xf6   :  { %8228 = vsyncadd [#allocation17], 4294967040 }
  0xf7   :  { %8229 = dma.done.wait [#allocation20], 49280  }
  0xf8   :  { %8230 = vsyncadd [#allocation20], 4294918016 }
  0xf9   :  { %8231 = dma.done.wait [#allocation23], 96  }
  0xfa   :  { %8232 = vsyncadd [#allocation23], 4294967200  ;;  %v8255_v0 = vmov 0   ;;  %v7173_v1 = vld [vmem:[#allocation2 + $0x4] ss:$8 sps:$4 sm:$0xff]   ;;  %v241_v52 = vlaneseq }
  0xfb   :  { %363 = vmatprep.mubr.bf16.mxu0 %v8255_v0  ;;  %v7175_v2 = vld [vmem:[#allocation2] ss:$8 sps:$4 sm:$0xff]   ;;  %331 = vmatprep.subr.bf16.mxu0 %v7173_v1  ;;  %v7176_v3 = vld [vmem:[#allocation2 + $0x14] ss:$8 sps:$4 sm:$0xff]   ;;  %v7178_v4 = vld [vmem:[#allocation2 + $0x10] ss:$8 sps:$4 sm:$0xff]  }
  0xfc   :  { %332 = vmatpush1.bf16.msra.mxu0 %v7175_v2  ;;  %v7179_v5 = vld [vmem:[#allocation2 + $0x24] ss:$8 sps:$4 sm:$0xff]   ;;  %v7181_v6 = vld [vmem:[#allocation2 + $0x20] ss:$8 sps:$4 sm:$0xff]   ;;  %v7182_v7 = vld [vmem:[#allocation2 + $0x34] ss:$8 sps:$4 sm:$0xff]  }
  0xfd   :  { %333 = vmatprep.subr.bf16.mxu0 %v7176_v3  ;;  %v7184_v8 = vld [vmem:[#allocation2 + $0x30] ss:$8 sps:$4 sm:$0xff]   ;;  %v7185_v9 = vld [vmem:[#allocation2 + $0x44] ss:$8 sps:$4 sm:$0xff]   ;;  %v7187_v10 = vld [vmem:[#allocation2 + $0x40] ss:$8 sps:$4 sm:$0xff]  }
  0xfe   :  { %v7188_v11 = vld [vmem:[#allocation2 + $0x54] ss:$8 sps:$4 sm:$0xff]   ;;  %v7190_v12 = vld [vmem:[#allocation2 + $0x50] ss:$8 sps:$4 sm:$0xff]   ;;  %v7191_v13 = vld [vmem:[#allocation2 + $0x64] ss:$8 sps:$4 sm:$0xff]  }
  0xff   :  { %v7193_v14 = vld [vmem:[#allocation2 + $0x60] ss:$8 sps:$4 sm:$0xff]   ;;  %v7194_v15 = vld [vmem:[#allocation2 + $0x74] ss:$8 sps:$4 sm:$0xff]   ;;  %v7196_v16 = vld [vmem:[#allocation2 + $0x70] ss:$8 sps:$4 sm:$0xff]  }
 0x100   :  { %334 = vmatpush1.bf16.msra.mxu0 %v7178_v4  ;;  %v221_v17 = vld [vmem:[%s8896_s0] sm:$0xff]  ;;  %v7199_v19 = vld [vmem:[#allocation9 + $0x4] ss:$16 sps:$4 sm:$0xff]   ;;  %v8508_v53 = vshrl.u32 %v241_v52, 7 }
 0x101   :  { %335 = vmatprep.subr.bf16.mxu0 %v7179_v5  ;;  %v222_v18 = vpack.c.bf16 %v221_v17, %v221_v17  ;;  %v7197_v20 = vld [vmem:[#allocation9] ss:$16 sps:$4 sm:$0xff]   ;;  %v7202_v21 = vld [vmem:[#allocation9 + $0x24] ss:$16 sps:$4 sm:$0xff]   ;;  %v7247_v51 = vld [vmem:[#allocation9 + $0xc] ss:$16 sps:$4 sm:$0xff]  }
 0x102   :  { %v7200_v22 = vld [vmem:[#allocation9 + $0x20] ss:$16 sps:$4 sm:$0xff]   ;;  %v7205_v23 = vld [vmem:[#allocation9 + $0x44] ss:$16 sps:$4 sm:$0xff]   ;;  %v8511_v54 = vsub.s32 0, %v8508_v53  ;;  %v8514_v56 = vsub.s32 1, %v8508_v53 }
 0x103   :  { %v7203_v24 = vld [vmem:[#allocation9 + $0x40] ss:$16 sps:$4 sm:$0xff]   ;;  %v7208_v25 = vld [vmem:[#allocation9 + $0x64] ss:$16 sps:$4 sm:$0xff]   ;;  %v239_v55 = vld [vmem:[#allocation4] sm:$0x3] }
 0x104   :  { %336 = vmatpush1.bf16.msra.mxu0 %v7181_v6  ;;  %v7206_v26 = vld [vmem:[#allocation9 + $0x60] ss:$16 sps:$4 sm:$0xff]   ;;  %v7211_v27 = vld [vmem:[#allocation9 + $0x84] ss:$16 sps:$4 sm:$0xff]   ;;  %v244_v57 = vrot.slane %v239_v55, %v8511_v54  ;;  %v248_v58 = vrot.slane %v239_v55, %v8514_v56 }
 0x105   :  { %337 = vmatprep.subr.bf16.mxu0 %v7182_v7  ;;  %v7209_v28 = vld [vmem:[#allocation9 + $0x80] ss:$16 sps:$4 sm:$0xff]   ;;  %v7214_v29 = vld [vmem:[#allocation9 + $0xa4] ss:$16 sps:$4 sm:$0xff]  }
 0x106   :  { %v7212_v30 = vld [vmem:[#allocation9 + $0xa0] ss:$16 sps:$4 sm:$0xff]   ;;  %v7217_v31 = vld [vmem:[#allocation9 + $0xc4] ss:$16 sps:$4 sm:$0xff]  }
 0x107   :  { %v7215_v32 = vld [vmem:[#allocation9 + $0xc0] ss:$16 sps:$4 sm:$0xff]   ;;  %v7220_v34 = vld [vmem:[#allocation9 + $0xe4] ss:$16 sps:$4 sm:$0xff]  }
 0x108   :  { %338 = vmatpush1.bf16.msra.mxu0 %v7184_v8  ;;  %v7218_v33 = vld [vmem:[#allocation9 + $0xe0] ss:$16 sps:$4 sm:$0xff]   ;;  %v7223_v35 = vld [vmem:[#allocation9 + $0x104] ss:$16 sps:$4 sm:$0xff]  }
 0x109   :  { %339 = vmatprep.subr.bf16.mxu0 %v7185_v9  ;;  %v7221_v36 = vld [vmem:[#allocation9 + $0x100] ss:$16 sps:$4 sm:$0xff]   ;;  %v7226_v37 = vld [vmem:[#allocation9 + $0x124] ss:$16 sps:$4 sm:$0xff]  }
 0x10a   :  { %v7224_v38 = vld [vmem:[#allocation9 + $0x120] ss:$16 sps:$4 sm:$0xff]   ;;  %v7229_v39 = vld [vmem:[#allocation9 + $0x144] ss:$16 sps:$4 sm:$0xff]  }
 0x10b   :  { %v7227_v40 = vld [vmem:[#allocation9 + $0x140] ss:$16 sps:$4 sm:$0xff]   ;;  %v7232_v41 = vld [vmem:[#allocation9 + $0x164] ss:$16 sps:$4 sm:$0xff]  }
 0x10c   :  { %340 = vmatpush1.bf16.msra.mxu0 %v7187_v10  ;;  %v7230_v42 = vld [vmem:[#allocation9 + $0x160] ss:$16 sps:$4 sm:$0xff]   ;;  %v7235_v43 = vld [vmem:[#allocation9 + $0x184] ss:$16 sps:$4 sm:$0xff]  }
 0x10d   :  { %341 = vmatprep.subr.bf16.mxu0 %v7188_v11  ;;  %v7233_v44 = vld [vmem:[#allocation9 + $0x180] ss:$16 sps:$4 sm:$0xff]   ;;  %v7238_v45 = vld [vmem:[#allocation9 + $0x1a4] ss:$16 sps:$4 sm:$0xff]  }
 0x10e   :  { %v7236_v46 = vld [vmem:[#allocation9 + $0x1a0] ss:$16 sps:$4 sm:$0xff]   ;;  %v7241_v47 = vld [vmem:[#allocation9 + $0x1c4] ss:$16 sps:$4 sm:$0xff]  }
 0x10f   :  { %v7239_v48 = vld [vmem:[#allocation9 + $0x1c0] ss:$16 sps:$4 sm:$0xff]   ;;  %v7244_v49 = vld [vmem:[#allocation9 + $0x1e4] ss:$16 sps:$4 sm:$0xff]  }
 0x110   :  { %342 = vmatpush1.bf16.msra.mxu0 %v7190_v12  ;;  %v7242_v50 = vld [vmem:[#allocation9 + $0x1e0] ss:$16 sps:$4 sm:$0xff]  }
 0x111   :  { %343 = vmatprep.subr.bf16.mxu0 %v7191_v13 }
 0x114   :  { %344 = vmatpush1.bf16.msra.mxu0 %v7193_v14 }
 0x115   :  { %345 = vmatprep.subr.bf16.mxu0 %v7194_v15 }
 0x118   :  { %346 = vmatpush1.bf16.msra.mxu0 %v7196_v16 }
 0x119   :  { %895 = vmatprep.subr.bf16.mxu0 %v7199_v19 }
 0x11b   :  { %364 = vmatmul.mubr.bf16.vlgmr.msra.gmra.mrb[0].mxu0 %v222_v18 }
 0x11c   :  { %896 = vmatpush1.bf16.msra.mxu0 %v7197_v20 }
 0x11d   :  { %897 = vmatprep.subr.bf16.mxu0 %v7202_v21 }
 0x120   :  { %898 = vmatpush1.bf16.msra.mxu0 %v7200_v22 }
 0x121   :  { %899 = vmatprep.subr.bf16.mxu0 %v7205_v23 }
 0x124   :  { %900 = vmatpush1.bf16.msra.mxu0 %v7203_v24 }
 0x125   :  { %901 = vmatprep.subr.bf16.mxu0 %v7208_v25 }
 0x128   :  { %902 = vmatpush1.bf16.msra.mxu0 %v7206_v26 }
 0x129   :  { %903 = vmatprep.subr.bf16.mxu0 %v7211_v27 }
 0x12c   :  { %904 = vmatpush1.bf16.msra.mxu0 %v7209_v28 }
 0x12d   :  { %905 = vmatprep.subr.bf16.mxu0 %v7214_v29 }
 0x130   :  { %906 = vmatpush1.bf16.msra.mxu0 %v7212_v30 }
 0x131   :  { %907 = vmatprep.subr.bf16.mxu0 %v7217_v31 }
 0x134   :  { %908 = vmatpush1.bf16.msra.mxu0 %v7215_v32 }
 0x135   :  { %909 = vmatprep.subr.bf16.mxu0 %v7220_v34 }
 0x138   :  { %910 = vmatpush1.bf16.msra.mxu0 %v7218_v33 }
 0x139   :  { %911 = vmatprep.subr.bf16.mxu0 %v7223_v35 }
 0x13c   :  { %912 = vmatpush1.bf16.msra.mxu0 %v7221_v36 }
 0x13d   :  { %913 = vmatprep.subr.bf16.mxu0 %v7226_v37 }
 0x140   :  { %914 = vmatpush1.bf16.msra.mxu0 %v7224_v38 }
 0x141   :  { %915 = vmatprep.subr.bf16.mxu0 %v7229_v39 }
 0x144   :  { %916 = vmatpush1.bf16.msra.mxu0 %v7227_v40 }
 0x145   :  { %917 = vmatprep.subr.bf16.mxu0 %v7232_v41 }
 0x148   :  { %918 = vmatpush1.bf16.msra.mxu0 %v7230_v42 }
 0x149   :  { %919 = vmatprep.subr.bf16.mxu0 %v7235_v43  ;;  %v8256_v43 = vmov 1966171168  }
 0x14c   :  { %920 = vmatpush1.bf16.msra.mxu0 %v7233_v44  ;;  %v424_v44 = vunpack.c.l.s4 %v8256_v43  ;;  %v1317_v43 = vld [vmem:[#allocation15 + $0x400] sm:$0xff] }
 0x14d   :  { %921 = vmatprep.subr.bf16.mxu0 %v7238_v45 }
 0x14e   :  { %v425_v45 = vunpack.c.0.s8 %v424_v44 }
 0x150   :  { %922 = vmatpush1.bf16.msra.mxu0 %v7236_v46 }
 0x151   :  { %923 = vmatprep.subr.bf16.mxu0 %v7241_v47  ;;  %v8519_v47 = vsub.s32 %v425_v45, %v8508_v53  ;;  %v1321_v45 = vld [vmem:[#allocation15 + $0x420] sm:$0xff] }
 0x154   :  { %924 = vmatpush1.bf16.msra.mxu0 %v7239_v48 }
 0x155   :  { %925 = vmatprep.subr.bf16.mxu0 %v7244_v49 }
 0x158   :  { %926 = vmatpush1.bf16.msra.mxu0 %v7242_v50 }
 0x159   :  { %936 = vmatprep.subr.bf16.mxu0 %v7247_v51  ;;  %v415_v51 = vld [vmem:[#allocation6] sm:$0x3] }
 0x1ee   :  { %v365_v59 = vpop.f32.mrb[0].mxu0 }
 0x1ef   :  { %v366_v60 = vadd.f32 %v365_v59, %v244_v57  ;;  %v367_v61 = vpop.f32.mrb[1].mxu0 }
 0x1f0   :  { %v368_v62 = vadd.f32 %v367_v61, %v248_v58  ;;  %v369_v63 = vpop.f32.mrb[2].mxu0 }
 0x1f1   :  { %vm372_vm0 = vcmp.ge.f32.partialorder %v366_v60, 0.0  ;;  %v374_v0 = vmul.f32 0.2, %v366_v60  ;;  %v370_v1 = vpop.f32.mrb[3].mxu0 }
 0x1f2   :  { %vm373_vm1 = vcmp.ge.f32.partialorder %v368_v62, 0.0  ;;  %v375_v2 = vmul.f32 0.2, %v368_v62  ;;  %v439_v1 = vld [vmem:[#allocation7] sm:$0x3] }
 0x1f3   :  { %v376_v3 = vsel %vm372_vm0, %v366_v60, %v374_v0 }
 0x1f4   :  { %v378_v4 = vrot.slane %v376_v3, 4  ;;  %v393_v5 = vmul.f32 %v376_v3, %v376_v3  ;;  %v377_v6 = vsel %vm373_vm1, %v368_v62, %v375_v2 }
 0x1f5   :  { %v384_v7 = vrot.slane %v377_v6, 4  ;;  %v394_v8 = vmul.f32 %v377_v6, %v377_v6 }
 0x1f6   :  { %v379_v9 = vadd.f32 %v378_v4, %v376_v3  ;;  %v395_v10 = vrot.slane %v393_v5, 4 }
 0x1f7   :  { %v385_v11 = vadd.f32 %v384_v7, %v377_v6  ;;  %v401_v12 = vrot.slane %v394_v8, 4 }
 0x1f8   :  { %v380_v13 = vrot.slane %v379_v9, 2  ;;  %v396_v14 = vadd.f32 %v395_v10, %v393_v5 }
 0x1f9   :  { %v386_v15 = vrot.slane %v385_v11, 2  ;;  %v402_v16 = vadd.f32 %v401_v12, %v394_v8 }
 0x1fa   :  { %v381_v17 = vadd.f32 %v380_v13, %v379_v9  ;;  %v397_v18 = vrot.slane %v396_v14, 2  ;;  %v7250_v13 = vld [vmem:[#allocation9 + $0x2c] ss:$16 sps:$4 sm:$0xff]  }
 0x1fb   :  { %v387_v19 = vadd.f32 %v386_v15, %v385_v11  ;;  %v403_v20 = vrot.slane %v402_v16, 2  ;;  %v7245_v11 = vld [vmem:[#allocation9 + $0x8] ss:$16 sps:$4 sm:$0xff]   ;;  %v7256_v15 = vld [vmem:[#allocation9 + $0x6c] ss:$16 sps:$4 sm:$0xff]  }
 0x1fc   :  { %v382_v21 = vrot.slane %v381_v17, 1  ;;  %v398_v22 = vadd.f32 %v397_v18, %v396_v14  ;;  %v7251_v14 = vld [vmem:[#allocation9 + $0x48] ss:$16 sps:$4 sm:$0xff]  }
 0x1fd   :  { %v388_v23 = vrot.slane %v387_v19, 1  ;;  %v404_v24 = vadd.f32 %v403_v20, %v402_v16  ;;  %v7254_v16 = vld [vmem:[#allocation9 + $0x68] ss:$16 sps:$4 sm:$0xff]  }
 0x1fe   :  { %v383_v25 = vadd.f32 %v382_v21, %v381_v17  ;;  %v399_v26 = vrot.slane %v398_v22, 1  ;;  %v7259_v17 = vld [vmem:[#allocation9 + $0x8c] ss:$16 sps:$4 sm:$0xff]   ;;  %v7257_v18 = vld [vmem:[#allocation9 + $0x88] ss:$16 sps:$4 sm:$0xff]  }
 0x1ff   :  { %v405_v27 = vrot.slane %v404_v24, 1  ;;  %v389_v28 = vadd.f32 %v388_v23, %v387_v19  ;;  %v7262_v19 = vld [vmem:[#allocation9 + $0xac] ss:$16 sps:$4 sm:$0xff]   ;;  %v7260_v20 = vld [vmem:[#allocation9 + $0xa8] ss:$16 sps:$4 sm:$0xff]  }
 0x200   :  { %v391_v29 = vmul.f32 0.125, %v383_v25  ;;  %v400_v30 = vadd.f32 %v399_v26, %v398_v22  ;;  %v7265_v21 = vld [vmem:[#allocation9 + $0xcc] ss:$16 sps:$4 sm:$0xff]   ;;  %v7263_v22 = vld [vmem:[#allocation9 + $0xc8] ss:$16 sps:$4 sm:$0xff]  }
 0x201   :  { %v406_v31 = vadd.f32 %v405_v27, %v404_v24  ;;  %v392_v32 = vmul.f32 0.125, %v389_v28  ;;  %v7268_v23 = vld [vmem:[#allocation9 + $0xec] ss:$16 sps:$4 sm:$0xff]   ;;  %v7266_v24 = vld [vmem:[#allocation9 + $0xe8] ss:$16 sps:$4 sm:$0xff]  }
 0x202   :  { %v407_v33 = vmul.f32 0.125, %v400_v30  ;;  %v409_v34 = vmul.f32 %v391_v29, %v391_v29  ;;  %v7271_v25 = vld [vmem:[#allocation9 + $0x10c] ss:$16 sps:$4 sm:$0xff]   ;;  %v7269_v26 = vld [vmem:[#allocation9 + $0x108] ss:$16 sps:$4 sm:$0xff]  }
 0x203   :  { %v408_v35 = vmul.f32 0.125, %v406_v31  ;;  %v410_v36 = vmul.f32 %v392_v32, %v392_v32  ;;  %v7274_v27 = vld [vmem:[#allocation9 + $0x12c] ss:$16 sps:$4 sm:$0xff]   ;;  %v7272_v28 = vld [vmem:[#allocation9 + $0x128] ss:$16 sps:$4 sm:$0xff]  }
 0x204   :  { %v411_v37 = vsub.f32 %v407_v33, %v409_v34  ;;  %v7275_v30 = vld [vmem:[#allocation9 + $0x148] ss:$16 sps:$4 sm:$0xff]   ;;  %v7280_v31 = vld [vmem:[#allocation9 + $0x16c] ss:$16 sps:$4 sm:$0xff]  }
 0x205   :  { %v412_v38 = vsub.f32 %v408_v35, %v410_v36  ;;  %v7283_v33 = vld [vmem:[#allocation9 + $0x18c] ss:$16 sps:$4 sm:$0xff]   ;;  %v7281_v34 = vld [vmem:[#allocation9 + $0x188] ss:$16 sps:$4 sm:$0xff]  }
 0x206   :  { %v413_v39 = vmax.f32 %v411_v37, 0.0  ;;  %v7286_v35 = vld [vmem:[#allocation9 + $0x1ac] ss:$16 sps:$4 sm:$0xff]   ;;  %v7284_v36 = vld [vmem:[#allocation9 + $0x1a8] ss:$16 sps:$4 sm:$0xff]  }
 0x207   :  { %v414_v40 = vmax.f32 %v412_v38, 0.0  ;;  %v7289_v37 = vld [vmem:[#allocation9 + $0x1cc] ss:$16 sps:$4 sm:$0xff]   ;;  %v7287_v38 = vld [vmem:[#allocation9 + $0x1c8] ss:$16 sps:$4 sm:$0xff]  }
 0x208   :  { %v416_v41 = vadd.f32 1e-05, %v413_v39  ;;  %v7292_v39 = vld [vmem:[#allocation9 + $0x1ec] ss:$16 sps:$4 sm:$0xff]  }
 0x209   :  { %v417_v42 = vadd.f32 1e-05, %v414_v40  ;;  %v7290_v40 = vld [vmem:[#allocation9 + $0x1e8] ss:$16 sps:$4 sm:$0xff]  }
 0x20a   :  { %7869 = vrsqrt.f32 %v416_v41  ;;  %v1189_v41 = vld [vmem:[#allocation15] sm:$0xff] }
 0x20b   :  { %7871 = vrsqrt.f32 %v417_v42  ;;  %v1193_v42 = vld [vmem:[#allocation15 + $0x20] sm:$0xff] }
 0x20c   :  { %v6446_v44 = vcombine.high %v1189_v41, %v1193_v42 }
 0x214   :  { %v7870_v46 = vpop.eup %7869 }
 0x215   :  { %v7872_v48 = vpop.eup %7871 }
 0x216   :  { %v422_v49 = vcombine.low %v7870_v46, %v7872_v48  ;;  %v6445_v46 = vcombine.low %v1189_v41, %v1193_v42  ;;  %v6574_v48 = vcombine.high %v1317_v43, %v1321_v45  ;;  %v1377_v41 = vld [vmem:[#allocation15 + $0x5e0] sm:$0xff] }
 0x218   :  { %v429_v50 = vrot.slane %v422_v49, %v8519_v47  ;;  %v6573_v49 = vcombine.low %v1317_v43, %v1321_v45  ;;  %2808 = vmatprep.subr.bf16.mxu1 %v6574_v48  ;;  %v1253_v45 = vld [vmem:[#allocation15 + $0x200] sm:$0xff] }
 0x219   :  { %v1381_v48 = vld [vmem:[#allocation15 + $0x600] sm:$0xff] }
 0x21a   :  { %v436_v52 = vrot.slane %v429_v50, %v8519_v47  ;;  %v1197_v50 = vld [vmem:[#allocation15 + $0x40] sm:$0xff]  ;;  %2809 = vmatpush1.bf16.msra.mxu1 %v6573_v49 }
 0x21c   :  { %v438_v55 = vmul.f32 %v436_v52, %v415_v51  ;;  %v1201_v51 = vld [vmem:[#allocation15 + $0x60] sm:$0xff] }
 0x21d   :  { %v1325_v52 = vld [vmem:[#allocation15 + $0x440] sm:$0xff] }
 0x21e   :  { %v444_v57 = vrot.slane %v438_v55, %v8511_v54  ;;  %v448_v58 = vrot.slane %v438_v55, %v8514_v56  ;;  %v6454_v55 = vcombine.high %v1197_v50, %v1201_v51 }
 0x220   :  { %v451_v59 = vmul.f32 %v444_v57, %v391_v29  ;;  %v452_v60 = vmul.f32 %v448_v58, %v392_v32  ;;  %v473_v61 = vmul.f32 %v448_v58, %v377_v6  ;;  %v472_v62 = vmul.f32 %v444_v57, %v376_v3  ;;  %v7248_v3 = vld [vmem:[#allocation9 + $0x28] ss:$16 sps:$4 sm:$0xff]   ;;  %v7253_v6 = vld [vmem:[#allocation9 + $0x4c] ss:$16 sps:$4 sm:$0xff]  }
 0x221   :  { %v7277_v29 = vld [vmem:[#allocation9 + $0x14c] ss:$16 sps:$4 sm:$0xff]   ;;  %v7278_v32 = vld [vmem:[#allocation9 + $0x168] ss:$16 sps:$4 sm:$0xff]   ;;  %v6453_v58 = vcombine.low %v1197_v50, %v1201_v51 }
 0x222   :  { %v455_v63 = vcombine.low %v451_v59, %v452_v60  ;;  %v1329_v57 = vld [vmem:[#allocation15 + $0x460] sm:$0xff] }
 0x223   :  { %v6582_v59 = vcombine.high %v1325_v52, %v1329_v57  ;;  %v6581_v60 = vcombine.low %v1325_v52, %v1329_v57  ;;  %v1385_v50 = vld [vmem:[#allocation15 + $0x620] sm:$0xff] }
 0x224   :  { %v462_v0 = vrot.slane %v455_v63, %v8519_v47  ;;  %v1333_v63 = vld [vmem:[#allocation15 + $0x480] sm:$0xff]  ;;  %v6638_v52 = vcombine.high %v1381_v48, %v1385_v50 }
 0x225   :  { %2810 = vmatprep.subr.bf16.mxu1 %v6582_v59  ;;  %v1261_v57 = vld [vmem:[#allocation15 + $0x240] sm:$0xff] }
 0x226   :  { %v469_v2 = vrot.slane %v462_v0, %v8519_v47  ;;  %2811 = vmatpush1.bf16.msra.mxu1 %v6581_v60  ;;  %v1389_v59 = vld [vmem:[#allocation15 + $0x640] sm:$0xff] }
 0x228   :  { %v471_v4 = vsub.f32 %v439_v1, %v469_v2  ;;  %v1337_v1 = vld [vmem:[#allocation15 + $0x4a0] sm:$0xff] }
 0x22a   :  { %v482_v5 = vrot.slane %v471_v4, %v8514_v56  ;;  %v478_v7 = vrot.slane %v471_v4, %v8511_v54  ;;  %v6590_v4 = vcombine.high %v1333_v63, %v1337_v1 }
 0x22c   :  { %v486_v8 = vadd.f32 %v482_v5, %v473_v61  ;;  %v485_v9 = vadd.f32 %v478_v7, %v472_v62  ;;  %v1205_v61 = vld [vmem:[#allocation15 + $0x80] sm:$0xff]  ;;  %v6589_v5 = vcombine.low %v1333_v63, %v1337_v1  ;;  %2812 = vmatprep.subr.bf16.mxu1 %v6590_v4 }
 0x22d   :  { %v1209_v62 = vld [vmem:[#allocation15 + $0xa0] sm:$0xff] }
 0x22e   :  { %v488_v10 = vpack.c.bf16 %v486_v8, %v486_v8  ;;  %v8529_v12 = vpack.c.bf16 %v485_v9, %v485_v9  ;;  %v6462_v0 = vcombine.high %v1205_v61, %v1209_v62  ;;  %v6461_v2 = vcombine.low %v1205_v61, %v1209_v62  ;;  %v1213_v7 = vld [vmem:[#allocation15 + $0xc0] sm:$0xff]  ;;  %2813 = vmatpush1.bf16.msra.mxu1 %v6589_v5 }
 0x22f   :  { %v1217_v8 = vld [vmem:[#allocation15 + $0xe0] sm:$0xff] }
 0x230   :  { %927 = vmatprep.mubr.bf16.mxu0 %v488_v10  ;;  %v1341_v9 = vld [vmem:[#allocation15 + $0x4c0] sm:$0xff] }
 0x231   :  { %928 = vmatmul.mubr.bf16.vlgmr.msra.gmra.mrb[4].mxu0 %v8529_v12  ;;  %v1393_v61 = vld [vmem:[#allocation15 + $0x660] sm:$0xff] }
 0x232   :  { %937 = vmatpush1.bf16.msra.mxu0 %v7245_v11  ;;  %968 = vmatprep.mubr.bf16.mxu0 %v488_v10  ;;  %v6470_v10 = vcombine.high %v1213_v7, %v1217_v8  ;;  %v1345_v11 = vld [vmem:[#allocation15 + $0x4e0] sm:$0xff]  ;;  %v6646_v63 = vcombine.high %v1389_v59, %v1393_v61 }
 0x233   :  { %938 = vmatprep.subr.bf16.mxu0 %v7250_v13  ;;  %v6598_v13 = vcombine.high %v1341_v9, %v1345_v11  ;;  %v1269_v1 = vld [vmem:[#allocation15 + $0x280] sm:$0xff] }
 0x234   :  { %v1397_v4 = vld [vmem:[#allocation15 + $0x680] sm:$0xff] }
 0x235   :  { %2814 = vmatprep.subr.bf16.mxu1 %v6598_v13  ;;  %v1405_v13 = vld [vmem:[#allocation15 + $0x6c0] sm:$0xff] }
 0x236   :  { %939 = vmatpush1.bf16.msra.mxu0 %v7248_v3  ;;  %v6597_v3 = vcombine.low %v1341_v9, %v1345_v11  ;;  %v1277_v11 = vld [vmem:[#allocation15 + $0x2c0] sm:$0xff] }
 0x237   :  { %940 = vmatprep.subr.bf16.mxu0 %v7253_v6  ;;  %v1221_v6 = vld [vmem:[#allocation15 + $0x100] sm:$0xff] }
 0x238   :  { %2815 = vmatpush1.bf16.msra.mxu1 %v6597_v3 }
 0x23a   :  { %941 = vmatpush1.bf16.msra.mxu0 %v7251_v14  ;;  %v1225_v14 = vld [vmem:[#allocation15 + $0x120] sm:$0xff] }
 0x23b   :  { %942 = vmatprep.subr.bf16.mxu0 %v7256_v15  ;;  %v1349_v15 = vld [vmem:[#allocation15 + $0x500] sm:$0xff] }
 0x23e   :  { %943 = vmatpush1.bf16.msra.mxu0 %v7254_v16  ;;  %v6478_v16 = vcombine.high %v1221_v6, %v1225_v14 }
 0x23f   :  { %944 = vmatprep.subr.bf16.mxu0 %v7259_v17  ;;  %v1353_v17 = vld [vmem:[#allocation15 + $0x520] sm:$0xff] }
 0x242   :  { %945 = vmatpush1.bf16.msra.mxu0 %v7257_v18  ;;  %v6477_v18 = vcombine.low %v1221_v6, %v1225_v14  ;;  %v1409_v6 = vld [vmem:[#allocation15 + $0x6e0] sm:$0xff] }
 0x243   :  { %946 = vmatprep.subr.bf16.mxu0 %v7262_v19  ;;  %v6606_v19 = vcombine.high %v1349_v15, %v1353_v17 }
 0x245   :  { %2816 = vmatprep.subr.bf16.mxu1 %v6606_v19  ;;  %v1413_v19 = vld [vmem:[#allocation15 + $0x700] sm:$0xff] }
 0x246   :  { %947 = vmatpush1.bf16.msra.mxu0 %v7260_v20  ;;  %v6605_v20 = vcombine.low %v1349_v15, %v1353_v17  ;;  %v6662_v15 = vcombine.high %v1405_v13, %v1409_v6  ;;  %v1285_v17 = vld [vmem:[#allocation15 + $0x300] sm:$0xff] }
 0x247   :  { %948 = vmatprep.subr.bf16.mxu0 %v7265_v21  ;;  %v1229_v21 = vld [vmem:[#allocation15 + $0x140] sm:$0xff] }
 0x248   :  { %2817 = vmatpush1.bf16.msra.mxu1 %v6605_v20 }
 0x24a   :  { %949 = vmatpush1.bf16.msra.mxu0 %v7263_v22  ;;  %v1233_v22 = vld [vmem:[#allocation15 + $0x160] sm:$0xff] }
 0x24b   :  { %950 = vmatprep.subr.bf16.mxu0 %v7268_v23  ;;  %v1357_v23 = vld [vmem:[#allocation15 + $0x540] sm:$0xff] }
 0x24e   :  { %951 = vmatpush1.bf16.msra.mxu0 %v7266_v24  ;;  %v6486_v24 = vcombine.high %v1229_v21, %v1233_v22 }
 0x24f   :  { %952 = vmatprep.subr.bf16.mxu0 %v7271_v25  ;;  %v1361_v25 = vld [vmem:[#allocation15 + $0x560] sm:$0xff] }
 0x252   :  { %953 = vmatpush1.bf16.msra.mxu0 %v7269_v26  ;;  %v6485_v26 = vcombine.low %v1229_v21, %v1233_v22  ;;  %v1417_v21 = vld [vmem:[#allocation15 + $0x720] sm:$0xff] }
 0x253   :  { %954 = vmatprep.subr.bf16.mxu0 %v7274_v27  ;;  %v6614_v27 = vcombine.high %v1357_v23, %v1361_v25 }
 0x255   :  { %2818 = vmatprep.subr.bf16.mxu1 %v6614_v27  ;;  %v1421_v27 = vld [vmem:[#allocation15 + $0x740] sm:$0xff] }
 0x256   :  { %955 = vmatpush1.bf16.msra.mxu0 %v7272_v28  ;;  %v6613_v28 = vcombine.low %v1357_v23, %v1361_v25  ;;  %v6670_v23 = vcombine.high %v1413_v19, %v1417_v21  ;;  %v1293_v25 = vld [vmem:[#allocation15 + $0x340] sm:$0xff] }
 0x257   :  { %956 = vmatprep.subr.bf16.mxu0 %v7277_v29  ;;  %v1237_v29 = vld [vmem:[#allocation15 + $0x180] sm:$0xff] }
 0x258   :  { %2819 = vmatpush1.bf16.msra.mxu1 %v6613_v28  ;;  %v8533_v28 = vld [vmem:[#allocation10] sm:$0xf] }
 0x25a   :  { %957 = vmatpush1.bf16.msra.mxu0 %v7275_v30  ;;  %v1241_v30 = vld [vmem:[#allocation15 + $0x1a0] sm:$0xff] }
 0x25b   :  { %958 = vmatprep.subr.bf16.mxu0 %v7280_v31  ;;  %v1365_v31 = vld [vmem:[#allocation15 + $0x580] sm:$0xff] }
 0x25e   :  { %959 = vmatpush1.bf16.msra.mxu0 %v7278_v32  ;;  %v6494_v32 = vcombine.high %v1237_v29, %v1241_v30 }
 0x25f   :  { %960 = vmatprep.subr.bf16.mxu0 %v7283_v33  ;;  %v1369_v33 = vld [vmem:[#allocation15 + $0x5a0] sm:$0xff] }
 0x262   :  { %961 = vmatpush1.bf16.msra.mxu0 %v7281_v34  ;;  %v6493_v34 = vcombine.low %v1237_v29, %v1241_v30 }
 0x263   :  { %962 = vmatprep.subr.bf16.mxu0 %v7286_v35  ;;  %v6622_v35 = vcombine.high %v1365_v31, %v1369_v33 }
 0x265   :  { %2820 = vmatprep.subr.bf16.mxu1 %v6622_v35 }
 0x266   :  { %963 = vmatpush1.bf16.msra.mxu0 %v7284_v36  ;;  %v6621_v36 = vcombine.low %v1365_v31, %v1369_v33  ;;  %v1425_v31 = vld [vmem:[#allocation15 + $0x760] sm:$0xff] }
 0x267   :  { %964 = vmatprep.subr.bf16.mxu0 %v7289_v37  ;;  %v1245_v37 = vld [vmem:[#allocation15 + $0x1c0] sm:$0xff]  ;;  %v6677_v35 = vcombine.low %v1421_v27, %v1425_v31 }
 0x268   :  { %2821 = vmatpush1.bf16.msra.mxu1 %v6621_v36  ;;  %v1305_v33 = vld [vmem:[#allocation15 + $0x3a0] sm:$0xff] }
 0x26a   :  { %965 = vmatpush1.bf16.msra.mxu0 %v7287_v38  ;;  %v1249_v38 = vld [vmem:[#allocation15 + $0x1e0] sm:$0xff] }
 0x26b   :  { %966 = vmatprep.subr.bf16.mxu0 %v7292_v39  ;;  %v1373_v39 = vld [vmem:[#allocation15 + $0x5c0] sm:$0xff]  ;;  %v6501_v42 = vcombine.low %v1245_v37, %v1249_v38 }
 0x26c   :  { %v6630_v43 = vcombine.high %v1373_v39, %v1377_v41 }
 0x26e   :  { %967 = vmatpush1.bf16.msra.mxu0 %v7290_v40  ;;  %v6502_v40 = vcombine.high %v1245_v37, %v1249_v38  ;;  %2822 = vmatprep.subr.bf16.mxu1 %v6630_v43  ;;  %v1429_v37 = vld [vmem:[#allocation15 + $0x780] sm:$0xff] }
 0x26f   :  { %2767 = vmatprep.subr.bf16.mxu0 %v6446_v44  ;;  %v6629_v44 = vcombine.low %v1373_v39, %v1377_v41  ;;  %v1433_v38 = vld [vmem:[#allocation15 + $0x7a0] sm:$0xff] }
 0x270   :  { %v1309_v39 = vld [vmem:[#allocation15 + $0x3c0] sm:$0xff] }
 0x271   :  { %969 = vmatmul.mubr.bf16.vlgmr.msra.gmra.mrb[8].mxu0 %v8529_v12  ;;  %v6469_v12 = vcombine.low %v1213_v7, %v1217_v8  ;;  %2823 = vmatpush1.bf16.msra.mxu1 %v6629_v44  ;;  %v1401_v7 = vld [vmem:[#allocation15 + $0x6a0] sm:$0xff] }
 0x272   :  { %2768 = vmatpush1.bf16.msra.mxu0 %v6445_v46  ;;  %v1257_v46 = vld [vmem:[#allocation15 + $0x220] sm:$0xff]  ;;  %2824 = vmatprep.subr.bf16.mxu1 %v6638_v52  ;;  %v6654_v9 = vcombine.high %v1397_v4, %v1401_v7 }
 0x273   :  { %2769 = vmatprep.subr.bf16.mxu0 %v6454_v55  ;;  %v6510_v49 = vcombine.high %v1253_v45, %v1257_v46  ;;  %v6509_v51 = vcombine.low %v1253_v45, %v1257_v46  ;;  %v6637_v55 = vcombine.low %v1381_v48, %v1385_v50  ;;  %v1313_v41 = vld [vmem:[#allocation15 + $0x3e0] sm:$0xff]  ;;  %v6685_v45 = vcombine.low %v1429_v37, %v1433_v38 }
 0x274   :  { %v1441_v43 = vld [vmem:[#allocation15 + $0x7e0] sm:$0xff]  ;;  %v6566_v46 = vcombine.high %v1309_v39, %v1313_v41  ;;  %v558_v48 = vrot.slane %v8533_v28, %v8511_v54  ;;  %v562_v50 = vrot.slane %v8533_v28, %v8514_v56 }
 0x275   :  { %2825 = vmatpush1.bf16.msra.mxu1 %v6637_v55 }
 0x276   :  { %2770 = vmatpush1.bf16.msra.mxu0 %v6453_v58  ;;  %v1265_v58 = vld [vmem:[#allocation15 + $0x260] sm:$0xff]  ;;  %2826 = vmatprep.subr.bf16.mxu1 %v6646_v63 }
 0x277   :  { %2771 = vmatprep.subr.bf16.mxu0 %v6462_v0  ;;  %v6518_v60 = vcombine.high %v1261_v57, %v1265_v58  ;;  %v6517_v62 = vcombine.low %v1261_v57, %v1265_v58  ;;  %v6645_v0 = vcombine.low %v1389_v59, %v1393_v61 }
 0x279   :  { %2827 = vmatpush1.bf16.msra.mxu1 %v6645_v0  ;;  %v8539_v0 = vld [vmem:[#allocation15 + $0x8] sm:$0xff] }
 0x27a   :  { %2772 = vmatpush1.bf16.msra.mxu0 %v6461_v2  ;;  %v1273_v2 = vld [vmem:[#allocation15 + $0x2a0] sm:$0xff]  ;;  %2828 = vmatprep.subr.bf16.mxu1 %v6654_v9 }
 0x27b   :  { %2773 = vmatprep.subr.bf16.mxu0 %v6470_v10  ;;  %v6526_v5 = vcombine.high %v1269_v1, %v1273_v2  ;;  %v6525_v8 = vcombine.low %v1269_v1, %v1273_v2  ;;  %v6653_v10 = vcombine.low %v1397_v4, %v1401_v7  ;;  %v8541_v1 = vld [vmem:[#allocation15 + $0x28] sm:$0xff]  ;;  %v8543_v2 = vld [vmem:[#allocation15 + $0x10] sm:$0xff] }
 0x27c   :  { %v8549_v7 = vld [vmem:[#allocation15 + $0x30] sm:$0xff] }
 0x27d   :  { %2829 = vmatpush1.bf16.msra.mxu1 %v6653_v10 }
 0x27e   :  { %2774 = vmatpush1.bf16.msra.mxu0 %v6469_v12  ;;  %v1281_v12 = vld [vmem:[#allocation15 + $0x2e0] sm:$0xff]  ;;  %2830 = vmatprep.subr.bf16.mxu1 %v6662_v15 }
 0x27f   :  { %2775 = vmatprep.subr.bf16.mxu0 %v6478_v16  ;;  %v6534_v3 = vcombine.high %v1277_v11, %v1281_v12  ;;  %v6533_v14 = vcombine.low %v1277_v11, %v1281_v12  ;;  %v6661_v16 = vcombine.low %v1405_v13, %v1409_v6  ;;  %v6447_v11 = vcombine.low %v8539_v0, %v8541_v1 }
 0x280   :  { %v6450_v6 = vcombine.high %v8543_v2, %v8549_v7 }
 0x281   :  { %2831 = vmatpush1.bf16.msra.mxu1 %v6661_v16 }
 0x282   :  { %2776 = vmatpush1.bf16.msra.mxu0 %v6477_v18  ;;  %v1289_v18 = vld [vmem:[#allocation15 + $0x320] sm:$0xff]  ;;  %2832 = vmatprep.subr.bf16.mxu1 %v6670_v23 }
 0x283   :  { %2777 = vmatprep.subr.bf16.mxu0 %v6486_v24  ;;  %v6542_v20 = vcombine.high %v1285_v17, %v1289_v18  ;;  %v6541_v22 = vcombine.low %v1285_v17, %v1289_v18  ;;  %v6669_v24 = vcombine.low %v1413_v19, %v1417_v21 }
 0x285   :  { %2833 = vmatpush1.bf16.msra.mxu1 %v6669_v24 }
 0x286   :  { %2778 = vmatpush1.bf16.msra.mxu0 %v6485_v26  ;;  %v1297_v26 = vld [vmem:[#allocation15 + $0x360] sm:$0xff] }
 0x287   :  { %2779 = vmatprep.subr.bf16.mxu0 %v6494_v32  ;;  %v6549_v29 = vcombine.low %v1293_v25, %v1297_v26  ;;  %v6550_v30 = vcombine.high %v1293_v25, %v1297_v26  ;;  %v1301_v32 = vld [vmem:[#allocation15 + $0x380] sm:$0xff] }
 0x288   :  { %v6558_v36 = vcombine.high %v1301_v32, %v1305_v33  ;;  %v6557_v44 = vcombine.low %v1301_v32, %v1305_v33 }
 0x28a   :  { %2780 = vmatpush1.bf16.msra.mxu0 %v6493_v34  ;;  %v6678_v34 = vcombine.high %v1421_v27, %v1425_v31 }
 0x28b   :  { %2781 = vmatprep.subr.bf16.mxu0 %v6502_v40  ;;  %v6686_v40 = vcombine.high %v1429_v37, %v1433_v38 }
 0x28c   :  { %2834 = vmatprep.subr.bf16.mxu1 %v6678_v34 }
 0x28d   :  { %2835 = vmatpush1.bf16.msra.mxu1 %v6677_v35 }
 0x28e   :  { %2782 = vmatpush1.bf16.msra.mxu0 %v6501_v42  ;;  %v1437_v42 = vld [vmem:[#allocation15 + $0x7c0] sm:$0xff]  ;;  %2836 = vmatprep.subr.bf16.mxu1 %v6686_v40 }
 0x28f   :  { %2783 = vmatprep.subr.bf16.mxu0 %v6510_v49  ;;  %v6694_v49 = vcombine.high %v1437_v42, %v1441_v43  ;;  %v6693_v55 = vcombine.low %v1437_v42, %v1441_v43 }
 0x291   :  { %2837 = vmatpush1.bf16.msra.mxu1 %v6685_v45 }
 0x292   :  { %2784 = vmatpush1.bf16.msra.mxu0 %v6509_v51  ;;  %v6565_v51 = vcombine.low %v1309_v39, %v1313_v41  ;;  %2838 = vmatprep.subr.bf16.mxu1 %v6694_v49 }
 0x293   :  { %2785 = vmatprep.subr.bf16.mxu0 %v6518_v60 }
 0x295   :  { %2839 = vmatpush1.bf16.msra.mxu1 %v6693_v55  ;;  %v8579_v55 = vsub.s32 2, %v8508_v53 }
 0x296   :  { %2786 = vmatpush1.bf16.msra.mxu0 %v6517_v62  ;;  %2931 = vmatprep.subr.bf16.mxu1 %v6450_v6 }
 0x297   :  { %2787 = vmatprep.subr.bf16.mxu0 %v6526_v5  ;;  %v6448_v5 = vcombine.high %v8539_v0, %v8541_v1 }
 0x29a   :  { %2788 = vmatpush1.bf16.msra.mxu0 %v6525_v8 }
 0x29b   :  { %2789 = vmatprep.subr.bf16.mxu0 %v6534_v3  ;;  %v6449_v3 = vcombine.low %v8543_v2, %v8549_v7 }
 0x29e   :  { %2790 = vmatpush1.bf16.msra.mxu0 %v6533_v14 }
 0x29f   :  { %2791 = vmatprep.subr.bf16.mxu0 %v6542_v20 }
 0x2a2   :  { %2792 = vmatpush1.bf16.msra.mxu0 %v6541_v22 }
 0x2a3   :  { %2793 = vmatprep.subr.bf16.mxu0 %v6550_v30 }
 0x2a6   :  { %2794 = vmatpush1.bf16.msra.mxu0 %v6549_v29 }
 0x2a7   :  { %2795 = vmatprep.subr.bf16.mxu0 %v6558_v36 }
 0x2aa   :  { %2796 = vmatpush1.bf16.msra.mxu0 %v6557_v44 }
 0x2ab   :  { %2797 = vmatprep.subr.bf16.mxu0 %v6566_v46 }
 0x2ae   :  { %2798 = vmatpush1.bf16.msra.mxu0 %v6565_v51 }
 0x2af   :  { %2849 = vmatprep.subr.bf16.mxu0 %v6448_v5 }
 0x304   :  { %v929_v52 = vpop.f32.mrb[4].mxu0 }
 0x305   :  { %v930_v57 = vadd.f32 %v929_v52, %v558_v48  ;;  %v931_v58 = vpop.f32.mrb[5].mxu0 }
 0x306   :  { %v932_v59 = vadd.f32 %v931_v58, %v562_v50  ;;  %v933_v60 = vpop.f32.mrb[6].mxu0  ;;  %v566_v58 = vrot.slane %v8533_v28, %v8579_v55 }
 0x307   :  { %vm977_vm2 = vcmp.ge.f32.partialorder %v930_v57, 0.0  ;;  %v981_v61 = vmul.f32 0.2, %v930_v57  ;;  %v934_v62 = vpop.f32.mrb[7].mxu0 }
 0x308   :  { %vm978_vm3 = vcmp.ge.f32.partialorder %v932_v59, 0.0  ;;  %v982_v63 = vmul.f32 0.2, %v932_v59 }
 0x309   :  { %v8545_v4 = vsel %vm977_vm2, %v930_v57, %v981_v61  ;;  %v8582_v57 = vsub.s32 3, %v8508_v53 }
 0x30a   :  { %v989_v8 = vrot.slane %v8545_v4, 4  ;;  %v1017_v9 = vmul.f32 %v8545_v4, %v8545_v4  ;;  %v8554_v10 = vsel %vm978_vm3, %v932_v59, %v982_v63 }
 0x30b   :  { %v995_v12 = vrot.slane %v8554_v10, 4  ;;  %v1018_v13 = vmul.f32 %v8554_v10, %v8554_v10  ;;  %v570_v59 = vrot.slane %v8533_v28, %v8582_v57 }
 0x30c   :  { %v990_v14 = vadd.f32 %v989_v8, %v8545_v4  ;;  %v1021_v15 = vrot.slane %v1017_v9, 4 }
 0x30d   :  { %v996_v16 = vadd.f32 %v995_v12, %v8554_v10  ;;  %v1027_v17 = vrot.slane %v1018_v13, 4 }
 0x30e   :  { %v991_v18 = vrot.slane %v990_v14, 2  ;;  %v1022_v19 = vadd.f32 %v1021_v15, %v1017_v9 }
 0x30f   :  { %v997_v20 = vrot.slane %v996_v16, 2  ;;  %v1028_v21 = vadd.f32 %v1027_v17, %v1018_v13 }
 0x310   :  { %v992_v22 = vadd.f32 %v991_v18, %v990_v14  ;;  %v1023_v23 = vrot.slane %v1022_v19, 2 }
 0x311   :  { %v998_v24 = vadd.f32 %v997_v20, %v996_v16  ;;  %v1029_v25 = vrot.slane %v1028_v21, 2 }
 0x312   :  { %v993_v26 = vrot.slane %v992_v22, 1  ;;  %v1024_v27 = vadd.f32 %v1023_v23, %v1022_v19 }
 0x313   :  { %v999_v29 = vrot.slane %v998_v24, 1  ;;  %v1030_v30 = vadd.f32 %v1029_v25, %v1028_v21 }
 0x314   :  { %v994_v31 = vadd.f32 %v993_v26, %v992_v22  ;;  %v1025_v32 = vrot.slane %v1024_v27, 1 }
 0x315   :  { %v1000_v33 = vadd.f32 %v999_v29, %v998_v24  ;;  %v1031_v34 = vrot.slane %v1030_v30, 1 }
 0x316   :  { %v8567_v35 = vmul.f32 0.125, %v994_v31  ;;  %v1026_v36 = vadd.f32 %v1025_v32, %v1024_v27 }
 0x317   :  { %v8569_v37 = vmul.f32 0.125, %v1000_v33  ;;  %v1032_v38 = vadd.f32 %v1031_v34, %v1030_v30 }
 0x318   :  { %v1045_v39 = vmul.f32 0.125, %v1026_v36  ;;  %v1049_v40 = vmul.f32 %v8567_v35, %v8567_v35 }
 0x319   :  { %v1046_v41 = vmul.f32 0.125, %v1032_v38  ;;  %v1050_v42 = vmul.f32 %v8569_v37, %v8569_v37 }
 0x31a   :  { %v1053_v43 = vsub.f32 %v1045_v39, %v1049_v40 }
 0x31b   :  { %v1054_v44 = vsub.f32 %v1046_v41, %v1050_v42 }
 0x31c   :  { %v1057_v45 = vmax.f32 %v1053_v43, 0.0 }
 0x31d   :  { %v1058_v46 = vmax.f32 %v1054_v44, 0.0 }
 0x31e   :  { %v1062_v48 = vadd.f32 1e-05, %v1057_v45 }
 0x31f   :  { %v1063_v49 = vadd.f32 1e-05, %v1058_v46 }
 0x320   :  { %7873 = vrsqrt.f32 %v1062_v48 }
 0x321   :  { %7875 = vrsqrt.f32 %v1063_v49 }
 0x32a   :  { %v8575_v50 = vpop.eup %7873 }
 0x32b   :  { %v7876_v51 = vpop.eup %7875 }
 0x32c   :  { %v1074_v52 = vcombine.low %v8575_v50, %v7876_v51 }
 0x344   :  { %v970_v60 = vpop.f32.mrb[8].mxu0 }
 0x345   :  { %v971_v61 = vadd.f32 %v970_v60, %v566_v58  ;;  %v972_v62 = vpop.f32.mrb[9].mxu0 }
 0x346   :  { %v973_v63 = vadd.f32 %v972_v62, %v570_v59  ;;  %v974_v5 = vpop.f32.mrb[10].mxu0 }
 0x347   :  { %vm979_vm4 = vcmp.ge.f32.partialorder %v971_v61, 0.0  ;;  %v983_v8 = vmul.f32 0.2, %v971_v61  ;;  %v975_v9 = vpop.f32.mrb[11].mxu0  ;;  %v1082_v5 = vrot.slane %v1074_v52, %v8519_v47 }
 0x348   :  { %vm980_vm5 = vcmp.ge.f32.partialorder %v973_v63, 0.0  ;;  %v984_v12 = vmul.f32 0.2, %v973_v63 }
 0x349   :  { %v987_v13 = vsel %vm979_vm4, %v971_v61, %v983_v8 }
 0x34a   :  { %v1001_v6 = vrot.slane %v987_v13, 4  ;;  %v1019_v14 = vmul.f32 %v987_v13, %v987_v13  ;;  %v988_v15 = vsel %vm980_vm5, %v973_v63, %v984_v12  ;;  %v1061_v12 = vld [vmem:[#allocation12] sm:$0xf] }
 0x34b   :  { %v1007_v16 = vrot.slane %v988_v15, 4  ;;  %v1020_v17 = vmul.f32 %v988_v15, %v988_v15 }
 0x34c   :  { %v1002_v18 = vadd.f32 %v1001_v6, %v987_v13  ;;  %v1033_v19 = vrot.slane %v1019_v14, 4 }
 0x34d   :  { %v1008_v20 = vadd.f32 %v1007_v16, %v988_v15  ;;  %v1039_v28 = vrot.slane %v1020_v17, 4 }
 0x34e   :  { %v1003_v21 = vrot.slane %v1002_v18, 2  ;;  %v1034_v22 = vadd.f32 %v1033_v19, %v1019_v14 }
 0x34f   :  { %v1009_v23 = vrot.slane %v1008_v20, 2  ;;  %v1040_v24 = vadd.f32 %v1039_v28, %v1020_v17 }
 0x350   :  { %v1004_v25 = vadd.f32 %v1003_v21, %v1002_v18  ;;  %v1035_v26 = vrot.slane %v1034_v22, 2 }
 0x351   :  { %v1010_v27 = vadd.f32 %v1009_v23, %v1008_v20  ;;  %v1041_v29 = vrot.slane %v1040_v24, 2 }
 0x352   :  { %v1005_v30 = vrot.slane %v1004_v25, 1  ;;  %v1036_v31 = vadd.f32 %v1035_v26, %v1034_v22 }
 0x353   :  { %v1011_v32 = vrot.slane %v1010_v27, 1  ;;  %v1042_v33 = vadd.f32 %v1041_v29, %v1040_v24 }
 0x354   :  { %v1006_v34 = vadd.f32 %v1005_v30, %v1004_v25  ;;  %v1037_v36 = vrot.slane %v1036_v31, 1 }
 0x355   :  { %v1012_v38 = vadd.f32 %v1011_v32, %v1010_v27  ;;  %v1043_v39 = vrot.slane %v1042_v33, 1  ;;  %v1100_v32 = vld [vmem:[#allocation13] sm:$0xf] }
 0x356   :  { %v1015_v40 = vmul.f32 0.125, %v1006_v34  ;;  %v1038_v41 = vadd.f32 %v1037_v36, %v1036_v31 }
 0x357   :  { %v1016_v42 = vmul.f32 0.125, %v1012_v38  ;;  %v1044_v43 = vadd.f32 %v1043_v39, %v1042_v33  ;;  %v1198_v39 = vld [vmem:[#allocation15 + $0x48] sm:$0xff] }
 0x358   :  { %v1047_v44 = vmul.f32 0.125, %v1038_v41  ;;  %v1051_v45 = vmul.f32 %v1015_v40, %v1015_v40  ;;  %v1199_v41 = vld [vmem:[#allocation15 + $0x50] sm:$0xff] }
 0x359   :  { %v1048_v46 = vmul.f32 0.125, %v1044_v43  ;;  %v1052_v48 = vmul.f32 %v1016_v42, %v1016_v42 }
 0x35a   :  { %v1055_v49 = vsub.f32 %v1047_v44, %v1051_v45 }
 0x35b   :  { %v1056_v50 = vsub.f32 %v1048_v46, %v1052_v48  ;;  %v1206_v48 = vld [vmem:[#allocation15 + $0x88] sm:$0xff] }
 0x35c   :  { %v1059_v51 = vmax.f32 %v1055_v49, 0.0 }
 0x35d   :  { %v1060_v58 = vmax.f32 %v1056_v50, 0.0 }
 0x35e   :  { %v1064_v59 = vadd.f32 1e-05, %v1059_v51  ;;  %v1210_v51 = vld [vmem:[#allocation15 + $0xa8] sm:$0xff] }
 0x35f   :  { %v1065_v60 = vadd.f32 1e-05, %v1060_v58  ;;  %v1207_v58 = vld [vmem:[#allocation15 + $0x90] sm:$0xff]  ;;  %v6463_v0 = vcombine.low %v1206_v48, %v1210_v51 }
 0x360   :  { %7877 = vrsqrt.f32 %v1064_v59  ;;  %v1211_v59 = vld [vmem:[#allocation15 + $0xb0] sm:$0xff] }
 0x361   :  { %7879 = vrsqrt.f32 %v1065_v60  ;;  %v6465_v1 = vcombine.low %v1207_v58, %v1211_v59 }
 0x36a   :  { %v7878_v61 = vpop.eup %7877 }
 0x36b   :  { %v7880_v62 = vpop.eup %7879 }
 0x36c   :  { %v1075_v63 = vcombine.low %v7878_v61, %v7880_v62  ;;  %v6464_v62 = vcombine.high %v1206_v48, %v1210_v51 }
 0x36e   :  { %v1089_v8 = vrot.slane %v1075_v63, %v8519_v47  ;;  %v6466_v63 = vcombine.high %v1207_v58, %v1211_v59  ;;  %v1262_v58 = vld [vmem:[#allocation15 + $0x248] sm:$0xff] }
 0x36f   :  { %v1266_v59 = vld [vmem:[#allocation15 + $0x268] sm:$0xff] }
 0x370   :  { %v1090_v9 = vcombine.low %v1082_v5, %v1089_v8  ;;  %v1214_v5 = vld [vmem:[#allocation15 + $0xc8] sm:$0xff] }
 0x371   :  { %v1218_v8 = vld [vmem:[#allocation15 + $0xe8] sm:$0xff] }
 0x372   :  { %v1097_v6 = vrot.slane %v1090_v9, %v8519_v47  ;;  %v1215_v9 = vld [vmem:[#allocation15 + $0xd0] sm:$0xff]  ;;  %v6472_v2 = vcombine.high %v1214_v5, %v1218_v8 }
 0x374   :  { %v1099_v14 = vmul.f32 %v1097_v6, %v1061_v12  ;;  %v1219_v12 = vld [vmem:[#allocation15 + $0xf0] sm:$0xff] }
 0x375   :  { %v6474_v7 = vcombine.high %v1215_v9, %v1219_v12  ;;  %v1223_v6 = vld [vmem:[#allocation15 + $0x110] sm:$0xff] }
 0x376   :  { %v1113_v16 = vrot.slane %v1099_v14, %v8579_v55  ;;  %v1117_v17 = vrot.slane %v1099_v14, %v8582_v57  ;;  %v1105_v18 = vrot.slane %v1099_v14, %v8511_v54  ;;  %v1109_v19 = vrot.slane %v1099_v14, %v8514_v56  ;;  %v1227_v14 = vld [vmem:[#allocation15 + $0x130] sm:$0xff] }
 0x378   :  { %v1124_v20 = vmul.f32 %v1113_v16, %v1015_v40  ;;  %v1125_v28 = vmul.f32 %v1117_v17, %v1016_v42  ;;  %v1159_v21 = vmul.f32 %v1117_v17, %v988_v15  ;;  %v1122_v52 = vmul.f32 %v1105_v18, %v8567_v35  ;;  %v1202_v40 = vld [vmem:[#allocation15 + $0x68] sm:$0xff]  ;;  %v1203_v42 = vld [vmem:[#allocation15 + $0x70] sm:$0xff] }
 0x379   :  { %v1123_v22 = vmul.f32 %v1109_v19, %v8569_v37  ;;  %v1157_v23 = vmul.f32 %v1109_v19, %v8554_v10  ;;  %v1156_v24 = vmul.f32 %v1105_v18, %v8545_v4  ;;  %v1158_v25 = vmul.f32 %v1113_v16, %v987_v13 }
 0x37a   :  { %v1131_v26 = vcombine.low %v1124_v20, %v1125_v28  ;;  %v6456_v49 = vcombine.high %v1198_v39, %v1202_v40  ;;  %v6458_v50 = vcombine.high %v1199_v41, %v1203_v42  ;;  %v6455_v60 = vcombine.low %v1198_v39, %v1202_v40  ;;  %v1230_v20 = vld [vmem:[#allocation15 + $0x148] sm:$0xff] }
 0x37b   :  { %v1130_v27 = vcombine.low %v1122_v52, %v1123_v22  ;;  %v6457_v61 = vcombine.low %v1199_v41, %v1203_v42  ;;  %v6471_v16 = vcombine.low %v1214_v5, %v1218_v8  ;;  %v6473_v17 = vcombine.low %v1215_v9, %v1219_v12  ;;  %v1234_v28 = vld [vmem:[#allocation15 + $0x168] sm:$0xff]  ;;  %v1235_v52 = vld [vmem:[#allocation15 + $0x170] sm:$0xff] }
 0x37c   :  { %v1145_v29 = vrot.slane %v1131_v26, %v8519_v47  ;;  %v6482_v19 = vcombine.high %v1223_v6, %v1227_v14  ;;  %v1238_v26 = vld [vmem:[#allocation15 + $0x188] sm:$0xff]  ;;  %v1255_v41 = vld [vmem:[#allocation15 + $0x210] sm:$0xff]  ;;  %v6520_v5 = vcombine.high %v1262_v58, %v1266_v59 }
 0x37d   :  { %v1138_v30 = vrot.slane %v1130_v27, %v8519_v47  ;;  %v1242_v27 = vld [vmem:[#allocation15 + $0x1a8] sm:$0xff]  ;;  %v1259_v42 = vld [vmem:[#allocation15 + $0x230] sm:$0xff] }
 0x37e   :  { %v1254_v39 = vld [vmem:[#allocation15 + $0x208] sm:$0xff]  ;;  %v6514_v51 = vcombine.high %v1255_v41, %v1259_v42 }
 0x37f   :  { %v1146_v31 = vcombine.low %v1138_v30, %v1145_v29  ;;  %v1239_v29 = vld [vmem:[#allocation15 + $0x190] sm:$0xff]  ;;  %v1258_v40 = vld [vmem:[#allocation15 + $0x228] sm:$0xff] }
 0x380   :  { %v1243_v30 = vld [vmem:[#allocation15 + $0x1b0] sm:$0xff]  ;;  %v1270_v9 = vld [vmem:[#allocation15 + $0x288] sm:$0xff] }
 0x381   :  { %v1153_v33 = vrot.slane %v1146_v31, %v8519_v47  ;;  %v6487_v31 = vcombine.low %v1230_v20, %v1234_v28  ;;  %v1274_v12 = vld [vmem:[#allocation15 + $0x2a8] sm:$0xff] }
 0x383   :  { %v1155_v15 = vsub.f32 %v1100_v32, %v1153_v33  ;;  %v6496_v33 = vcombine.high %v1238_v26, %v1242_v27 }
 0x385   :  { %v1168_v35 = vrot.slane %v1155_v15, %v8514_v56  ;;  %v1176_v37 = vrot.slane %v1155_v15, %v8582_v57  ;;  %v1164_v10 = vrot.slane %v1155_v15, %v8511_v54  ;;  %v1172_v4 = vrot.slane %v1155_v15, %v8579_v55 }
 0x386   :  { %v6498_v15 = vcombine.high %v1239_v29, %v1243_v30 }
 0x387   :  { %v1182_v13 = vadd.f32 %v1168_v35, %v1157_v23  ;;  %v1184_v34 = vadd.f32 %v1176_v37, %v1159_v21  ;;  %v1181_v36 = vadd.f32 %v1164_v10, %v1156_v24  ;;  %v1183_v38 = vadd.f32 %v1172_v4, %v1158_v25  ;;  %v1231_v21 = vld [vmem:[#allocation15 + $0x150] sm:$0xff]  ;;  %v1246_v35 = vld [vmem:[#allocation15 + $0x1c8] sm:$0xff] }
 0x388   :  { %v6481_v23 = vcombine.low %v1223_v6, %v1227_v14  ;;  %v6488_v24 = vcombine.high %v1230_v20, %v1234_v28  ;;  %v6490_v25 = vcombine.high %v1231_v21, %v1235_v52  ;;  %v6489_v32 = vcombine.low %v1231_v21, %v1235_v52  ;;  %v1250_v37 = vld [vmem:[#allocation15 + $0x1e8] sm:$0xff]  ;;  %v1247_v10 = vld [vmem:[#allocation15 + $0x1d0] sm:$0xff] }
 0x389   :  { %v8606_v43 = vpack.c.bf16 %v1182_v13, %v1182_v13  ;;  %v8608_v44 = vpack.c.bf16 %v1184_v34, %v1184_v34  ;;  %v8610_v45 = vpack.c.bf16 %v1181_v36, %v1181_v36  ;;  %v8612_v46 = vpack.c.bf16 %v1183_v38, %v1183_v38  ;;  %v1251_v4 = vld [vmem:[#allocation15 + $0x1f0] sm:$0xff]  ;;  %v1278_v6 = vld [vmem:[#allocation15 + $0x2c8] sm:$0xff] }
 0x38a   :  { %v6495_v13 = vcombine.low %v1238_v26, %v1242_v27  ;;  %v6497_v34 = vcombine.low %v1239_v29, %v1243_v30  ;;  %v6504_v36 = vcombine.high %v1246_v35, %v1250_v37  ;;  %v6506_v38 = vcombine.high %v1247_v10, %v1251_v4  ;;  %v1282_v14 = vld [vmem:[#allocation15 + $0x2e8] sm:$0xff] }
 0x38b   :  { %2799 = vmatprep.mubr.bf16.mxu0 %v8606_v43  ;;  %2840 = vmatprep.mubr.bf16.mxu1 %v8608_v44  ;;  %v6503_v48 = vcombine.low %v1246_v35, %v1250_v37  ;;  %v6536_v20 = vcombine.high %v1278_v6, %v1282_v14  ;;  %v1286_v21 = vld [vmem:[#allocation15 + $0x308] sm:$0xff] }
 0x38c   :  { %2800 = vmatmul.mubr.bf16.vlgmr.msra.gmra.mrb[12].mxu0 %v8610_v45  ;;  %2841 = vmatmul.mubr.bf16.vlgmr.msra.gmra.mrb[0].mxu1 %v8612_v46  ;;  %v1290_v52 = vld [vmem:[#allocation15 + $0x328] sm:$0xff] }
 0x38d   :  { %2850 = vmatpush1.bf16.msra.mxu0 %v6447_v11  ;;  %2932 = vmatpush1.bf16.msra.mxu1 %v6449_v3  ;;  %v1222_v11 = vld [vmem:[#allocation15 + $0x108] sm:$0xff]  ;;  %v6544_v26 = vcombine.high %v1286_v21, %v1290_v52 }
 0x38e   :  { %2881 = vmatprep.mubr.bf16.mxu0 %v8606_v43  ;;  %2963 = vmatprep.mubr.bf16.mxu1 %v8606_v43  ;;  %v1226_v3 = vld [vmem:[#allocation15 + $0x128] sm:$0xff] }
 0x38f   :  { %2851 = vmatprep.subr.bf16.mxu0 %v6456_v49  ;;  %2933 = vmatprep.subr.bf16.mxu1 %v6458_v50  ;;  %v6480_v18 = vcombine.high %v1222_v11, %v1226_v3  ;;  %v6479_v22 = vcombine.low %v1222_v11, %v1226_v3  ;;  %v6505_v49 = vcombine.low %v1247_v10, %v1251_v4  ;;  %v1294_v29 = vld [vmem:[#allocation15 + $0x348] sm:$0xff] }
 0x390   :  { %v6512_v50 = vcombine.high %v1254_v39, %v1258_v40  ;;  %v6528_v11 = vcombine.high %v1270_v9, %v1274_v12  ;;  %v1298_v30 = vld [vmem:[#allocation15 + $0x368] sm:$0xff] }
 0x391   :  { %2852 = vmatpush1.bf16.msra.mxu0 %v6455_v60  ;;  %2934 = vmatpush1.bf16.msra.mxu1 %v6457_v61  ;;  %v1263_v60 = vld [vmem:[#allocation15 + $0x250] sm:$0xff]  ;;  %v6552_v35 = vcombine.high %v1294_v29, %v1298_v30  ;;  %v1302_v10 = vld [vmem:[#allocation15 + $0x388] sm:$0xff] }
 0x392   :  { %2853 = vmatprep.subr.bf16.mxu0 %v6464_v62  ;;  %2935 = vmatprep.subr.bf16.mxu1 %v6466_v63  ;;  %v1267_v61 = vld [vmem:[#allocation15 + $0x270] sm:$0xff]  ;;  %v6511_v62 = vcombine.low %v1254_v39, %v1258_v40  ;;  %v6513_v63 = vcombine.low %v1255_v41, %v1259_v42  ;;  %v1306_v4 = vld [vmem:[#allocation15 + $0x3a8] sm:$0xff] }
 0x393   :  { %v6522_v8 = vcombine.high %v1263_v60, %v1267_v61  ;;  %v6560_v39 = vcombine.high %v1302_v10, %v1306_v4  ;;  %v1310_v41 = vld [vmem:[#allocation15 + $0x3c8] sm:$0xff] }
 0x394   :  { %v1314_v42 = vld [vmem:[#allocation15 + $0x3e8] sm:$0xff] }
 0x395   :  { %2854 = vmatpush1.bf16.msra.mxu0 %v6463_v0  ;;  %2936 = vmatpush1.bf16.msra.mxu1 %v6465_v1  ;;  %v1271_v0 = vld [vmem:[#allocation15 + $0x290] sm:$0xff] }
 0x396   :  { %2855 = vmatprep.subr.bf16.mxu0 %v6472_v2  ;;  %2937 = vmatprep.subr.bf16.mxu1 %v6474_v7  ;;  %v1275_v1 = vld [vmem:[#allocation15 + $0x2b0] sm:$0xff]  ;;  %v6519_v2 = vcombine.low %v1262_v58, %v1266_v59  ;;  %v6521_v7 = vcombine.low %v1263_v60, %v1267_v61  ;;  %v6568_v58 = vcombine.high %v1310_v41, %v1314_v42  ;;  %v1318_v60 = vld [vmem:[#allocation15 + $0x408] sm:$0xff] }
 0x397   :  { %v6530_v3 = vcombine.high %v1271_v0, %v1275_v1  ;;  %v1322_v61 = vld [vmem:[#allocation15 + $0x428] sm:$0xff] }
 0x399   :  { %2856 = vmatpush1.bf16.msra.mxu0 %v6471_v16  ;;  %2938 = vmatpush1.bf16.msra.mxu1 %v6473_v17  ;;  %v1279_v16 = vld [vmem:[#allocation15 + $0x2d0] sm:$0xff] }
 0x39a   :  { %2857 = vmatprep.subr.bf16.mxu0 %v6480_v18  ;;  %2939 = vmatprep.subr.bf16.mxu1 %v6482_v19  ;;  %v1283_v17 = vld [vmem:[#allocation15 + $0x2f0] sm:$0xff]  ;;  %v6527_v18 = vcombine.low %v1270_v9, %v1274_v12  ;;  %v6529_v19 = vcombine.low %v1271_v0, %v1275_v1  ;;  %v6576_v9 = vcombine.high %v1318_v60, %v1322_v61  ;;  %v1326_v0 = vld [vmem:[#allocation15 + $0x448] sm:$0xff] }
 0x39b   :  { %v6538_v28 = vcombine.high %v1279_v16, %v1283_v17  ;;  %v1330_v1 = vld [vmem:[#allocation15 + $0x468] sm:$0xff] }
 0x39d   :  { %2858 = vmatpush1.bf16.msra.mxu0 %v6479_v22  ;;  %2940 = vmatpush1.bf16.msra.mxu1 %v6481_v23  ;;  %v1287_v22 = vld [vmem:[#allocation15 + $0x310] sm:$0xff] }
 0x39e   :  { %2859 = vmatprep.subr.bf16.mxu0 %v6488_v24  ;;  %2941 = vmatprep.subr.bf16.mxu1 %v6490_v25  ;;  %v1291_v23 = vld [vmem:[#allocation15 + $0x330] sm:$0xff]  ;;  %v6535_v24 = vcombine.low %v1278_v6, %v1282_v14  ;;  %v6537_v25 = vcombine.low %v1279_v16, %v1283_v17  ;;  %v6584_v6 = vcombine.high %v1326_v0, %v1330_v1  ;;  %v1334_v16 = vld [vmem:[#allocation15 + $0x488] sm:$0xff] }
 0x39f   :  { %v6546_v27 = vcombine.high %v1287_v22, %v1291_v23  ;;  %v1338_v17 = vld [vmem:[#allocation15 + $0x4a8] sm:$0xff] }
 0x3a1   :  { %2860 = vmatpush1.bf16.msra.mxu0 %v6487_v31  ;;  %2942 = vmatpush1.bf16.msra.mxu1 %v6489_v32  ;;  %v1295_v31 = vld [vmem:[#allocation15 + $0x350] sm:$0xff] }
 0x3a2   :  { %2861 = vmatprep.subr.bf16.mxu0 %v6496_v33  ;;  %2943 = vmatprep.subr.bf16.mxu1 %v6498_v15  ;;  %v1299_v32 = vld [vmem:[#allocation15 + $0x370] sm:$0xff]  ;;  %v6543_v33 = vcombine.low %v1286_v21, %v1290_v52  ;;  %v6545_v15 = vcombine.low %v1287_v22, %v1291_v23  ;;  %v6592_v21 = vcombine.high %v1334_v16, %v1338_v17  ;;  %v1342_v22 = vld [vmem:[#allocation15 + $0x4c8] sm:$0xff] }
 0x3a3   :  { %v6554_v37 = vcombine.high %v1295_v31, %v1299_v32  ;;  %v1346_v23 = vld [vmem:[#allocation15 + $0x4e8] sm:$0xff] }
 0x3a5   :  { %2862 = vmatpush1.bf16.msra.mxu0 %v6495_v13  ;;  %2944 = vmatpush1.bf16.msra.mxu1 %v6497_v34  ;;  %v1303_v13 = vld [vmem:[#allocation15 + $0x390] sm:$0xff] }
 0x3a6   :  { %2863 = vmatprep.subr.bf16.mxu0 %v6504_v36  ;;  %2945 = vmatprep.subr.bf16.mxu1 %v6506_v38  ;;  %v1307_v34 = vld [vmem:[#allocation15 + $0x3b0] sm:$0xff]  ;;  %v6551_v36 = vcombine.low %v1294_v29, %v1298_v30  ;;  %v6553_v38 = vcombine.low %v1295_v31, %v1299_v32  ;;  %v6600_v29 = vcombine.high %v1342_v22, %v1346_v23  ;;  %v1350_v31 = vld [vmem:[#allocation15 + $0x508] sm:$0xff] }
 0x3a7   :  { %v6562_v40 = vcombine.high %v1303_v13, %v1307_v34  ;;  %v1354_v32 = vld [vmem:[#allocation15 + $0x528] sm:$0xff] }
 0x3a9   :  { %2864 = vmatpush1.bf16.msra.mxu0 %v6503_v48  ;;  %2946 = vmatpush1.bf16.msra.mxu1 %v6505_v49  ;;  %v1311_v48 = vld [vmem:[#allocation15 + $0x3d0] sm:$0xff] }
 0x3aa   :  { %2865 = vmatprep.subr.bf16.mxu0 %v6512_v50  ;;  %2947 = vmatprep.subr.bf16.mxu1 %v6514_v51  ;;  %v1315_v49 = vld [vmem:[#allocation15 + $0x3f0] sm:$0xff]  ;;  %v6559_v50 = vcombine.low %v1302_v10, %v1306_v4  ;;  %v6561_v51 = vcombine.low %v1303_v13, %v1307_v34  ;;  %v6608_v10 = vcombine.high %v1350_v31, %v1354_v32  ;;  %v1358_v13 = vld [vmem:[#allocation15 + $0x548] sm:$0xff] }
 0x3ab   :  { %v6570_v59 = vcombine.high %v1311_v48, %v1315_v49  ;;  %v1362_v34 = vld [vmem:[#allocation15 + $0x568] sm:$0xff] }
 0x3ad   :  { %2866 = vmatpush1.bf16.msra.mxu0 %v6511_v62  ;;  %2948 = vmatpush1.bf16.msra.mxu1 %v6513_v63  ;;  %v1319_v62 = vld [vmem:[#allocation15 + $0x410] sm:$0xff] }
 0x3ae   :  { %2867 = vmatprep.subr.bf16.mxu0 %v6520_v5  ;;  %2949 = vmatprep.subr.bf16.mxu1 %v6522_v8  ;;  %v1323_v63 = vld [vmem:[#allocation15 + $0x430] sm:$0xff]  ;;  %v6567_v5 = vcombine.low %v1310_v41, %v1314_v42  ;;  %v6569_v8 = vcombine.low %v1311_v48, %v1315_v49  ;;  %v6616_v41 = vcombine.high %v1358_v13, %v1362_v34  ;;  %v1366_v48 = vld [vmem:[#allocation15 + $0x588] sm:$0xff] }
 0x3af   :  { %v6578_v12 = vcombine.high %v1319_v62, %v1323_v63  ;;  %v1370_v49 = vld [vmem:[#allocation15 + $0x5a8] sm:$0xff] }
 0x3b1   :  { %2868 = vmatpush1.bf16.msra.mxu0 %v6519_v2  ;;  %2950 = vmatpush1.bf16.msra.mxu1 %v6521_v7  ;;  %v1327_v2 = vld [vmem:[#allocation15 + $0x450] sm:$0xff] }
 0x3b2   :  { %2869 = vmatprep.subr.bf16.mxu0 %v6528_v11  ;;  %2951 = vmatprep.subr.bf16.mxu1 %v6530_v3  ;;  %v1331_v7 = vld [vmem:[#allocation15 + $0x470] sm:$0xff]  ;;  %v6575_v11 = vcombine.low %v1318_v60, %v1322_v61  ;;  %v6577_v3 = vcombine.low %v1319_v62, %v1323_v63  ;;  %v6624_v60 = vcombine.high %v1366_v48, %v1370_v49  ;;  %v1374_v62 = vld [vmem:[#allocation15 + $0x5c8] sm:$0xff] }
 0x3b3   :  { %v6586_v14 = vcombine.high %v1327_v2, %v1331_v7  ;;  %v1378_v63 = vld [vmem:[#allocation15 + $0x5e8] sm:$0xff] }
 0x3b5   :  { %2870 = vmatpush1.bf16.msra.mxu0 %v6527_v18  ;;  %2952 = vmatpush1.bf16.msra.mxu1 %v6529_v19  ;;  %v1335_v18 = vld [vmem:[#allocation15 + $0x490] sm:$0xff] }
 0x3b6   :  { %2871 = vmatprep.subr.bf16.mxu0 %v6536_v20  ;;  %2953 = vmatprep.subr.bf16.mxu1 %v6538_v28  ;;  %v1339_v19 = vld [vmem:[#allocation15 + $0x4b0] sm:$0xff]  ;;  %v6583_v20 = vcombine.low %v1326_v0, %v1330_v1  ;;  %v6585_v28 = vcombine.low %v1327_v2, %v1331_v7  ;;  %v6632_v0 = vcombine.high %v1374_v62, %v1378_v63  ;;  %v1382_v2 = vld [vmem:[#allocation15 + $0x608] sm:$0xff] }
 0x3b7   :  { %v6594_v52 = vcombine.high %v1335_v18, %v1339_v19  ;;  %v1386_v7 = vld [vmem:[#allocation15 + $0x628] sm:$0xff] }
 0x3b9   :  { %2872 = vmatpush1.bf16.msra.mxu0 %v6535_v24  ;;  %2954 = vmatpush1.bf16.msra.mxu1 %v6537_v25  ;;  %v1343_v24 = vld [vmem:[#allocation15 + $0x4d0] sm:$0xff] }
 0x3ba   :  { %2873 = vmatprep.subr.bf16.mxu0 %v6544_v26  ;;  %2955 = vmatprep.subr.bf16.mxu1 %v6546_v27  ;;  %v1347_v25 = vld [vmem:[#allocation15 + $0x4f0] sm:$0xff]  ;;  %v6591_v26 = vcombine.low %v1334_v16, %v1338_v17  ;;  %v6593_v27 = vcombine.low %v1335_v18, %v1339_v19  ;;  %v6640_v16 = vcombine.high %v1382_v2, %v1386_v7  ;;  %v1390_v18 = vld [vmem:[#allocation15 + $0x648] sm:$0xff] }
 0x3bb   :  { %v6602_v30 = vcombine.high %v1343_v24, %v1347_v25  ;;  %v1394_v19 = vld [vmem:[#allocation15 + $0x668] sm:$0xff] }
 0x3bd   :  { %2874 = vmatpush1.bf16.msra.mxu0 %v6543_v33  ;;  %2956 = vmatpush1.bf16.msra.mxu1 %v6545_v15  ;;  %v1351_v33 = vld [vmem:[#allocation15 + $0x510] sm:$0xff] }
 0x3be   :  { %2875 = vmatprep.subr.bf16.mxu0 %v6552_v35  ;;  %2957 = vmatprep.subr.bf16.mxu1 %v6554_v37  ;;  %v1355_v15 = vld [vmem:[#allocation15 + $0x530] sm:$0xff]  ;;  %v6599_v35 = vcombine.low %v1342_v22, %v1346_v23  ;;  %v6601_v37 = vcombine.low %v1343_v24, %v1347_v25  ;;  %v6648_v22 = vcombine.high %v1390_v18, %v1394_v19  ;;  %v1398_v24 = vld [vmem:[#allocation15 + $0x688] sm:$0xff] }
 0x3bf   :  { %v6610_v4 = vcombine.high %v1351_v33, %v1355_v15  ;;  %v1402_v25 = vld [vmem:[#allocation15 + $0x6a8] sm:$0xff] }
 0x3c1   :  { %2876 = vmatpush1.bf16.msra.mxu0 %v6551_v36  ;;  %2958 = vmatpush1.bf16.msra.mxu1 %v6553_v38  ;;  %v1359_v36 = vld [vmem:[#allocation15 + $0x550] sm:$0xff] }
 0x3c2   :  { %2877 = vmatprep.subr.bf16.mxu0 %v6560_v39  ;;  %2959 = vmatprep.subr.bf16.mxu1 %v6562_v40  ;;  %v1363_v38 = vld [vmem:[#allocation15 + $0x570] sm:$0xff]  ;;  %v6607_v39 = vcombine.low %v1350_v31, %v1354_v32  ;;  %v6609_v40 = vcombine.low %v1351_v33, %v1355_v15  ;;  %v6656_v31 = vcombine.high %v1398_v24, %v1402_v25  ;;  %v1406_v33 = vld [vmem:[#allocation15 + $0x6c8] sm:$0xff] }
 0x3c3   :  { %v6618_v42 = vcombine.high %v1359_v36, %v1363_v38  ;;  %v1410_v15 = vld [vmem:[#allocation15 + $0x6e8] sm:$0xff] }
 0x3c5   :  { %2878 = vmatpush1.bf16.msra.mxu0 %v6559_v50  ;;  %2960 = vmatpush1.bf16.msra.mxu1 %v6561_v51  ;;  %v1367_v50 = vld [vmem:[#allocation15 + $0x590] sm:$0xff] }
 0x3c6   :  { %2879 = vmatprep.subr.bf16.mxu0 %v6568_v58  ;;  %2961 = vmatprep.subr.bf16.mxu1 %v6570_v59  ;;  %v1371_v51 = vld [vmem:[#allocation15 + $0x5b0] sm:$0xff]  ;;  %v6615_v58 = vcombine.low %v1358_v13, %v1362_v34  ;;  %v6617_v59 = vcombine.low %v1359_v36, %v1363_v38  ;;  %v6664_v13 = vcombine.high %v1406_v33, %v1410_v15  ;;  %v1414_v36 = vld [vmem:[#allocation15 + $0x708] sm:$0xff] }
 0x3c7   :  { %v6626_v61 = vcombine.high %v1367_v50, %v1371_v51  ;;  %v1418_v38 = vld [vmem:[#allocation15 + $0x728] sm:$0xff] }
 0x3c9   :  { %2880 = vmatpush1.bf16.msra.mxu0 %v6567_v5  ;;  %2962 = vmatpush1.bf16.msra.mxu1 %v6569_v8  ;;  %v1375_v5 = vld [vmem:[#allocation15 + $0x5d0] sm:$0xff] }
 0x3ca   :  { %2890 = vmatprep.subr.bf16.mxu0 %v6576_v9  ;;  %2972 = vmatprep.subr.bf16.mxu1 %v6578_v12  ;;  %v1379_v8 = vld [vmem:[#allocation15 + $0x5f0] sm:$0xff]  ;;  %v6623_v9 = vcombine.low %v1366_v48, %v1370_v49  ;;  %v6625_v12 = vcombine.low %v1367_v50, %v1371_v51  ;;  %v6672_v48 = vcombine.high %v1414_v36, %v1418_v38  ;;  %v1422_v50 = vld [vmem:[#allocation15 + $0x748] sm:$0xff] }
 0x3cb   :  { %v6634_v1 = vcombine.high %v1375_v5, %v1379_v8  ;;  %v1426_v51 = vld [vmem:[#allocation15 + $0x768] sm:$0xff] }
 0x3cc   :  { %2882 = vmatmul.mubr.bf16.vlgmr.msra.gmra.mrb[16].mxu0 %v8610_v45  ;;  %2964 = vmatmul.mubr.bf16.vlgmr.msra.gmra.mrb[4].mxu1 %v8610_v45 }
 0x3cd   :  { %2891 = vmatpush1.bf16.msra.mxu0 %v6575_v11  ;;  %2922 = vmatprep.mubr.bf16.mxu0 %v8608_v44  ;;  %v1383_v11 = vld [vmem:[#allocation15 + $0x610] sm:$0xff] }
 0x3ce   :  { %2973 = vmatpush1.bf16.msra.mxu1 %v6577_v3  ;;  %3004 = vmatprep.mubr.bf16.mxu1 %v8608_v44  ;;  %v1387_v3 = vld [vmem:[#allocation15 + $0x630] sm:$0xff] }
 0x3cf   :  { %2892 = vmatprep.subr.bf16.mxu0 %v6584_v6  ;;  %2974 = vmatprep.subr.bf16.mxu1 %v6586_v14  ;;  %v6631_v6 = vcombine.low %v1374_v62, %v1378_v63  ;;  %v6633_v14 = vcombine.low %v1375_v5, %v1379_v8  ;;  %v6642_v17 = vcombine.high %v1383_v11, %v1387_v3  ;;  %v1430_v5 = vld [vmem:[#allocation15 + $0x788] sm:$0xff] }
 0x3d0   :  { %v6680_v62 = vcombine.high %v1422_v50, %v1426_v51  ;;  %v1434_v8 = vld [vmem:[#allocation15 + $0x7a8] sm:$0xff] }
 0x3d1   :  { %2893 = vmatpush1.bf16.msra.mxu0 %v6583_v20  ;;  %v1391_v20 = vld [vmem:[#allocation15 + $0x650] sm:$0xff] }
 0x3d2   :  { %2975 = vmatpush1.bf16.msra.mxu1 %v6585_v28  ;;  %2894 = vmatprep.subr.bf16.mxu0 %v6592_v21  ;;  %v1395_v28 = vld [vmem:[#allocation15 + $0x670] sm:$0xff]  ;;  %v6639_v21 = vcombine.low %v1382_v2, %v1386_v7  ;;  %v6688_v2 = vcombine.high %v1430_v5, %v1434_v8 }
 0x3d3   :  { %2976 = vmatprep.subr.bf16.mxu1 %v6594_v52  ;;  %v6641_v52 = vcombine.low %v1383_v11, %v1387_v3  ;;  %v6650_v23 = vcombine.high %v1391_v20, %v1395_v28  ;;  %v1438_v11 = vld [vmem:[#allocation15 + $0x7c8] sm:$0xff] }
 0x3d4   :  { %v1442_v3 = vld [vmem:[#allocation15 + $0x7e8] sm:$0xff] }
 0x3d5   :  { %2895 = vmatpush1.bf16.msra.mxu0 %v6591_v26  ;;  %v1399_v26 = vld [vmem:[#allocation15 + $0x690] sm:$0xff] }
 0x3d6   :  { %2977 = vmatpush1.bf16.msra.mxu1 %v6593_v27  ;;  %2896 = vmatprep.subr.bf16.mxu0 %v6600_v29  ;;  %v1403_v27 = vld [vmem:[#allocation15 + $0x6b0] sm:$0xff]  ;;  %v6647_v29 = vcombine.low %v1390_v18, %v1394_v19  ;;  %v6696_v18 = vcombine.high %v1438_v11, %v1442_v3 }
 0x3d7   :  { %2978 = vmatprep.subr.bf16.mxu1 %v6602_v30  ;;  %v6649_v30 = vcombine.low %v1391_v20, %v1395_v28  ;;  %v6658_v32 = vcombine.high %v1399_v26, %v1403_v27  ;;  %v1192_v20 = vld [vmem:[#allocation15 + $0x18] sm:$0xff] }
 0x3d8   :  { %v1196_v28 = vld [vmem:[#allocation15 + $0x38] sm:$0xff] }
 0x3d9   :  { %2897 = vmatpush1.bf16.msra.mxu0 %v6599_v35  ;;  %v1407_v35 = vld [vmem:[#allocation15 + $0x6d0] sm:$0xff] }
 0x3da   :  { %2979 = vmatpush1.bf16.msra.mxu1 %v6601_v37  ;;  %2898 = vmatprep.subr.bf16.mxu0 %v6608_v10  ;;  %v1411_v37 = vld [vmem:[#allocation15 + $0x6f0] sm:$0xff]  ;;  %v6655_v10 = vcombine.low %v1398_v24, %v1402_v25  ;;  %v1204_v24 = vld [vmem:[#allocation15 + $0x78] sm:$0xff]  ;;  %v6451_v25 = vcombine.low %v1192_v20, %v1196_v28 }
 0x3db   :  { %2980 = vmatprep.subr.bf16.mxu1 %v6610_v4  ;;  %v6657_v4 = vcombine.low %v1399_v26, %v1403_v27  ;;  %v6666_v34 = vcombine.high %v1407_v35, %v1411_v37  ;;  %v1208_v27 = vld [vmem:[#allocation15 + $0x98] sm:$0xff] }
 0x3dd   :  { %2899 = vmatpush1.bf16.msra.mxu0 %v6607_v39  ;;  %v1415_v39 = vld [vmem:[#allocation15 + $0x710] sm:$0xff] }
 0x3de   :  { %2981 = vmatpush1.bf16.msra.mxu1 %v6609_v40  ;;  %2900 = vmatprep.subr.bf16.mxu0 %v6616_v41  ;;  %v1419_v40 = vld [vmem:[#allocation15 + $0x730] sm:$0xff]  ;;  %v6663_v41 = vcombine.low %v1406_v33, %v1410_v15  ;;  %v1220_v33 = vld [vmem:[#allocation15 + $0xf8] sm:$0xff] }
 0x3df   :  { %2982 = vmatprep.subr.bf16.mxu1 %v6618_v42  ;;  %v6665_v42 = vcombine.low %v1407_v35, %v1411_v37  ;;  %v6674_v49 = vcombine.high %v1415_v39, %v1419_v40  ;;  %v1224_v37 = vld [vmem:[#allocation15 + $0x118] sm:$0xff] }
 0x3e1   :  { %2901 = vmatpush1.bf16.msra.mxu0 %v6615_v58  ;;  %v1423_v58 = vld [vmem:[#allocation15 + $0x750] sm:$0xff] }
 0x3e2   :  { %2983 = vmatpush1.bf16.msra.mxu1 %v6617_v59  ;;  %2902 = vmatprep.subr.bf16.mxu0 %v6624_v60  ;;  %v1427_v59 = vld [vmem:[#allocation15 + $0x770] sm:$0xff]  ;;  %v6671_v60 = vcombine.low %v1414_v36, %v1418_v38  ;;  %v1236_v36 = vld [vmem:[#allocation15 + $0x178] sm:$0xff] }
 0x3e3   :  { %2984 = vmatprep.subr.bf16.mxu1 %v6626_v61  ;;  %v6673_v61 = vcombine.low %v1415_v39, %v1419_v40  ;;  %v6682_v63 = vcombine.high %v1423_v58, %v1427_v59  ;;  %v1240_v39 = vld [vmem:[#allocation15 + $0x198] sm:$0xff] }
 0x3e4   :  { %v1244_v40 = vld [vmem:[#allocation15 + $0x1b8] sm:$0xff] }
 0x3e5   :  { %2903 = vmatpush1.bf16.msra.mxu0 %v6623_v9  ;;  %v1431_v9 = vld [vmem:[#allocation15 + $0x790] sm:$0xff] }
 0x3e6   :  { %2985 = vmatpush1.bf16.msra.mxu1 %v6625_v12  ;;  %2904 = vmatprep.subr.bf16.mxu0 %v6632_v0  ;;  %v1435_v12 = vld [vmem:[#allocation15 + $0x7b0] sm:$0xff]  ;;  %v6679_v0 = vcombine.low %v1422_v50, %v1426_v51  ;;  %v6499_v50 = vcombine.low %v1240_v39, %v1244_v40 }
 0x3e7   :  { %2986 = vmatprep.subr.bf16.mxu1 %v6634_v1  ;;  %v6681_v1 = vcombine.low %v1423_v58, %v1427_v59  ;;  %v6690_v7 = vcombine.high %v1431_v9, %v1435_v12  ;;  %v1256_v58 = vld [vmem:[#allocation15 + $0x218] sm:$0xff] }
 0x3e8   :  { %v1260_v59 = vld [vmem:[#allocation15 + $0x238] sm:$0xff] }
 0x3e9   :  { %2905 = vmatpush1.bf16.msra.mxu0 %v6631_v6  ;;  %v1439_v6 = vld [vmem:[#allocation15 + $0x7d0] sm:$0xff] }
 0x3ea   :  { %2987 = vmatpush1.bf16.msra.mxu1 %v6633_v14  ;;  %2906 = vmatprep.subr.bf16.mxu0 %v6640_v16  ;;  %v1443_v14 = vld [vmem:[#allocation15 + $0x7f0] sm:$0xff]  ;;  %v6687_v16 = vcombine.low %v1430_v5, %v1434_v8  ;;  %v6515_v5 = vcombine.low %v1256_v58, %v1260_v59 }
 0x3eb   :  { %2988 = vmatprep.subr.bf16.mxu1 %v6642_v17  ;;  %v6689_v17 = vcombine.low %v1431_v9, %v1435_v12  ;;  %v6698_v19 = vcombine.high %v1439_v6, %v1443_v14  ;;  %v1272_v9 = vld [vmem:[#allocation15 + $0x298] sm:$0xff] }
 0x3ec   :  { %v1276_v12 = vld [vmem:[#allocation15 + $0x2b8] sm:$0xff] }
 0x3ed   :  { %2907 = vmatpush1.bf16.msra.mxu0 %v6639_v21  ;;  %v6695_v21 = vcombine.low %v1438_v11, %v1442_v3  ;;  %v6531_v11 = vcombine.low %v1272_v9, %v1276_v12 }
 0x3ee   :  { %2989 = vmatpush1.bf16.msra.mxu1 %v6641_v52  ;;  %2908 = vmatprep.subr.bf16.mxu0 %v6648_v22  ;;  %v6697_v52 = vcombine.low %v1439_v6, %v1443_v14  ;;  %v6452_v22 = vcombine.high %v1192_v20, %v1196_v28  ;;  %v1288_v6 = vld [vmem:[#allocation15 + $0x318] sm:$0xff] }
 0x3ef   :  { %2990 = vmatprep.subr.bf16.mxu1 %v6650_v23  ;;  %v1200_v23 = vld [vmem:[#allocation15 + $0x58] sm:$0xff] }
 0x3f0   :  { %v6460_v26 = vcombine.high %v1200_v23, %v1204_v24  ;;  %v1292_v14 = vld [vmem:[#allocation15 + $0x338] sm:$0xff] }
 0x3f1   :  { %2909 = vmatpush1.bf16.msra.mxu0 %v6647_v29  ;;  %v1212_v29 = vld [vmem:[#allocation15 + $0xb8] sm:$0xff]  ;;  %v6547_v20 = vcombine.low %v1288_v6, %v1292_v14 }
 0x3f2   :  { %2991 = vmatpush1.bf16.msra.mxu1 %v6649_v30  ;;  %2910 = vmatprep.subr.bf16.mxu0 %v6656_v31  ;;  %v6459_v30 = vcombine.low %v1200_v23, %v1204_v24  ;;  %v6468_v31 = vcombine.high %v1208_v27, %v1212_v29  ;;  %v6467_v15 = vcombine.low %v1208_v27, %v1212_v29  ;;  %v1312_v24 = vld [vmem:[#allocation15 + $0x3d8] sm:$0xff] }
 0x3f3   :  { %2992 = vmatprep.subr.bf16.mxu1 %v6658_v32  ;;  %v1216_v32 = vld [vmem:[#allocation15 + $0xd8] sm:$0xff] }
 0x3f4   :  { %v6476_v35 = vcombine.high %v1216_v32, %v1220_v33  ;;  %v1320_v29 = vld [vmem:[#allocation15 + $0x418] sm:$0xff] }
 0x3f5   :  { %2911 = vmatpush1.bf16.msra.mxu0 %v6655_v10  ;;  %v1228_v10 = vld [vmem:[#allocation15 + $0x138] sm:$0xff] }
 0x3f6   :  { %2993 = vmatpush1.bf16.msra.mxu1 %v6657_v4  ;;  %2912 = vmatprep.subr.bf16.mxu0 %v6664_v13  ;;  %v6475_v4 = vcombine.low %v1216_v32, %v1220_v33  ;;  %v6484_v13 = vcombine.high %v1224_v37, %v1228_v10  ;;  %v6483_v38 = vcombine.low %v1224_v37, %v1228_v10  ;;  %v1328_v33 = vld [vmem:[#allocation15 + $0x458] sm:$0xff] }
 0x3f7   :  { %2994 = vmatprep.subr.bf16.mxu1 %v6666_v34  ;;  %v1232_v34 = vld [vmem:[#allocation15 + $0x158] sm:$0xff] }
 0x3f8   :  { %v1336_v10 = vld [vmem:[#allocation15 + $0x498] sm:$0xff] }
 0x3f9   :  { %2913 = vmatpush1.bf16.msra.mxu0 %v6663_v41  ;;  %v6491_v41 = vcombine.low %v1232_v34, %v1236_v36 }
 0x3fa   :  { %2995 = vmatpush1.bf16.msra.mxu1 %v6665_v42  ;;  %2914 = vmatprep.subr.bf16.mxu0 %v6672_v48  ;;  %v6500_v42 = vcombine.high %v1240_v39, %v1244_v40  ;;  %v1248_v48 = vld [vmem:[#allocation15 + $0x1d8] sm:$0xff] }
 0x3fb   :  { %2996 = vmatprep.subr.bf16.mxu1 %v6674_v49  ;;  %v1252_v49 = vld [vmem:[#allocation15 + $0x1f8] sm:$0xff] }
 0x3fc   :  { %v6508_v51 = vcombine.high %v1248_v48, %v1252_v49  ;;  %v1352_v40 = vld [vmem:[#allocation15 + $0x518] sm:$0xff] }
 0x3fd   :  { %2915 = vmatpush1.bf16.msra.mxu0 %v6671_v60  ;;  %v6507_v60 = vcombine.low %v1248_v48, %v1252_v49  ;;  %v1360_v49 = vld [vmem:[#allocation15 + $0x558] sm:$0xff] }
 0x3fe   :  { %2997 = vmatpush1.bf16.msra.mxu1 %v6673_v61  ;;  %2916 = vmatprep.subr.bf16.mxu0 %v6680_v62  ;;  %v6516_v61 = vcombine.high %v1256_v58, %v1260_v59  ;;  %v1264_v62 = vld [vmem:[#allocation15 + $0x258] sm:$0xff] }
 0x3ff   :  { %2998 = vmatprep.subr.bf16.mxu1 %v6682_v63  ;;  %v1268_v63 = vld [vmem:[#allocation15 + $0x278] sm:$0xff] }
 0x400   :  { %v6524_v8 = vcombine.high %v1264_v62, %v1268_v63  ;;  %v1368_v58 = vld [vmem:[#allocation15 + $0x598] sm:$0xff] }
 0x401   :  { %2917 = vmatpush1.bf16.msra.mxu0 %v6679_v0  ;;  %v6523_v0 = vcombine.low %v1264_v62, %v1268_v63  ;;  %v1372_v59 = vld [vmem:[#allocation15 + $0x5b8] sm:$0xff] }
 0x402   :  { %2999 = vmatpush1.bf16.msra.mxu1 %v6681_v1  ;;  %2918 = vmatprep.subr.bf16.mxu0 %v6688_v2  ;;  %v6532_v1 = vcombine.high %v1272_v9, %v1276_v12  ;;  %v1280_v2 = vld [vmem:[#allocation15 + $0x2d8] sm:$0xff]  ;;  %v6628_v63 = vcombine.high %v1368_v58, %v1372_v59 }
 0x403   :  { %3000 = vmatprep.subr.bf16.mxu1 %v6690_v7  ;;  %v1284_v7 = vld [vmem:[#allocation15 + $0x2f8] sm:$0xff] }
 0x404   :  { %v6540_v3 = vcombine.high %v1280_v2, %v1284_v7  ;;  %v1376_v9 = vld [vmem:[#allocation15 + $0x5d8] sm:$0xff] }
 0x405   :  { %2919 = vmatpush1.bf16.msra.mxu0 %v6687_v16  ;;  %v6539_v16 = vcombine.low %v1280_v2, %v1284_v7  ;;  %v1380_v12 = vld [vmem:[#allocation15 + $0x5f8] sm:$0xff] }
 0x406   :  { %3001 = vmatpush1.bf16.msra.mxu1 %v6689_v17  ;;  %2920 = vmatprep.subr.bf16.mxu0 %v6696_v18  ;;  %v6548_v17 = vcombine.high %v1288_v6, %v1292_v14  ;;  %v1296_v18 = vld [vmem:[#allocation15 + $0x358] sm:$0xff]  ;;  %v6627_v6 = vcombine.low %v1368_v58, %v1372_v59 }
 0x407   :  { %3002 = vmatprep.subr.bf16.mxu1 %v6698_v19  ;;  %v1300_v19 = vld [vmem:[#allocation15 + $0x378] sm:$0xff] }
 0x408   :  { %v6556_v28 = vcombine.high %v1296_v18, %v1300_v19  ;;  %v1408_v58 = vld [vmem:[#allocation15 + $0x6d8] sm:$0xff] }
 0x409   :  { %2921 = vmatpush1.bf16.msra.mxu0 %v6695_v21  ;;  %v1304_v21 = vld [vmem:[#allocation15 + $0x398] sm:$0xff] }
 0x40a   :  { %3003 = vmatpush1.bf16.msra.mxu1 %v6697_v52  ;;  %3013 = vmatprep.subr.bf16.mxu0 %v6452_v22  ;;  %v1308_v52 = vld [vmem:[#allocation15 + $0x3b8] sm:$0xff]  ;;  %v6555_v22 = vcombine.low %v1296_v18, %v1300_v19  ;;  %v6636_v18 = vcombine.high %v1376_v9, %v1380_v12 }
 0x40b   :  { %v6564_v23 = vcombine.high %v1304_v21, %v1308_v52  ;;  %v1412_v59 = vld [vmem:[#allocation15 + $0x6f8] sm:$0xff] }
 0x40c   :  { %2923 = vmatmul.mubr.bf16.vlgmr.msra.gmra.mrb[16].mxu0 %v8612_v46 }
 0x40d   :  { %3005 = vmatmul.mubr.bf16.vlgmr.msra.gmra.mrb[4].mxu1 %v8612_v46  ;;  %3014 = vmatpush1.bf16.msra.mxu0 %v6451_v25  ;;  %v1316_v25 = vld [vmem:[#allocation15 + $0x3f8] sm:$0xff] }
 0x40e   :  { %3045 = vmatprep.mubr.bf16.mxu0 %v8606_v43  ;;  %3015 = vmatprep.subr.bf16.mxu0 %v6460_v26  ;;  %v6492_v43 = vcombine.high %v1232_v34, %v1236_v36  ;;  %v6563_v26 = vcombine.low %v1304_v21, %v1308_v52  ;;  %v6572_v27 = vcombine.high %v1312_v24, %v1316_v25  ;;  %v1344_v36 = vld [vmem:[#allocation15 + $0x4d8] sm:$0xff] }
 0x411   :  { %3016 = vmatpush1.bf16.msra.mxu0 %v6459_v30  ;;  %v1324_v30 = vld [vmem:[#allocation15 + $0x438] sm:$0xff] }
 0x412   :  { %3017 = vmatprep.subr.bf16.mxu0 %v6468_v31  ;;  %v6571_v31 = vcombine.low %v1312_v24, %v1316_v25  ;;  %v6580_v32 = vcombine.high %v1320_v29, %v1324_v30 }
 0x415   :  { %3018 = vmatpush1.bf16.msra.mxu0 %v6467_v15  ;;  %v1332_v15 = vld [vmem:[#allocation15 + $0x478] sm:$0xff] }
 0x416   :  { %3019 = vmatprep.subr.bf16.mxu0 %v6476_v35  ;;  %v6579_v35 = vcombine.low %v1320_v29, %v1324_v30  ;;  %v6588_v37 = vcombine.high %v1328_v33, %v1332_v15  ;;  %v1392_v29 = vld [vmem:[#allocation15 + $0x658] sm:$0xff] }
 0x417   :  { %v1396_v30 = vld [vmem:[#allocation15 + $0x678] sm:$0xff] }
 0x419   :  { %3020 = vmatpush1.bf16.msra.mxu0 %v6475_v4  ;;  %v1340_v4 = vld [vmem:[#allocation15 + $0x4b8] sm:$0xff] }
 0x41a   :  { %3021 = vmatprep.subr.bf16.mxu0 %v6484_v13  ;;  %v6587_v13 = vcombine.low %v1328_v33, %v1332_v15  ;;  %v6596_v34 = vcombine.high %v1336_v10, %v1340_v4 }
 0x41d   :  { %3022 = vmatpush1.bf16.msra.mxu0 %v6483_v38  ;;  %v1348_v38 = vld [vmem:[#allocation15 + $0x4f8] sm:$0xff] }
 0x41e   :  { %3023 = vmatprep.subr.bf16.mxu0 %v6492_v43  ;;  %v6595_v43 = vcombine.low %v1336_v10, %v1340_v4  ;;  %v6604_v39 = vcombine.high %v1344_v36, %v1348_v38  ;;  %v6652_v4 = vcombine.high %v1392_v29, %v1396_v30 }
 0x421   :  { %3024 = vmatpush1.bf16.msra.mxu0 %v6491_v41  ;;  %v1356_v41 = vld [vmem:[#allocation15 + $0x538] sm:$0xff] }
 0x422   :  { %3025 = vmatprep.subr.bf16.mxu0 %v6500_v42  ;;  %v6603_v42 = vcombine.low %v1344_v36, %v1348_v38  ;;  %v6612_v48 = vcombine.high %v1352_v40, %v1356_v41  ;;  %v1400_v36 = vld [vmem:[#allocation15 + $0x698] sm:$0xff] }
 0x423   :  { %v1404_v38 = vld [vmem:[#allocation15 + $0x6b8] sm:$0xff] }
 0x425   :  { %3026 = vmatpush1.bf16.msra.mxu0 %v6499_v50  ;;  %v6611_v50 = vcombine.low %v1352_v40, %v1356_v41 }
 0x426   :  { %3027 = vmatprep.subr.bf16.mxu0 %v6508_v51 }
 0x429   :  { %3028 = vmatpush1.bf16.msra.mxu0 %v6507_v60 }
 0x42a   :  { %3029 = vmatprep.subr.bf16.mxu0 %v6516_v61 }
 0x42d   :  { %3030 = vmatpush1.bf16.msra.mxu0 %v6515_v5 }
 0x42e   :  { %3031 = vmatprep.subr.bf16.mxu0 %v6524_v8 }
 0x431   :  { %3032 = vmatpush1.bf16.msra.mxu0 %v6523_v0 }
 0x432   :  { %3033 = vmatprep.subr.bf16.mxu0 %v6532_v1 }
 0x435   :  { %3034 = vmatpush1.bf16.msra.mxu0 %v6531_v11 }
 0x436   :  { %3035 = vmatprep.subr.bf16.mxu0 %v6540_v3 }
 0x439   :  { %3036 = vmatpush1.bf16.msra.mxu0 %v6539_v16 }
 0x43a   :  { %3037 = vmatprep.subr.bf16.mxu0 %v6548_v17 }
 0x43d   :  { %3038 = vmatpush1.bf16.msra.mxu0 %v6547_v20  ;;  %v1384_v20 = vld [vmem:[#allocation15 + $0x618] sm:$0xff] }
 0x43e   :  { %3039 = vmatprep.subr.bf16.mxu0 %v6556_v28  ;;  %v1388_v28 = vld [vmem:[#allocation15 + $0x638] sm:$0xff] }
 0x43f   :  { %v6644_v24 = vcombine.high %v1384_v20, %v1388_v28 }
 0x441   :  { %3040 = vmatpush1.bf16.msra.mxu0 %v6555_v22  ;;  %v6635_v22 = vcombine.low %v1376_v9, %v1380_v12  ;;  %v6668_v12 = vcombine.high %v1408_v58, %v1412_v59 }
 0x442   :  { %3041 = vmatprep.subr.bf16.mxu0 %v6564_v23 }
 0x445   :  { %3042 = vmatpush1.bf16.msra.mxu0 %v6563_v26 }
 0x446   :  { %3043 = vmatprep.subr.bf16.mxu0 %v6572_v27 }
 0x449   :  { %3044 = vmatpush1.bf16.msra.mxu0 %v6571_v31 }
 0x44a   :  { %3054 = vmatprep.subr.bf16.mxu0 %v6580_v32 }
 0x44c   :  { %3046 = vmatmul.mubr.bf16.vlgmr.msra.gmra.mrb[20].mxu0 %v8610_v45  ;;  %v1364_v45 = vld [vmem:[#allocation15 + $0x578] sm:$0xff] }
 0x44d   :  { %3055 = vmatpush1.bf16.msra.mxu0 %v6579_v35  ;;  %3086 = vmatprep.mubr.bf16.mxu0 %v8608_v44  ;;  %v8635_v44 = vld [vmem:[#allocation16] sm:$0xff]  ;;  %v6620_v51 = vcombine.high %v1360_v49, %v1364_v45  ;;  %v6619_v61 = vcombine.low %v1360_v49, %v1364_v45  ;;  %v6643_v35 = vcombine.low %v1384_v20, %v1388_v28  ;;  %v1424_v28 = vld [vmem:[#allocation15 + $0x758] sm:$0xff] }
 0x44e   :  { %3056 = vmatprep.subr.bf16.mxu0 %v6588_v37  ;;  %v1450_v60 = vrot.slane %v8635_v44, %v8511_v54  ;;  %v1454_v62 = vrot.slane %v8635_v44, %v8514_v56  ;;  %v6660_v45 = vcombine.high %v1400_v36, %v1404_v38 }
 0x451   :  { %3057 = vmatpush1.bf16.msra.mxu0 %v6587_v13 }
 0x452   :  { %3058 = vmatprep.subr.bf16.mxu0 %v6596_v34 }
 0x455   :  { %3059 = vmatpush1.bf16.msra.mxu0 %v6595_v43 }
 0x456   :  { %3060 = vmatprep.subr.bf16.mxu0 %v6604_v39 }
 0x459   :  { %3061 = vmatpush1.bf16.msra.mxu0 %v6603_v42  ;;  %v6651_v42 = vcombine.low %v1392_v29, %v1396_v30  ;;  %v1432_v30 = vld [vmem:[#allocation15 + $0x798] sm:$0xff] }
 0x45a   :  { %3062 = vmatprep.subr.bf16.mxu0 %v6612_v48 }
 0x45d   :  { %3063 = vmatpush1.bf16.msra.mxu0 %v6611_v50 }
 0x45e   :  { %3064 = vmatprep.subr.bf16.mxu0 %v6620_v51 }
 0x45f   :  { %v2801_v5 = vpop.f32.mrb[12].mxu0  ;;  %v2842_v8 = vpop.f32.mrb[0].mxu1 }
 0x460   :  { %v2802_v0 = vadd.f32 %v2801_v5, %v1450_v60  ;;  %v2803_v1 = vpop.f32.mrb[13].mxu0  ;;  %v2844_v2 = vpop.f32.mrb[1].mxu1  ;;  %v6659_v5 = vcombine.low %v1400_v36, %v1404_v38 }
 0x461   :  { %v2804_v7 = vadd.f32 %v2803_v1, %v1454_v62  ;;  %3065 = vmatpush1.bf16.msra.mxu0 %v6619_v61  ;;  %v2805_v11 = vpop.f32.mrb[14].mxu0  ;;  %v2846_v3 = vpop.f32.mrb[2].mxu1 }
 0x462   :  { %v2843_v14 = vadd.f32 %v2842_v8, %v2802_v0  ;;  %v2806_v16 = vpop.f32.mrb[15].mxu0  ;;  %v2847_v17 = vpop.f32.mrb[3].mxu1  ;;  %3066 = vmatprep.subr.bf16.mxu0 %v6628_v63 }
 0x463   :  { %v2845_v19 = vadd.f32 %v2844_v2, %v2804_v7  ;;  %v1416_v2 = vld [vmem:[#allocation15 + $0x718] sm:$0xff]  ;;  %v6667_v16 = vcombine.low %v1408_v58, %v1412_v59 }
 0x464   :  { %vm3095_vm6 = vcmp.ge.f32.partialorder %v2843_v14, 0.0  ;;  %v3103_v21 = vmul.f32 0.2, %v2843_v14  ;;  %v1420_v7 = vld [vmem:[#allocation15 + $0x738] sm:$0xff] }
 0x465   :  { %vm3096_vm7 = vcmp.ge.f32.partialorder %v2845_v19, 0.0  ;;  %v3104_v52 = vmul.f32 0.2, %v2845_v19  ;;  %3067 = vmatpush1.bf16.msra.mxu0 %v6627_v6 }
 0x466   :  { %v8641_v23 = vsel %vm3095_vm6, %v2843_v14, %v3103_v21  ;;  %3068 = vmatprep.subr.bf16.mxu0 %v6636_v18  ;;  %v1428_v21 = vld [vmem:[#allocation15 + $0x778] sm:$0xff] }
 0x467   :  { %v3119_v25 = vrot.slane %v8641_v23, 4  ;;  %v3175_v26 = vmul.f32 %v8641_v23, %v8641_v23  ;;  %v8646_v27 = vsel %vm3096_vm7, %v2845_v19, %v3104_v52  ;;  %v6676_v19 = vcombine.high %v1416_v2, %v1420_v7 }
 0x468   :  { %v3125_v31 = vrot.slane %v8646_v27, 4  ;;  %v3176_v32 = vmul.f32 %v8646_v27, %v8646_v27 }
 0x469   :  { %v3120_v33 = vadd.f32 %v3119_v25, %v8641_v23  ;;  %v3183_v15 = vrot.slane %v3175_v26, 4  ;;  %3069 = vmatpush1.bf16.msra.mxu0 %v6635_v22 }
 0x46a   :  { %v3126_v37 = vadd.f32 %v3125_v31, %v8646_v27  ;;  %v3189_v10 = vrot.slane %v3176_v32, 4  ;;  %3070 = vmatprep.subr.bf16.mxu0 %v6644_v24  ;;  %v6675_v24 = vcombine.low %v1416_v2, %v1420_v7  ;;  %v1436_v31 = vld [vmem:[#allocation15 + $0x7b8] sm:$0xff] }
 0x46b   :  { %v3121_v13 = vrot.slane %v3120_v33, 2  ;;  %v3184_v34 = vadd.f32 %v3183_v15, %v3175_v26  ;;  %v6684_v26 = vcombine.high %v1424_v28, %v1428_v21  ;;  %v6692_v15 = vcombine.high %v1432_v30, %v1436_v31 }
 0x46c   :  { %v3127_v43 = vrot.slane %v3126_v37, 2  ;;  %v3190_v39 = vadd.f32 %v3189_v10, %v3176_v32  ;;  %v6691_v10 = vcombine.low %v1432_v30, %v1436_v31  ;;  %v7301_v30 = vld [vmem:[#allocation21 + $0x34] ss:$24 sps:$4 sm:$0xff]  }
 0x46d   :  { %v3122_v40 = vadd.f32 %v3121_v13, %v3120_v33  ;;  %v3185_v41 = vrot.slane %v3184_v34, 2  ;;  %3071 = vmatpush1.bf16.msra.mxu0 %v6643_v35  ;;  %v6683_v33 = vcombine.low %v1424_v28, %v1428_v21  ;;  %v1440_v35 = vld [vmem:[#allocation15 + $0x7d8] sm:$0xff]  ;;  %v7304_v31 = vld [vmem:[#allocation21 + $0x3c] ss:$24 sps:$4 sm:$0xff]  }
 0x46e   :  { %v3128_v48 = vadd.f32 %v3127_v43, %v3126_v37  ;;  %v3191_v49 = vrot.slane %v3190_v39, 2  ;;  %3072 = vmatprep.subr.bf16.mxu0 %v6652_v4  ;;  %v1444_v37 = vld [vmem:[#allocation15 + $0x7f8] sm:$0xff]  ;;  %v1458_v43 = vrot.slane %v8635_v44, %v8579_v55 }
 0x46f   :  { %v3123_v50 = vrot.slane %v3122_v40, 1  ;;  %v3186_v51 = vadd.f32 %v3185_v41, %v3184_v34  ;;  %v6700_v4 = vcombine.high %v1440_v35, %v1444_v37  ;;  %v6699_v13 = vcombine.low %v1440_v35, %v1444_v37  ;;  %v7293_v28 = vld [vmem:[#allocation21] ss:$24 sps:$4 sm:$0xff]  }
 0x470   :  { %v3129_v60 = vrot.slane %v3128_v48, 1  ;;  %v3192_v61 = vadd.f32 %v3191_v49, %v3190_v39  ;;  %v1462_v39 = vrot.slane %v8635_v44, %v8582_v57  ;;  %v7296_v21 = vld [vmem:[#allocation21 + $0x8] ss:$24 sps:$4 sm:$0xff]   ;;  %v7302_v35 = vld [vmem:[#allocation21 + $0x38] ss:$24 sps:$4 sm:$0xff]  }
 0x471   :  { %v3124_v62 = vadd.f32 %v3123_v50, %v3122_v40  ;;  %v3187_v63 = vrot.slane %v3186_v51, 1  ;;  %3073 = vmatpush1.bf16.msra.mxu0 %v6651_v42 }
 0x472   :  { %v3130_v8 = vadd.f32 %v3129_v60, %v3128_v48  ;;  %v3193_v9 = vrot.slane %v3192_v61, 1  ;;  %3074 = vmatprep.subr.bf16.mxu0 %v6660_v45 }
 0x473   :  { %v8653_v0 = vmul.f32 0.125, %v3124_v62  ;;  %v3188_v1 = vadd.f32 %v3187_v63, %v3186_v51 }
 0x474   :  { %v8655_v11 = vmul.f32 0.125, %v3130_v8  ;;  %v3194_v3 = vadd.f32 %v3193_v9, %v3192_v61 }
 0x475   :  { %v3231_v6 = vmul.f32 0.125, %v3188_v1  ;;  %v3239_v14 = vmul.f32 %v8653_v0, %v8653_v0  ;;  %3075 = vmatpush1.bf16.msra.mxu0 %v6659_v5 }
 0x476   :  { %v3232_v17 = vmul.f32 0.125, %v3194_v3  ;;  %v3240_v18 = vmul.f32 %v8655_v11, %v8655_v11  ;;  %3076 = vmatprep.subr.bf16.mxu0 %v6668_v12 }
 0x477   :  { %v3247_v20 = vsub.f32 %v3231_v6, %v3239_v14 }
 0x478   :  { %v3248_v52 = vsub.f32 %v3232_v17, %v3240_v18  ;;  %v7295_v17 = vld [vmem:[#allocation21 + $0x4] ss:$24 sps:$4 sm:$0xff]  }
 0x479   :  { %v3255_v22 = vmax.f32 %v3247_v20, 0.0  ;;  %3077 = vmatpush1.bf16.msra.mxu0 %v6667_v16  ;;  %v7298_v18 = vld [vmem:[#allocation21 + $0xc] ss:$24 sps:$4 sm:$0xff]   ;;  %5849 = vmatprep.subr.bf16.mxu1 %v7295_v17 }
 0x47a   :  { %v3256_v25 = vmax.f32 %v3248_v52, 0.0  ;;  %3078 = vmatprep.subr.bf16.mxu0 %v6676_v19  ;;  %5850 = vmatpush1.bf16.msra.mxu1 %v7293_v28  ;;  %v7325_v17 = vld [vmem:[#allocation21 + $0xf4] ss:$24 sps:$4 sm:$0xff]   ;;  %v7331_v28 = vld [vmem:[#allocation21 + $0x124] ss:$24 sps:$4 sm:$0xff]  }
 0x47b   :  { %v3264_v29 = vadd.f32 1e-05, %v3255_v22  ;;  %5851 = vmatprep.subr.bf16.mxu1 %v7301_v30  ;;  %v7335_v30 = vld [vmem:[#allocation21 + $0x150] ss:$24 sps:$4 sm:$0xff]  }
 0x47c   :  { %v3265_v32 = vadd.f32 1e-05, %v3256_v25 }
 0x47d   :  { %7881 = vrsqrt.f32 %v3264_v29  ;;  %3079 = vmatpush1.bf16.msra.mxu0 %v6675_v24 }
 0x47e   :  { %7883 = vrsqrt.f32 %v3265_v32  ;;  %3080 = vmatprep.subr.bf16.mxu0 %v6684_v26 }
 0x481   :  { %3081 = vmatpush1.bf16.msra.mxu0 %v6683_v33 }
 0x482   :  { %3082 = vmatprep.subr.bf16.mxu0 %v6692_v15  ;;  %v7299_v15 = vld [vmem:[#allocation21 + $0x30] ss:$24 sps:$4 sm:$0xff]  }
 0x483   :  { %5852 = vmatpush1.bf16.msra.mxu1 %v7299_v15 }
 0x485   :  { %3083 = vmatpush1.bf16.msra.mxu0 %v6691_v10 }
 0x486   :  { %3084 = vmatprep.subr.bf16.mxu0 %v6700_v4 }
 0x487   :  { %v8661_v34 = vpop.eup %7881 }
 0x488   :  { %v8663_v36 = vpop.eup %7883 }
 0x489   :  { %v3288_v38 = vcombine.low %v8661_v34, %v8663_v36  ;;  %3085 = vmatpush1.bf16.msra.mxu0 %v6699_v13  ;;  %v7347_v34 = vld [vmem:[#allocation21 + $0x1b0] ss:$24 sps:$4 sm:$0xff]  }
 0x48a   :  { %6013 = vmatprep.subr.bf16.mxu0 %v7298_v18  ;;  %v7328_v18 = vld [vmem:[#allocation21 + $0xfc] ss:$24 sps:$4 sm:$0xff]   ;;  %v7350_v36 = vld [vmem:[#allocation21 + $0x1b8] ss:$24 sps:$4 sm:$0xff]  }
 0x48c   :  { %3087 = vmatmul.mubr.bf16.vlgmr.msra.gmra.mrb[20].mxu0 %v8612_v46 }
 0x48d   :  { %6014 = vmatpush1.bf16.msra.mxu0 %v7296_v21  ;;  %v7334_v21 = vld [vmem:[#allocation21 + $0x12c] ss:$24 sps:$4 sm:$0xff]  }
 0x48e   :  { %6015 = vmatprep.subr.bf16.mxu0 %v7304_v31  ;;  %v7338_v31 = vld [vmem:[#allocation21 + $0x158] ss:$24 sps:$4 sm:$0xff]  }
 0x491   :  { %6016 = vmatpush1.bf16.msra.mxu0 %v7302_v35  ;;  %v7343_v35 = vld [vmem:[#allocation21 + $0x184] ss:$24 sps:$4 sm:$0xff]  }
 0x4df   :  { %v2924_v40 = vpop.f32.mrb[16].mxu0 }
 0x4e0   :  { %v7089_v41 = vadd.f32 %v2924_v40, %v1458_v43  ;;  %v8672_v42 = vpop.f32.mrb[4].mxu1  ;;  %v2926_v48 = vpop.f32.mrb[17].mxu0  ;;  %v7307_v40 = vld [vmem:[#allocation21 + $0x64] ss:$24 sps:$4 sm:$0xff]  }
 0x4e1   :  { %v7090_v49 = vadd.f32 %v2926_v48, %v1462_v39  ;;  %v8674_v45 = vpop.f32.mrb[5].mxu1  ;;  %v2928_v50 = vpop.f32.mrb[18].mxu0  ;;  %5853 = vmatprep.subr.bf16.mxu1 %v7307_v40  ;;  %v7349_v40 = vld [vmem:[#allocation21 + $0x1b4] ss:$24 sps:$4 sm:$0xff]  }
 0x4e2   :  { %vm3097_vm8 = vcmp.ge.f32.partialorder %v7089_v41, 0.0  ;;  %v3105_v51 = vmul.f32 0.2, %v7089_v41  ;;  %v3010_v58 = vpop.f32.mrb[6].mxu1  ;;  %v2929_v59 = vpop.f32.mrb[19].mxu0 }
 0x4e3   :  { %vm3098_vm9 = vcmp.ge.f32.partialorder %v7090_v49, 0.0  ;;  %v3106_v46 = vmul.f32 0.2, %v7090_v49  ;;  %v3011_v61 = vpop.f32.mrb[7].mxu1  ;;  %v7305_v50 = vld [vmem:[#allocation21 + $0x60] ss:$24 sps:$4 sm:$0xff]  }
 0x4e4   :  { %v8676_v60 = vsel %vm3097_vm8, %v7089_v41, %v3105_v51  ;;  %v7310_v41 = vld [vmem:[#allocation21 + $0x6c] ss:$24 sps:$4 sm:$0xff]   ;;  %v7308_v51 = vld [vmem:[#allocation21 + $0x68] ss:$24 sps:$4 sm:$0xff]   ;;  %5854 = vmatpush1.bf16.msra.mxu1 %v7305_v50 }
 0x4e5   :  { %v3131_v62 = vrot.slane %v8676_v60, 4  ;;  %v3177_v63 = vmul.f32 %v8676_v60, %v8676_v60  ;;  %v8681_v5 = vsel %vm3098_vm9, %v7090_v49, %v3106_v46  ;;  %6017 = vmatprep.subr.bf16.mxu0 %v7310_v41  ;;  %v7352_v41 = vld [vmem:[#allocation21 + $0x1bc] ss:$24 sps:$4 sm:$0xff]   ;;  %v7356_v50 = vld [vmem:[#allocation21 + $0x1e8] ss:$24 sps:$4 sm:$0xff]  }
 0x4e6   :  { %v3137_v8 = vrot.slane %v8681_v5, 4  ;;  %v3178_v9 = vmul.f32 %v8681_v5, %v8681_v5  ;;  %6018 = vmatpush1.bf16.msra.mxu0 %v7308_v51  ;;  %v7361_v51 = vld [vmem:[#allocation21 + $0x214] ss:$24 sps:$4 sm:$0xff]  }
 0x4e7   :  { %v3132_v12 = vadd.f32 %v3131_v62, %v8676_v60  ;;  %v3195_v1 = vrot.slane %v3177_v63, 4  ;;  %v7313_v62 = vld [vmem:[#allocation21 + $0x94] ss:$24 sps:$4 sm:$0xff]  }
 0x4e8   :  { %v3138_v2 = vadd.f32 %v3137_v8, %v8681_v5  ;;  %v3201_v7 = vrot.slane %v3178_v9, 4  ;;  %5855 = vmatprep.subr.bf16.mxu1 %v7313_v62  ;;  %v7370_v62 = vld [vmem:[#allocation21 + $0x24c] ss:$24 sps:$4 sm:$0xff]  }
 0x4e9   :  { %v3133_v3 = vrot.slane %v3132_v12, 2  ;;  %v3196_v6 = vadd.f32 %v3195_v1, %v3177_v63  ;;  %v7316_v63 = vld [vmem:[#allocation21 + $0x9c] ss:$24 sps:$4 sm:$0xff]  }
 0x4ea   :  { %v3139_v14 = vrot.slane %v3138_v2, 2  ;;  %v3202_v16 = vadd.f32 %v3201_v7, %v3178_v9  ;;  %v7311_v9 = vld [vmem:[#allocation21 + $0x90] ss:$24 sps:$4 sm:$0xff]   ;;  %6019 = vmatprep.subr.bf16.mxu0 %v7316_v63  ;;  %v7365_v63 = vld [vmem:[#allocation21 + $0x240] ss:$24 sps:$4 sm:$0xff]  }
 0x4eb   :  { %v3134_v19 = vadd.f32 %v3133_v3, %v3132_v12  ;;  %v3197_v20 = vrot.slane %v3196_v6, 2  ;;  %v7314_v12 = vld [vmem:[#allocation21 + $0x98] ss:$24 sps:$4 sm:$0xff]   ;;  %5856 = vmatpush1.bf16.msra.mxu1 %v7311_v9  ;;  %v7319_v3 = vld [vmem:[#allocation21 + $0xc4] ss:$24 sps:$4 sm:$0xff]  }
 0x4ec   :  { %v3140_v52 = vadd.f32 %v3139_v14, %v3138_v2  ;;  %v3203_v22 = vrot.slane %v3202_v16, 2  ;;  %6020 = vmatpush1.bf16.msra.mxu0 %v7314_v12  ;;  %v7320_v14 = vld [vmem:[#allocation21 + $0xc8] ss:$24 sps:$4 sm:$0xff]   ;;  %5857 = vmatprep.subr.bf16.mxu1 %v7319_v3  ;;  %v7373_v12 = vld [vmem:[#allocation21 + $0x274] ss:$24 sps:$4 sm:$0xff]  }
 0x4ed   :  { %v3135_v24 = vrot.slane %v3134_v19, 1  ;;  %v3198_v25 = vadd.f32 %v3197_v20, %v3196_v6  ;;  %v7317_v6 = vld [vmem:[#allocation21 + $0xc0] ss:$24 sps:$4 sm:$0xff]   ;;  %v7371_v9 = vld [vmem:[#allocation21 + $0x270] ss:$24 sps:$4 sm:$0xff]  }
 0x4ee   :  { %v3141_v26 = vrot.slane %v3140_v52, 1  ;;  %v3204_v29 = vadd.f32 %v3203_v22, %v3202_v16  ;;  %v7322_v16 = vld [vmem:[#allocation21 + $0xcc] ss:$24 sps:$4 sm:$0xff]   ;;  %v7326_v20 = vld [vmem:[#allocation21 + $0xf8] ss:$24 sps:$4 sm:$0xff]  }
 0x4ef   :  { %v3136_v32 = vadd.f32 %v3135_v24, %v3134_v19  ;;  %v3199_v33 = vrot.slane %v3198_v25, 1  ;;  %5858 = vmatpush1.bf16.msra.mxu1 %v7317_v6  ;;  %6021 = vmatprep.subr.bf16.mxu0 %v7322_v16  ;;  %v7323_v19 = vld [vmem:[#allocation21 + $0xf0] ss:$24 sps:$4 sm:$0xff]   ;;  %v7382_v3 = vld [vmem:[#allocation21 + $0x2ac] ss:$24 sps:$4 sm:$0xff]  }
 0x4f0   :  { %v3142_v37 = vadd.f32 %v3141_v26, %v3140_v52  ;;  %v3205_v10 = vrot.slane %v3204_v29, 1  ;;  %6022 = vmatpush1.bf16.msra.mxu0 %v7320_v14  ;;  %5859 = vmatprep.subr.bf16.mxu1 %v7325_v17  ;;  %v7329_v52 = vld [vmem:[#allocation21 + $0x120] ss:$24 sps:$4 sm:$0xff]   ;;  %v7340_v26 = vld [vmem:[#allocation21 + $0x15c] ss:$24 sps:$4 sm:$0xff]  }
 0x4f1   :  { %v8688_v4 = vmul.f32 0.125, %v3136_v32  ;;  %v3200_v13 = vadd.f32 %v3199_v33, %v3198_v25  ;;  %6023 = vmatprep.subr.bf16.mxu0 %v7328_v18  ;;  %v7332_v22 = vld [vmem:[#allocation21 + $0x128] ss:$24 sps:$4 sm:$0xff]   ;;  %v7337_v25 = vld [vmem:[#allocation21 + $0x154] ss:$24 sps:$4 sm:$0xff]   ;;  %v8700_v33 = vrot.slane %v3288_v38, %v8519_v47 }
 0x4f2   :  { %v8690_v43 = vmul.f32 0.125, %v3142_v37  ;;  %v3206_v39 = vadd.f32 %v3205_v10, %v3204_v29  ;;  %v7346_v37 = vld [vmem:[#allocation21 + $0x18c] ss:$24 sps:$4 sm:$0xff]   ;;  %v7341_v10 = vld [vmem:[#allocation21 + $0x180] ss:$24 sps:$4 sm:$0xff]  }
 0x4f3   :  { %v3233_v48 = vmul.f32 0.125, %v3200_v13  ;;  %v3241_v49 = vmul.f32 %v8688_v4, %v8688_v4  ;;  %5860 = vmatpush1.bf16.msra.mxu1 %v7323_v19  ;;  %v7344_v13 = vld [vmem:[#allocation21 + $0x188] ss:$24 sps:$4 sm:$0xff]   ;;  %v7355_v38 = vld [vmem:[#allocation21 + $0x1e4] ss:$24 sps:$4 sm:$0xff]  }
 0x4f4   :  { %v3234_v58 = vmul.f32 0.125, %v3206_v39  ;;  %v3242_v59 = vmul.f32 %v8690_v43, %v8690_v43  ;;  %6024 = vmatpush1.bf16.msra.mxu0 %v7326_v20  ;;  %5861 = vmatprep.subr.bf16.mxu1 %v7331_v28  ;;  %v7377_v6 = vld [vmem:[#allocation21 + $0x2a0] ss:$24 sps:$4 sm:$0xff]   ;;  %v7385_v14 = vld [vmem:[#allocation21 + $0x2d4] ss:$24 sps:$4 sm:$0xff]  }
 0x4f5   :  { %v3249_v46 = vsub.f32 %v3233_v48, %v3241_v49  ;;  %6025 = vmatprep.subr.bf16.mxu0 %v7334_v21  ;;  %v7358_v48 = vld [vmem:[#allocation21 + $0x1ec] ss:$24 sps:$4 sm:$0xff]   ;;  %v7353_v49 = vld [vmem:[#allocation21 + $0x1e0] ss:$24 sps:$4 sm:$0xff]   ;;  %v7388_v17 = vld [vmem:[#allocation21 + $0x2dc] ss:$24 sps:$4 sm:$0xff]  }
 0x4f6   :  { %v3250_v61 = vsub.f32 %v3234_v58, %v3242_v59  ;;  %v7364_v58 = vld [vmem:[#allocation21 + $0x21c] ss:$24 sps:$4 sm:$0xff]   ;;  %v7359_v59 = vld [vmem:[#allocation21 + $0x210] ss:$24 sps:$4 sm:$0xff]   ;;  %v7394_v28 = vld [vmem:[#allocation21 + $0x30c] ss:$24 sps:$4 sm:$0xff]  }
 0x4f7   :  { %v3257_v8 = vmax.f32 %v3249_v46, 0.0  ;;  %5862 = vmatpush1.bf16.msra.mxu1 %v7329_v52  ;;  %v7362_v46 = vld [vmem:[#allocation21 + $0x218] ss:$24 sps:$4 sm:$0xff]   ;;  %v7380_v16 = vld [vmem:[#allocation21 + $0x2a8] ss:$24 sps:$4 sm:$0xff]   ;;  %v8708_v21 = vsub.s32 4, %v8508_v53 }
 0x4f8   :  { %v3258_v1 = vmax.f32 %v3250_v61, 0.0  ;;  %6026 = vmatpush1.bf16.msra.mxu0 %v7332_v22  ;;  %5863 = vmatprep.subr.bf16.mxu1 %v7337_v25  ;;  %v7367_v61 = vld [vmem:[#allocation21 + $0x244] ss:$24 sps:$4 sm:$0xff]   ;;  %v7383_v18 = vld [vmem:[#allocation21 + $0x2d0] ss:$24 sps:$4 sm:$0xff]   ;;  %v8711_v52 = vsub.s32 5, %v8508_v53 }
 0x4f9   :  { %v3266_v2 = vadd.f32 1e-05, %v3257_v8  ;;  %6027 = vmatprep.subr.bf16.mxu0 %v7340_v26  ;;  %v7368_v8 = vld [vmem:[#allocation21 + $0x248] ss:$24 sps:$4 sm:$0xff]   ;;  %v7386_v19 = vld [vmem:[#allocation21 + $0x2d8] ss:$24 sps:$4 sm:$0xff]   ;;  %v1466_v22 = vrot.slane %v8635_v44, %v8708_v21 }
 0x4fa   :  { %v3267_v7 = vadd.f32 1e-05, %v3258_v1  ;;  %v7376_v1 = vld [vmem:[#allocation21 + $0x27c] ss:$24 sps:$4 sm:$0xff]  }
 0x4fb   :  { %7885 = vrsqrt.f32 %v3266_v2  ;;  %5864 = vmatpush1.bf16.msra.mxu1 %v7335_v30  ;;  %v7379_v2 = vld [vmem:[#allocation21 + $0x2a4] ss:$24 sps:$4 sm:$0xff]   ;;  %v7091_v25 = vadd.f32 %v8672_v42, %v1466_v22 }
 0x4fc   :  { %7887 = vrsqrt.f32 %v3267_v7  ;;  %6028 = vmatpush1.bf16.msra.mxu0 %v7338_v31  ;;  %5865 = vmatprep.subr.bf16.mxu1 %v7343_v35  ;;  %v7374_v7 = vld [vmem:[#allocation21 + $0x278] ss:$24 sps:$4 sm:$0xff]   ;;  %v7391_v20 = vld [vmem:[#allocation21 + $0x304] ss:$24 sps:$4 sm:$0xff]  }
 0x4fd   :  { %6029 = vmatprep.subr.bf16.mxu0 %v7346_v37  ;;  %vm3099_vm10 = vcmp.ge.f32.partialorder %v7091_v25, 0.0 }
 0x4ff   :  { %5866 = vmatpush1.bf16.msra.mxu1 %v7341_v10 }
 0x500   :  { %6030 = vmatpush1.bf16.msra.mxu0 %v7344_v13  ;;  %5867 = vmatprep.subr.bf16.mxu1 %v7349_v40 }
 0x501   :  { %6031 = vmatprep.subr.bf16.mxu0 %v7352_v41 }
 0x503   :  { %5868 = vmatpush1.bf16.msra.mxu1 %v7347_v34 }
 0x504   :  { %6032 = vmatpush1.bf16.msra.mxu0 %v7350_v36  ;;  %5869 = vmatprep.subr.bf16.mxu1 %v7355_v38 }
 0x505   :  { %v7886_v24 = vpop.eup %7885  ;;  %6033 = vmatprep.subr.bf16.mxu0 %v7358_v48 }
 0x506   :  { %v7888_v29 = vpop.eup %7887 }
 0x507   :  { %v3289_v32 = vcombine.low %v7886_v24, %v7888_v29  ;;  %5870 = vmatpush1.bf16.msra.mxu1 %v7353_v49  ;;  %v1470_v24 = vrot.slane %v8635_v44, %v8711_v52  ;;  %v3107_v29 = vmul.f32 0.2, %v7091_v25 }
 0x508   :  { %6034 = vmatpush1.bf16.msra.mxu0 %v7356_v50  ;;  %5871 = vmatprep.subr.bf16.mxu1 %v7361_v51 }
 0x509   :  { %v8703_v15 = vrot.slane %v3289_v32, %v8519_v47  ;;  %6035 = vmatprep.subr.bf16.mxu0 %v7364_v58  ;;  %v7092_v26 = vadd.f32 %v8674_v45, %v1470_v24  ;;  %v8719_v31 = vsel %vm3099_vm10, %v7091_v25, %v3107_v29 }
 0x50a   :  { %v3143_v35 = vrot.slane %v8719_v31, 4  ;;  %v3179_v37 = vmul.f32 %v8719_v31, %v8719_v31 }
 0x50b   :  { %v3320_v39 = vcombine.low %v8700_v33, %v8703_v15  ;;  %5872 = vmatpush1.bf16.msra.mxu1 %v7359_v59  ;;  %v3108_v30 = vmul.f32 0.2, %v7092_v26  ;;  %vm3100_vm11 = vcmp.ge.f32.partialorder %v7092_v26, 0.0  ;;  %v8732_v59 = vsub.s32 6, %v8508_v53 }
 0x50c   :  { %6036 = vmatpush1.bf16.msra.mxu0 %v7362_v46  ;;  %5873 = vmatprep.subr.bf16.mxu1 %v7367_v61  ;;  %v3144_v45 = vadd.f32 %v3143_v35, %v8719_v31  ;;  %v3207_v13 = vrot.slane %v3179_v37, 4  ;;  %v8735_v46 = vsub.s32 7, %v8508_v53 }
 0x50d   :  { %6037 = vmatprep.subr.bf16.mxu0 %v7370_v62  ;;  %v8721_v32 = vsel %vm3100_vm11, %v7092_v26, %v3108_v30 }
 0x50e   :  { %v3149_v10 = vrot.slane %v8721_v32, 4  ;;  %v3180_v42 = vmul.f32 %v8721_v32, %v8721_v32  ;;  %v3145_v34 = vrot.slane %v3144_v45, 2  ;;  %v3208_v36 = vadd.f32 %v3207_v13, %v3179_v37 }
 0x50f   :  { %5874 = vmatpush1.bf16.msra.mxu1 %v7365_v63 }
 0x510   :  { %6038 = vmatpush1.bf16.msra.mxu0 %v7368_v8  ;;  %5875 = vmatprep.subr.bf16.mxu1 %v7373_v12  ;;  %v3150_v40 = vadd.f32 %v3149_v10, %v8721_v32  ;;  %v3213_v41 = vrot.slane %v3180_v42, 4  ;;  %v3146_v49 = vadd.f32 %v3145_v34, %v3144_v45  ;;  %v3209_v50 = vrot.slane %v3208_v36, 2 }
 0x511   :  { %6039 = vmatprep.subr.bf16.mxu0 %v7376_v1  ;;  %v1478_v12 = vrot.slane %v8635_v44, %v8735_v46 }
 0x512   :  { %v3151_v38 = vrot.slane %v3150_v40, 2  ;;  %v3214_v48 = vadd.f32 %v3213_v41, %v3180_v42  ;;  %v3147_v61 = vrot.slane %v3146_v49, 1  ;;  %v3210_v62 = vadd.f32 %v3209_v50, %v3208_v36 }
 0x513   :  { %5876 = vmatpush1.bf16.msra.mxu1 %v7371_v9  ;;  %v1474_v9 = vrot.slane %v8635_v44, %v8732_v59 }
 0x514   :  { %5877 = vmatprep.subr.bf16.mxu1 %v7379_v2  ;;  %6040 = vmatpush1.bf16.msra.mxu0 %v7374_v7  ;;  %v3152_v51 = vadd.f32 %v3151_v38, %v3150_v40  ;;  %v3215_v58 = vrot.slane %v3214_v48, 2  ;;  %v3148_v1 = vadd.f32 %v3147_v61, %v3146_v49  ;;  %v3211_v2 = vrot.slane %v3210_v62, 1 }
 0x515   :  { %6041 = vmatprep.subr.bf16.mxu0 %v7382_v3 }
 0x516   :  { %v3153_v63 = vrot.slane %v3152_v51, 1  ;;  %v3216_v8 = vadd.f32 %v3215_v58, %v3214_v48 }
 0x517   :  { %5878 = vmatpush1.bf16.msra.mxu1 %v7377_v6 }
 0x518   :  { %5879 = vmatprep.subr.bf16.mxu1 %v7385_v14  ;;  %6042 = vmatpush1.bf16.msra.mxu0 %v7380_v16  ;;  %v3154_v3 = vadd.f32 %v3153_v63, %v3152_v51  ;;  %v3217_v6 = vrot.slane %v3216_v8, 1 }
 0x519   :  { %6043 = vmatprep.subr.bf16.mxu0 %v7388_v17 }
 0x51a   :  { %v8743_v24 = vmul.f32 0.125, %v3154_v3  ;;  %v3218_v44 = vadd.f32 %v3217_v6, %v3216_v8 }
 0x51b   :  { %5880 = vmatpush1.bf16.msra.mxu1 %v7383_v18 }
 0x51c   :  { %6044 = vmatpush1.bf16.msra.mxu0 %v7386_v19  ;;  %5890 = vmatprep.subr.bf16.mxu1 %v7391_v20  ;;  %v8741_v20 = vmul.f32 0.125, %v3148_v1  ;;  %v3236_v40 = vmul.f32 0.125, %v3218_v44  ;;  %v3244_v41 = vmul.f32 %v8743_v24, %v8743_v24 }
 0x51d   :  { %6054 = vmatprep.subr.bf16.mxu0 %v7394_v28  ;;  %v3212_v28 = vadd.f32 %v3211_v2, %v3210_v62 }
 0x51e   :  { %v3243_v42 = vmul.f32 %v8741_v20, %v8741_v20  ;;  %v3252_v62 = vsub.f32 %v3236_v40, %v3244_v41 }
 0x51f   :  { %v3235_v10 = vmul.f32 0.125, %v3212_v28 }
 0x521   :  { %v3251_v51 = vsub.f32 %v3235_v10, %v3243_v42 }
 0x55f   :  { %v3088_v7 = vpop.f32.mrb[20].mxu0 }
 0x560   :  { %v7093_v14 = vadd.f32 %v3088_v7, %v1474_v9  ;;  %v3090_v16 = vpop.f32.mrb[21].mxu0  ;;  %v3259_v7 = vmax.f32 %v3251_v51, 0.0 }
 0x561   :  { %v7094_v17 = vadd.f32 %v3090_v16, %v1478_v12  ;;  %v3092_v53 = vpop.f32.mrb[22].mxu0 }
 0x562   :  { %vm3101_vm12 = vcmp.ge.f32.partialorder %v7093_v14, 0.0  ;;  %v3109_v18 = vmul.f32 0.2, %v7093_v14  ;;  %v3093_v19 = vpop.f32.mrb[23].mxu0 }
 0x563   :  { %vm3102_vm13 = vcmp.ge.f32.partialorder %v7094_v17, 0.0  ;;  %v3110_v22 = vmul.f32 0.2, %v7094_v17 }
 0x564   :  { %v8745_v25 = vsel %vm3101_vm12, %v7093_v14, %v3109_v18  ;;  %v3260_v14 = vmax.f32 %v3252_v62, 0.0  ;;  %v3328_v62 = vrot.slane %v3320_v39, %v8519_v47 }
 0x565   :  { %v3155_v26 = vrot.slane %v8745_v25, 4  ;;  %v3181_v29 = vmul.f32 %v8745_v25, %v8745_v25  ;;  %v8750_v30 = vsel %vm3102_vm13, %v7094_v17, %v3110_v22  ;;  %v3268_v22 = vadd.f32 1e-05, %v3259_v7 }
 0x566   :  { %v3161_v35 = vrot.slane %v8750_v30, 4  ;;  %v3182_v37 = vmul.f32 %v8750_v30, %v8750_v30 }
 0x567   :  { %v3156_v45 = vadd.f32 %v3155_v26, %v8745_v25  ;;  %v3219_v13 = vrot.slane %v3181_v29, 4  ;;  %7889 = vrsqrt.f32 %v3268_v22 }
 0x568   :  { %v3162_v34 = vadd.f32 %v3161_v35, %v8750_v30  ;;  %v3225_v36 = vrot.slane %v3182_v37, 4 }
 0x569   :  { %v3157_v38 = vrot.slane %v3156_v45, 2  ;;  %v3220_v48 = vadd.f32 %v3219_v13, %v3181_v29  ;;  %v3269_v29 = vadd.f32 1e-05, %v3260_v14 }
 0x56a   :  { %v3163_v49 = vrot.slane %v3162_v34, 2  ;;  %v3226_v50 = vadd.f32 %v3225_v36, %v3182_v37 }
 0x56b   :  { %v3158_v58 = vadd.f32 %v3157_v38, %v3156_v45  ;;  %v3221_v61 = vrot.slane %v3220_v48, 2  ;;  %7891 = vrsqrt.f32 %v3269_v29 }
 0x56c   :  { %v3164_v63 = vadd.f32 %v3163_v49, %v3162_v34  ;;  %v3227_v8 = vrot.slane %v3226_v50, 2 }
 0x56d   :  { %v3159_v9 = vrot.slane %v3158_v58, 1  ;;  %v3222_v12 = vadd.f32 %v3221_v61, %v3220_v48 }
 0x56e   :  { %v3165_v1 = vrot.slane %v3164_v63, 1  ;;  %v3228_v2 = vadd.f32 %v3227_v8, %v3226_v50  ;;  %v3263_v8 = vld [vmem:[#allocation18] sm:$0xff] }
 0x56f   :  { %v3160_v3 = vadd.f32 %v3159_v9, %v3158_v58  ;;  %v3223_v6 = vrot.slane %v3222_v12, 1 }
 0x570   :  { %v3166_v16 = vadd.f32 %v3165_v1, %v3164_v63  ;;  %v3229_v17 = vrot.slane %v3228_v2, 1 }
 0x571   :  { %v3173_v53 = vmul.f32 0.125, %v3160_v3  ;;  %v3224_v18 = vadd.f32 %v3223_v6, %v3222_v12  ;;  %v7890_v34 = vpop.eup %7889 }
 0x572   :  { %v3174_v19 = vmul.f32 0.125, %v3166_v16  ;;  %v3230_v28 = vadd.f32 %v3229_v17, %v3228_v2 }
 0x573   :  { %v3237_v44 = vmul.f32 0.125, %v3224_v18  ;;  %v3245_v26 = vmul.f32 %v3173_v53, %v3173_v53 }
 0x574   :  { %v3238_v35 = vmul.f32 0.125, %v3230_v28  ;;  %v3246_v37 = vmul.f32 %v3174_v19, %v3174_v19 }
 0x575   :  { %v3253_v10 = vsub.f32 %v3237_v44, %v3245_v26  ;;  %v7892_v36 = vpop.eup %7891 }
 0x576   :  { %v3254_v42 = vsub.f32 %v3238_v35, %v3246_v37  ;;  %v3290_v48 = vcombine.low %v7890_v34, %v7892_v36 }
 0x577   :  { %v3261_v45 = vmax.f32 %v3253_v10, 0.0 }
 0x578   :  { %v3262_v13 = vmax.f32 %v3254_v42, 0.0  ;;  %v3312_v51 = vrot.slane %v3290_v48, %v8519_v47 }
 0x579   :  { %v3270_v40 = vadd.f32 1e-05, %v3261_v45 }
 0x57a   :  { %v3271_v41 = vadd.f32 1e-05, %v3262_v13 }
 0x57b   :  { %7893 = vrsqrt.f32 %v3270_v40  ;;  %v3339_v40 = vld [vmem:[#allocation19] sm:$0xff] }
 0x57c   :  { %7895 = vrsqrt.f32 %v3271_v41 }
 0x585   :  { %v7894_v38 = vpop.eup %7893 }
 0x586   :  { %v7896_v49 = vpop.eup %7895 }
 0x587   :  { %v3291_v50 = vcombine.low %v7894_v38, %v7896_v49 }
 0x589   :  { %v3319_v58 = vrot.slane %v3291_v50, %v8519_v47 }
 0x58b   :  { %v3321_v61 = vcombine.low %v3312_v51, %v3319_v58 }
 0x58d   :  { %v3335_v63 = vrot.slane %v3321_v61, %v8519_v47 }
 0x58f   :  { %v3336_v9 = vcombine.low %v3328_v62, %v3335_v63 }
 0x591   :  { %v3338_v12 = vmul.f32 %v3336_v9, %v3263_v8 }
 0x593   :  { %v3360_v1 = vrot.slane %v3338_v12, %v8708_v21  ;;  %v3364_v2 = vrot.slane %v3338_v12, %v8711_v52  ;;  %v3368_v7 = vrot.slane %v3338_v12, %v8732_v59  ;;  %v3372_v3 = vrot.slane %v3338_v12, %v8735_v46 }
 0x594   :  { %v3344_v6 = vrot.slane %v3338_v12, %v8511_v54  ;;  %v3348_v14 = vrot.slane %v3338_v12, %v8514_v56  ;;  %v3352_v33 = vrot.slane %v3338_v12, %v8579_v55  ;;  %v3356_v15 = vrot.slane %v3338_v12, %v8582_v57 }
 0x595   :  { %v3385_v39 = vmul.f32 %v3360_v1, %v8741_v20  ;;  %v3386_v16 = vmul.f32 %v3364_v2, %v8743_v24  ;;  %v3387_v17 = vmul.f32 %v3368_v7, %v3173_v53  ;;  %v3388_v18 = vmul.f32 %v3372_v3, %v3174_v19 }
 0x596   :  { %v3381_v28 = vmul.f32 %v3344_v6, %v8653_v0  ;;  %v3382_v22 = vmul.f32 %v3348_v14, %v8655_v11  ;;  %v3383_v44 = vmul.f32 %v3352_v33, %v8688_v4  ;;  %v3384_v26 = vmul.f32 %v3356_v15, %v8690_v43 }
 0x597   :  { %v3399_v29 = vcombine.low %v3385_v39, %v3386_v16  ;;  %v3400_v35 = vcombine.low %v3387_v17, %v3388_v18  ;;  %v3449_v37 = vmul.f32 %v3348_v14, %v8646_v27  ;;  %v3448_v10 = vmul.f32 %v3344_v6, %v8641_v23  ;;  %v7395_v6 = vld [vmem:[#allocation21 + $0x330] ss:$24 sps:$4 sm:$0xff]   ;;  %v7401_v39 = vld [vmem:[#allocation21 + $0x360] ss:$24 sps:$4 sm:$0xff]   ;;  %v7409_v17 = vld [vmem:[#allocation21 + $0x394] ss:$24 sps:$4 sm:$0xff]  }
 0x598   :  { %v3397_v42 = vcombine.low %v3381_v28, %v3382_v22  ;;  %v3398_v20 = vcombine.low %v3383_v44, %v3384_v26  ;;  %v3451_v24 = vmul.f32 %v3356_v15, %v8681_v5  ;;  %v3455_v43 = vmul.f32 %v3372_v3, %v8750_v30  ;;  %v7398_v14 = vld [vmem:[#allocation21 + $0x338] ss:$24 sps:$4 sm:$0xff]   ;;  %v7406_v15 = vld [vmem:[#allocation21 + $0x36c] ss:$24 sps:$4 sm:$0xff]   ;;  %v7404_v16 = vld [vmem:[#allocation21 + $0x368] ss:$24 sps:$4 sm:$0xff]  }
 0x599   :  { %v3421_v53 = vrot.slane %v3399_v29, %v8519_v47  ;;  %v3428_v0 = vrot.slane %v3400_v35, %v8519_v47  ;;  %v3454_v19 = vmul.f32 %v3368_v7, %v8745_v25  ;;  %v3450_v34 = vmul.f32 %v3352_v33, %v8676_v60  ;;  %v7400_v7 = vld [vmem:[#allocation21 + $0x33c] ss:$24 sps:$4 sm:$0xff]   ;;  %v7407_v28 = vld [vmem:[#allocation21 + $0x390] ss:$24 sps:$4 sm:$0xff]   ;;  %v7418_v26 = vld [vmem:[#allocation21 + $0x3cc] ss:$24 sps:$4 sm:$0xff]  }
 0x59a   :  { %v3407_v11 = vrot.slane %v3397_v42, %v8519_v47  ;;  %v3414_v4 = vrot.slane %v3398_v20, %v8519_v47  ;;  %v3453_v36 = vmul.f32 %v3364_v2, %v8721_v32  ;;  %v3452_v38 = vmul.f32 %v3360_v1, %v8719_v31  ;;  %v7389_v1 = vld [vmem:[#allocation21 + $0x300] ss:$24 sps:$4 sm:$0xff]   ;;  %v7403_v33 = vld [vmem:[#allocation21 + $0x364] ss:$24 sps:$4 sm:$0xff]   ;;  %v7419_v42 = vld [vmem:[#allocation21 + $0x3f0] ss:$24 sps:$4 sm:$0xff]  }
 0x59b   :  { %v3430_v45 = vcombine.low %v3421_v53, %v3428_v0  ;;  %v7392_v2 = vld [vmem:[#allocation21 + $0x308] ss:$24 sps:$4 sm:$0xff]   ;;  %v7412_v18 = vld [vmem:[#allocation21 + $0x39c] ss:$24 sps:$4 sm:$0xff]   ;;  %v7410_v22 = vld [vmem:[#allocation21 + $0x398] ss:$24 sps:$4 sm:$0xff]  }
 0x59c   :  { %v3429_v27 = vcombine.low %v3407_v11, %v3414_v4  ;;  %v7415_v44 = vld [vmem:[#allocation21 + $0x3c4] ss:$24 sps:$4 sm:$0xff]   ;;  %v7413_v29 = vld [vmem:[#allocation21 + $0x3c0] ss:$24 sps:$4 sm:$0xff]   ;;  %v7433_v4 = vld [vmem:[#allocation21 + $0x454] ss:$24 sps:$4 sm:$0xff]  }
 0x59d   :  { %v3444_v23 = vrot.slane %v3430_v45, %v8519_v47  ;;  %v7416_v35 = vld [vmem:[#allocation21 + $0x3c8] ss:$24 sps:$4 sm:$0xff]   ;;  %v7422_v20 = vld [vmem:[#allocation21 + $0x3f8] ss:$24 sps:$4 sm:$0xff]   ;;  %v7430_v53 = vld [vmem:[#allocation21 + $0x42c] ss:$24 sps:$4 sm:$0xff]  }
 0x59e   :  { %v3437_v13 = vrot.slane %v3429_v27, %v8519_v47  ;;  %v7425_v0 = vld [vmem:[#allocation21 + $0x420] ss:$24 sps:$4 sm:$0xff]   ;;  %v7439_v27 = vld [vmem:[#allocation21 + $0x484] ss:$24 sps:$4 sm:$0xff]  }
 0x59f   :  { %v7428_v11 = vld [vmem:[#allocation21 + $0x428] ss:$24 sps:$4 sm:$0xff]   ;;  %v7434_v45 = vld [vmem:[#allocation21 + $0x458] ss:$24 sps:$4 sm:$0xff]  }
 0x5a0   :  { %v3445_v5 = vcombine.low %v3437_v13, %v3444_v23  ;;  %v7442_v23 = vld [vmem:[#allocation21 + $0x48c] ss:$24 sps:$4 sm:$0xff]   ;;  %v7437_v13 = vld [vmem:[#allocation21 + $0x480] ss:$24 sps:$4 sm:$0xff]  }
 0x5a2   :  { %v3447_v41 = vsub.f32 %v3339_v40, %v3445_v5  ;;  %v7440_v40 = vld [vmem:[#allocation21 + $0x488] ss:$24 sps:$4 sm:$0xff]   ;;  %v7445_v5 = vld [vmem:[#allocation21 + $0x4b4] ss:$24 sps:$4 sm:$0xff]  }
 0x5a4   :  { %v3464_v48 = vrot.slane %v3447_v41, %v8514_v56  ;;  %v3460_v30 = vrot.slane %v3447_v41, %v8511_v54  ;;  %v3472_v25 = vrot.slane %v3447_v41, %v8582_v57  ;;  %v3468_v49 = vrot.slane %v3447_v41, %v8579_v55 }
 0x5a5   :  { %v3480_v50 = vrot.slane %v3447_v41, %v8711_v52  ;;  %v3476_v47 = vrot.slane %v3447_v41, %v8708_v21  ;;  %v3488_v51 = vrot.slane %v3447_v41, %v8735_v46  ;;  %v3484_v60 = vrot.slane %v3447_v41, %v8732_v59  ;;  %v7397_v59 = vld [vmem:[#allocation21 + $0x334] ss:$24 sps:$4 sm:$0xff]  }
 0x5a6   :  { %v3498_v58 = vadd.f32 %v3464_v48, %v3449_v37  ;;  %v3497_v32 = vadd.f32 %v3460_v30, %v3448_v10  ;;  %v3500_v61 = vadd.f32 %v3472_v25, %v3451_v24  ;;  %v8804_v31 = vadd.f32 %v3468_v49, %v3450_v34  ;;  %v7421_v37 = vld [vmem:[#allocation21 + $0x3f4] ss:$24 sps:$4 sm:$0xff]   ;;  %v7427_v24 = vld [vmem:[#allocation21 + $0x424] ss:$24 sps:$4 sm:$0xff]   ;;  %v7443_v34 = vld [vmem:[#allocation21 + $0x4b0] ss:$24 sps:$4 sm:$0xff]  }
 0x5a7   :  { %v8806_v62 = vadd.f32 %v3480_v50, %v3453_v36  ;;  %v8808_v63 = vadd.f32 %v3476_v47, %v3452_v38  ;;  %v8810_v8 = vadd.f32 %v3488_v51, %v3455_v43  ;;  %v8812_v9 = vadd.f32 %v3484_v60, %v3454_v19  ;;  %v7424_v10 = vld [vmem:[#allocation21 + $0x3fc] ss:$24 sps:$4 sm:$0xff]   ;;  %v7431_v19 = vld [vmem:[#allocation21 + $0x450] ss:$24 sps:$4 sm:$0xff]   ;;  %v7454_v48 = vld [vmem:[#allocation21 + $0x4ec] ss:$24 sps:$4 sm:$0xff]  }
 0x5a8   :  { %v8814_v12 = vpack.c.bf16 %v3498_v58, %v3498_v58  ;;  %v8816_v46 = vpack.c.bf16 %v3497_v32, %v3497_v32  ;;  %v8822_v3 = vpack.c.bf16 %v3500_v61, %v3500_v61  ;;  %v7436_v43 = vld [vmem:[#allocation21 + $0x45c] ss:$24 sps:$4 sm:$0xff]   ;;  %v7446_v36 = vld [vmem:[#allocation21 + $0x4b8] ss:$24 sps:$4 sm:$0xff]   ;;  %v7452_v25 = vld [vmem:[#allocation21 + $0x4e8] ss:$24 sps:$4 sm:$0xff]  }
 0x5a9   :  { %v7448_v41 = vld [vmem:[#allocation21 + $0x4bc] ss:$24 sps:$4 sm:$0xff]   ;;  %v7449_v30 = vld [vmem:[#allocation21 + $0x4e0] ss:$24 sps:$4 sm:$0xff]   ;;  %v7455_v47 = vld [vmem:[#allocation21 + $0x510] ss:$24 sps:$4 sm:$0xff]  }
 0x5aa   :  { %5881 = vmatprep.mubr.bf16.mxu1 %v8814_v12  ;;  %6045 = vmatprep.mubr.bf16.mxu0 %v8814_v12  ;;  %v7451_v38 = vld [vmem:[#allocation21 + $0x4e4] ss:$24 sps:$4 sm:$0xff]   ;;  %v7457_v49 = vld [vmem:[#allocation21 + $0x514] ss:$24 sps:$4 sm:$0xff]   ;;  %v7458_v51 = vld [vmem:[#allocation21 + $0x518] ss:$24 sps:$4 sm:$0xff]  }
 0x5ab   :  { %5882 = vmatmul.mubr.bf16.vlgmr.msra.gmra.mrb[8].mxu1 %v8816_v46  ;;  %6046 = vmatmul.mubr.bf16.vlgmr.msra.gmra.mrb[24].mxu0 %v8816_v46  ;;  %v7460_v50 = vld [vmem:[#allocation21 + $0x51c] ss:$24 sps:$4 sm:$0xff]   ;;  %v7466_v58 = vld [vmem:[#allocation21 + $0x54c] ss:$24 sps:$4 sm:$0xff]   ;;  %v7461_v32 = vld [vmem:[#allocation21 + $0x540] ss:$24 sps:$4 sm:$0xff]  }
 0x5ac   :  { %5891 = vmatpush1.bf16.msra.mxu1 %v7389_v1  ;;  %6055 = vmatpush1.bf16.msra.mxu0 %v7392_v2  ;;  %v7463_v60 = vld [vmem:[#allocation21 + $0x544] ss:$24 sps:$4 sm:$0xff]   ;;  %v7464_v61 = vld [vmem:[#allocation21 + $0x548] ss:$24 sps:$4 sm:$0xff]   ;;  %v7469_v1 = vld [vmem:[#allocation21 + $0x574] ss:$24 sps:$4 sm:$0xff]  }
 0x5ad   :  { %5922 = vmatprep.mubr.bf16.mxu1 %v8822_v3  ;;  %6086 = vmatprep.mubr.bf16.mxu0 %v8822_v3  ;;  %v7472_v2 = vld [vmem:[#allocation21 + $0x57c] ss:$24 sps:$4 sm:$0xff]  }
 0x5ae   :  { %5892 = vmatprep.subr.bf16.mxu1 %v7397_v59  ;;  %6056 = vmatprep.subr.bf16.mxu0 %v7400_v7  ;;  %v7467_v59 = vld [vmem:[#allocation21 + $0x570] ss:$24 sps:$4 sm:$0xff]  }
 0x5af   :  { %v7470_v7 = vld [vmem:[#allocation21 + $0x578] ss:$24 sps:$4 sm:$0xff]  }
 0x5b0   :  { %5893 = vmatpush1.bf16.msra.mxu1 %v7395_v6  ;;  %6057 = vmatpush1.bf16.msra.mxu0 %v7398_v14  ;;  %v7475_v6 = vld [vmem:[#allocation21 + $0x5a4] ss:$24 sps:$4 sm:$0xff]  }
 0x5b1   :  { %5894 = vmatprep.subr.bf16.mxu1 %v7403_v33  ;;  %6058 = vmatprep.subr.bf16.mxu0 %v7406_v15  ;;  %v7478_v14 = vld [vmem:[#allocation21 + $0x5ac] ss:$24 sps:$4 sm:$0xff]   ;;  %v7473_v33 = vld [vmem:[#allocation21 + $0x5a0] ss:$24 sps:$4 sm:$0xff]  }
 0x5b2   :  { %v7476_v15 = vld [vmem:[#allocation21 + $0x5a8] ss:$24 sps:$4 sm:$0xff]  }
 0x5b4   :  { %5895 = vmatpush1.bf16.msra.mxu1 %v7401_v39  ;;  %6059 = vmatpush1.bf16.msra.mxu0 %v7404_v16  ;;  %v7481_v39 = vld [vmem:[#allocation21 + $0x5d4] ss:$24 sps:$4 sm:$0xff]  }
 0x5b5   :  { %5896 = vmatprep.subr.bf16.mxu1 %v7409_v17  ;;  %6060 = vmatprep.subr.bf16.mxu0 %v7412_v18  ;;  %v7484_v16 = vld [vmem:[#allocation21 + $0x5dc] ss:$24 sps:$4 sm:$0xff]   ;;  %v7479_v17 = vld [vmem:[#allocation21 + $0x5d0] ss:$24 sps:$4 sm:$0xff]  }
 0x5b6   :  { %v7482_v18 = vld [vmem:[#allocation21 + $0x5d8] ss:$24 sps:$4 sm:$0xff]  }
 0x5b8   :  { %5897 = vmatpush1.bf16.msra.mxu1 %v7407_v28  ;;  %6061 = vmatpush1.bf16.msra.mxu0 %v7410_v22  ;;  %v7487_v28 = vld [vmem:[#allocation21 + $0x604] ss:$24 sps:$4 sm:$0xff]  }
 0x5b9   :  { %5898 = vmatprep.subr.bf16.mxu1 %v7415_v44  ;;  %6062 = vmatprep.subr.bf16.mxu0 %v7418_v26  ;;  %v7490_v22 = vld [vmem:[#allocation21 + $0x60c] ss:$24 sps:$4 sm:$0xff]   ;;  %v7485_v44 = vld [vmem:[#allocation21 + $0x600] ss:$24 sps:$4 sm:$0xff]   ;;  %v8828_v26 = vpack.c.bf16 %v8804_v31, %v8804_v31 }
 0x5ba   :  { %v7494_v31 = vld [vmem:[#allocation21 + $0x638] ss:$24 sps:$4 sm:$0xff]  }
 0x5bc   :  { %5899 = vmatpush1.bf16.msra.mxu1 %v7413_v29  ;;  %6063 = vmatpush1.bf16.msra.mxu0 %v7416_v35  ;;  %v7488_v29 = vld [vmem:[#allocation21 + $0x608] ss:$24 sps:$4 sm:$0xff]   ;;  %v8832_v35 = vpack.c.bf16 %v8806_v62, %v8806_v62 }
 0x5bd   :  { %5900 = vmatprep.subr.bf16.mxu1 %v7421_v37  ;;  %6064 = vmatprep.subr.bf16.mxu0 %v7424_v10  ;;  %v7493_v37 = vld [vmem:[#allocation21 + $0x634] ss:$24 sps:$4 sm:$0xff]   ;;  %v7497_v62 = vld [vmem:[#allocation21 + $0x660] ss:$24 sps:$4 sm:$0xff]  }
 0x5be   :  { %v7496_v10 = vld [vmem:[#allocation21 + $0x63c] ss:$24 sps:$4 sm:$0xff]  }
 0x5c0   :  { %5901 = vmatpush1.bf16.msra.mxu1 %v7419_v42  ;;  %6065 = vmatpush1.bf16.msra.mxu0 %v7422_v20  ;;  %v7491_v42 = vld [vmem:[#allocation21 + $0x630] ss:$24 sps:$4 sm:$0xff]   ;;  %v7499_v20 = vld [vmem:[#allocation21 + $0x664] ss:$24 sps:$4 sm:$0xff]  }
 0x5c1   :  { %5902 = vmatprep.subr.bf16.mxu1 %v7427_v24  ;;  %6066 = vmatprep.subr.bf16.mxu0 %v7430_v53  ;;  %v7502_v24 = vld [vmem:[#allocation21 + $0x66c] ss:$24 sps:$4 sm:$0xff]   ;;  %v7500_v53 = vld [vmem:[#allocation21 + $0x668] ss:$24 sps:$4 sm:$0xff]  }
 0x5c4   :  { %5903 = vmatpush1.bf16.msra.mxu1 %v7425_v0  ;;  %6067 = vmatpush1.bf16.msra.mxu0 %v7428_v11  ;;  %v7505_v0 = vld [vmem:[#allocation21 + $0x694] ss:$24 sps:$4 sm:$0xff]  }
 0x5c5   :  { %5904 = vmatprep.subr.bf16.mxu1 %v7433_v4  ;;  %6068 = vmatprep.subr.bf16.mxu0 %v7436_v43  ;;  %v7508_v11 = vld [vmem:[#allocation21 + $0x69c] ss:$24 sps:$4 sm:$0xff]   ;;  %v7503_v4 = vld [vmem:[#allocation21 + $0x690] ss:$24 sps:$4 sm:$0xff]  }
 0x5c6   :  { %v7506_v43 = vld [vmem:[#allocation21 + $0x698] ss:$24 sps:$4 sm:$0xff]  }
 0x5c8   :  { %5905 = vmatpush1.bf16.msra.mxu1 %v7431_v19  ;;  %6069 = vmatpush1.bf16.msra.mxu0 %v7434_v45  ;;  %v7511_v19 = vld [vmem:[#allocation21 + $0x6c4] ss:$24 sps:$4 sm:$0xff]  }
 0x5c9   :  { %5906 = vmatprep.subr.bf16.mxu1 %v7439_v27  ;;  %6070 = vmatprep.subr.bf16.mxu0 %v7442_v23  ;;  %v7514_v45 = vld [vmem:[#allocation21 + $0x6cc] ss:$24 sps:$4 sm:$0xff]   ;;  %v7509_v27 = vld [vmem:[#allocation21 + $0x6c0] ss:$24 sps:$4 sm:$0xff]  }
 0x5ca   :  { %v7512_v23 = vld [vmem:[#allocation21 + $0x6c8] ss:$24 sps:$4 sm:$0xff]  }
 0x5cc   :  { %5907 = vmatpush1.bf16.msra.mxu1 %v7437_v13  ;;  %6071 = vmatpush1.bf16.msra.mxu0 %v7440_v40  ;;  %v7517_v13 = vld [vmem:[#allocation21 + $0x6f4] ss:$24 sps:$4 sm:$0xff]  }
 0x5cd   :  { %5908 = vmatprep.subr.bf16.mxu1 %v7445_v5  ;;  %6072 = vmatprep.subr.bf16.mxu0 %v7448_v41  ;;  %v7520_v40 = vld [vmem:[#allocation21 + $0x6fc] ss:$24 sps:$4 sm:$0xff]   ;;  %v7515_v5 = vld [vmem:[#allocation21 + $0x6f0] ss:$24 sps:$4 sm:$0xff]  }
 0x5ce   :  { %v7518_v41 = vld [vmem:[#allocation21 + $0x6f8] ss:$24 sps:$4 sm:$0xff]  }
 0x5d0   :  { %5909 = vmatpush1.bf16.msra.mxu1 %v7443_v34  ;;  %6073 = vmatpush1.bf16.msra.mxu0 %v7446_v36  ;;  %v7523_v34 = vld [vmem:[#allocation21 + $0x724] ss:$24 sps:$4 sm:$0xff]  }
 0x5d1   :  { %5910 = vmatprep.subr.bf16.mxu1 %v7451_v38  ;;  %6074 = vmatprep.subr.bf16.mxu0 %v7454_v48  ;;  %v7526_v36 = vld [vmem:[#allocation21 + $0x72c] ss:$24 sps:$4 sm:$0xff]   ;;  %v7521_v38 = vld [vmem:[#allocation21 + $0x720] ss:$24 sps:$4 sm:$0xff]  }
 0x5d2   :  { %v7524_v48 = vld [vmem:[#allocation21 + $0x728] ss:$24 sps:$4 sm:$0xff]  }
 0x5d4   :  { %5911 = vmatpush1.bf16.msra.mxu1 %v7449_v30  ;;  %6075 = vmatpush1.bf16.msra.mxu0 %v7452_v25  ;;  %v7529_v30 = vld [vmem:[#allocation21 + $0x754] ss:$24 sps:$4 sm:$0xff]  }
 0x5d5   :  { %5912 = vmatprep.subr.bf16.mxu1 %v7457_v49  ;;  %6076 = vmatprep.subr.bf16.mxu0 %v7460_v50  ;;  %v7532_v25 = vld [vmem:[#allocation21 + $0x75c] ss:$24 sps:$4 sm:$0xff]   ;;  %v7527_v49 = vld [vmem:[#allocation21 + $0x750] ss:$24 sps:$4 sm:$0xff]  }
 0x5d6   :  { %v7530_v50 = vld [vmem:[#allocation21 + $0x758] ss:$24 sps:$4 sm:$0xff]  }
 0x5d8   :  { %5913 = vmatpush1.bf16.msra.mxu1 %v7455_v47  ;;  %6077 = vmatpush1.bf16.msra.mxu0 %v7458_v51  ;;  %v7535_v47 = vld [vmem:[#allocation21 + $0x784] ss:$24 sps:$4 sm:$0xff]  }
 0x5d9   :  { %5914 = vmatprep.subr.bf16.mxu1 %v7463_v60  ;;  %6078 = vmatprep.subr.bf16.mxu0 %v7466_v58  ;;  %v7538_v51 = vld [vmem:[#allocation21 + $0x78c] ss:$24 sps:$4 sm:$0xff]   ;;  %v7533_v60 = vld [vmem:[#allocation21 + $0x780] ss:$24 sps:$4 sm:$0xff]  }
 0x5da   :  { %v7536_v58 = vld [vmem:[#allocation21 + $0x788] ss:$24 sps:$4 sm:$0xff]  }
 0x5dc   :  { %5915 = vmatpush1.bf16.msra.mxu1 %v7461_v32  ;;  %6079 = vmatpush1.bf16.msra.mxu0 %v7464_v61  ;;  %v7541_v32 = vld [vmem:[#allocation21 + $0x7b4] ss:$24 sps:$4 sm:$0xff]  }
 0x5dd   :  { %5916 = vmatprep.subr.bf16.mxu1 %v7469_v1  ;;  %6080 = vmatprep.subr.bf16.mxu0 %v7472_v2  ;;  %v7544_v61 = vld [vmem:[#allocation21 + $0x7bc] ss:$24 sps:$4 sm:$0xff]   ;;  %v7539_v1 = vld [vmem:[#allocation21 + $0x7b0] ss:$24 sps:$4 sm:$0xff]  }
 0x5de   :  { %v7542_v2 = vld [vmem:[#allocation21 + $0x7b8] ss:$24 sps:$4 sm:$0xff]  }
 0x5e0   :  { %5917 = vmatpush1.bf16.msra.mxu1 %v7467_v59  ;;  %6081 = vmatpush1.bf16.msra.mxu0 %v7470_v7  ;;  %v7547_v59 = vld [vmem:[#allocation21 + $0x7e4] ss:$24 sps:$4 sm:$0xff]  }
 0x5e1   :  { %5918 = vmatprep.subr.bf16.mxu1 %v7475_v6  ;;  %6082 = vmatprep.subr.bf16.mxu0 %v7478_v14  ;;  %v7550_v7 = vld [vmem:[#allocation21 + $0x7ec] ss:$24 sps:$4 sm:$0xff]   ;;  %v7545_v6 = vld [vmem:[#allocation21 + $0x7e0] ss:$24 sps:$4 sm:$0xff]  }
 0x5e2   :  { %v7548_v14 = vld [vmem:[#allocation21 + $0x7e8] ss:$24 sps:$4 sm:$0xff]  }
 0x5e4   :  { %5919 = vmatpush1.bf16.msra.mxu1 %v7473_v33  ;;  %6083 = vmatpush1.bf16.msra.mxu0 %v7476_v15  ;;  %v7553_v33 = vld [vmem:[#allocation21 + $0x814] ss:$24 sps:$4 sm:$0xff]  }
 0x5e5   :  { %5920 = vmatprep.subr.bf16.mxu1 %v7481_v39  ;;  %6084 = vmatprep.subr.bf16.mxu0 %v7484_v16  ;;  %v7556_v15 = vld [vmem:[#allocation21 + $0x81c] ss:$24 sps:$4 sm:$0xff]   ;;  %v7551_v39 = vld [vmem:[#allocation21 + $0x810] ss:$24 sps:$4 sm:$0xff]  }
 0x5e6   :  { %v7554_v16 = vld [vmem:[#allocation21 + $0x818] ss:$24 sps:$4 sm:$0xff]  }
 0x5e8   :  { %5921 = vmatpush1.bf16.msra.mxu1 %v7479_v17  ;;  %6085 = vmatpush1.bf16.msra.mxu0 %v7482_v18  ;;  %v7559_v17 = vld [vmem:[#allocation21 + $0x844] ss:$24 sps:$4 sm:$0xff]  }
 0x5e9   :  { %5931 = vmatprep.subr.bf16.mxu1 %v7487_v28  ;;  %6095 = vmatprep.subr.bf16.mxu0 %v7490_v22  ;;  %v7562_v18 = vld [vmem:[#allocation21 + $0x84c] ss:$24 sps:$4 sm:$0xff]   ;;  %v7557_v28 = vld [vmem:[#allocation21 + $0x840] ss:$24 sps:$4 sm:$0xff]  }
 0x5ea   :  { %v7560_v22 = vld [vmem:[#allocation21 + $0x848] ss:$24 sps:$4 sm:$0xff]  }
 0x5eb   :  { %5923 = vmatmul.mubr.bf16.vlgmr.msra.gmra.mrb[8].mxu1 %v8828_v26  ;;  %6087 = vmatmul.mubr.bf16.vlgmr.msra.gmra.mrb[24].mxu0 %v8828_v26 }
 0x5ec   :  { %5932 = vmatpush1.bf16.msra.mxu1 %v7485_v44  ;;  %5963 = vmatprep.mubr.bf16.mxu1 %v8832_v35  ;;  %v7565_v44 = vld [vmem:[#allocation21 + $0x874] ss:$24 sps:$4 sm:$0xff]  }
 0x5ed   :  { %6096 = vmatpush1.bf16.msra.mxu0 %v7488_v29  ;;  %6127 = vmatprep.mubr.bf16.mxu0 %v8832_v35  ;;  %v7568_v29 = vld [vmem:[#allocation21 + $0x87c] ss:$24 sps:$4 sm:$0xff]  }
 0x5ee   :  { %5933 = vmatprep.subr.bf16.mxu1 %v7493_v37  ;;  %6097 = vmatprep.subr.bf16.mxu0 %v7496_v10  ;;  %v7563_v37 = vld [vmem:[#allocation21 + $0x870] ss:$24 sps:$4 sm:$0xff]  }
 0x5ef   :  { %v7566_v10 = vld [vmem:[#allocation21 + $0x878] ss:$24 sps:$4 sm:$0xff]  }
 0x5f0   :  { %5934 = vmatpush1.bf16.msra.mxu1 %v7491_v42  ;;  %v7571_v42 = vld [vmem:[#allocation21 + $0x8a4] ss:$24 sps:$4 sm:$0xff]  }
 0x5f1   :  { %6098 = vmatpush1.bf16.msra.mxu0 %v7494_v31  ;;  %5935 = vmatprep.subr.bf16.mxu1 %v7499_v20  ;;  %v7574_v31 = vld [vmem:[#allocation21 + $0x8ac] ss:$24 sps:$4 sm:$0xff]   ;;  %v7569_v20 = vld [vmem:[#allocation21 + $0x8a0] ss:$24 sps:$4 sm:$0xff]  }
 0x5f2   :  { %6099 = vmatprep.subr.bf16.mxu0 %v7502_v24  ;;  %v7572_v24 = vld [vmem:[#allocation21 + $0x8a8] ss:$24 sps:$4 sm:$0xff]  }
 0x5f4   :  { %5936 = vmatpush1.bf16.msra.mxu1 %v7497_v62  ;;  %v7577_v62 = vld [vmem:[#allocation21 + $0x8d4] ss:$24 sps:$4 sm:$0xff]  }
 0x5f5   :  { %6100 = vmatpush1.bf16.msra.mxu0 %v7500_v53  ;;  %5937 = vmatprep.subr.bf16.mxu1 %v7505_v0  ;;  %v7580_v53 = vld [vmem:[#allocation21 + $0x8dc] ss:$24 sps:$4 sm:$0xff]   ;;  %v7575_v0 = vld [vmem:[#allocation21 + $0x8d0] ss:$24 sps:$4 sm:$0xff]  }
 0x5f6   :  { %6101 = vmatprep.subr.bf16.mxu0 %v7508_v11  ;;  %v7578_v11 = vld [vmem:[#allocation21 + $0x8d8] ss:$24 sps:$4 sm:$0xff]  }
 0x5f8   :  { %5938 = vmatpush1.bf16.msra.mxu1 %v7503_v4  ;;  %v7583_v4 = vld [vmem:[#allocation21 + $0x904] ss:$24 sps:$4 sm:$0xff]  }
 0x5f9   :  { %6102 = vmatpush1.bf16.msra.mxu0 %v7506_v43  ;;  %5939 = vmatprep.subr.bf16.mxu1 %v7511_v19  ;;  %v7586_v43 = vld [vmem:[#allocation21 + $0x90c] ss:$24 sps:$4 sm:$0xff]   ;;  %v7581_v19 = vld [vmem:[#allocation21 + $0x900] ss:$24 sps:$4 sm:$0xff]  }
 0x5fa   :  { %6103 = vmatprep.subr.bf16.mxu0 %v7514_v45  ;;  %v8840_v45 = vpack.c.bf16 %v8808_v63, %v8808_v63  ;;  %v7590_v63 = vld [vmem:[#allocation21 + $0x938] ss:$24 sps:$4 sm:$0xff]  }
 0x5fc   :  { %5940 = vmatpush1.bf16.msra.mxu1 %v7509_v27  ;;  %v7584_v27 = vld [vmem:[#allocation21 + $0x908] ss:$24 sps:$4 sm:$0xff]  }
 0x5fd   :  { %6104 = vmatpush1.bf16.msra.mxu0 %v7512_v23  ;;  %5941 = vmatprep.subr.bf16.mxu1 %v7517_v13  ;;  %v7589_v23 = vld [vmem:[#allocation21 + $0x934] ss:$24 sps:$4 sm:$0xff]   ;;  %v8845_v13 = vpack.c.bf16 %v8810_v8, %v8810_v8  ;;  %v7596_v8 = vld [vmem:[#allocation21 + $0x968] ss:$24 sps:$4 sm:$0xff]  }
 0x5fe   :  { %6105 = vmatprep.subr.bf16.mxu0 %v7520_v40  ;;  %v7592_v40 = vld [vmem:[#allocation21 + $0x93c] ss:$24 sps:$4 sm:$0xff]  }
 0x600   :  { %5942 = vmatpush1.bf16.msra.mxu1 %v7515_v5  ;;  %v7587_v5 = vld [vmem:[#allocation21 + $0x930] ss:$24 sps:$4 sm:$0xff]  }
 0x601   :  { %6106 = vmatpush1.bf16.msra.mxu0 %v7518_v41  ;;  %5943 = vmatprep.subr.bf16.mxu1 %v7523_v34  ;;  %v7595_v41 = vld [vmem:[#allocation21 + $0x964] ss:$24 sps:$4 sm:$0xff]  }
 0x602   :  { %6107 = vmatprep.subr.bf16.mxu0 %v7526_v36  ;;  %v7598_v34 = vld [vmem:[#allocation21 + $0x96c] ss:$24 sps:$4 sm:$0xff]   ;;  %v7593_v36 = vld [vmem:[#allocation21 + $0x960] ss:$24 sps:$4 sm:$0xff]  }
 0x604   :  { %5944 = vmatpush1.bf16.msra.mxu1 %v7521_v38  ;;  %v7601_v38 = vld [vmem:[#allocation21 + $0x994] ss:$24 sps:$4 sm:$0xff]  }
 0x605   :  { %6108 = vmatpush1.bf16.msra.mxu0 %v7524_v48  ;;  %5945 = vmatprep.subr.bf16.mxu1 %v7529_v30  ;;  %v7604_v48 = vld [vmem:[#allocation21 + $0x99c] ss:$24 sps:$4 sm:$0xff]   ;;  %v7599_v30 = vld [vmem:[#allocation21 + $0x990] ss:$24 sps:$4 sm:$0xff]  }
 0x606   :  { %6109 = vmatprep.subr.bf16.mxu0 %v7532_v25  ;;  %v7602_v25 = vld [vmem:[#allocation21 + $0x998] ss:$24 sps:$4 sm:$0xff]  }
 0x608   :  { %5946 = vmatpush1.bf16.msra.mxu1 %v7527_v49  ;;  %v7607_v49 = vld [vmem:[#allocation21 + $0x9c4] ss:$24 sps:$4 sm:$0xff]  }
 0x609   :  { %6110 = vmatpush1.bf16.msra.mxu0 %v7530_v50  ;;  %5947 = vmatprep.subr.bf16.mxu1 %v7535_v47  ;;  %v7610_v50 = vld [vmem:[#allocation21 + $0x9cc] ss:$24 sps:$4 sm:$0xff]   ;;  %v7605_v47 = vld [vmem:[#allocation21 + $0x9c0] ss:$24 sps:$4 sm:$0xff]  }
 0x60a   :  { %6111 = vmatprep.subr.bf16.mxu0 %v7538_v51  ;;  %v7608_v51 = vld [vmem:[#allocation21 + $0x9c8] ss:$24 sps:$4 sm:$0xff]  }
 0x60c   :  { %5948 = vmatpush1.bf16.msra.mxu1 %v7533_v60  ;;  %v7613_v60 = vld [vmem:[#allocation21 + $0x9f4] ss:$24 sps:$4 sm:$0xff]  }
 0x60d   :  { %6112 = vmatpush1.bf16.msra.mxu0 %v7536_v58  ;;  %5949 = vmatprep.subr.bf16.mxu1 %v7541_v32  ;;  %v7616_v58 = vld [vmem:[#allocation21 + $0x9fc] ss:$24 sps:$4 sm:$0xff]   ;;  %v7611_v32 = vld [vmem:[#allocation21 + $0x9f0] ss:$24 sps:$4 sm:$0xff]  }
 0x60e   :  { %6113 = vmatprep.subr.bf16.mxu0 %v7544_v61  ;;  %v7614_v61 = vld [vmem:[#allocation21 + $0x9f8] ss:$24 sps:$4 sm:$0xff]  }
 0x610   :  { %5950 = vmatpush1.bf16.msra.mxu1 %v7539_v1  ;;  %v7619_v1 = vld [vmem:[#allocation21 + $0xa24] ss:$24 sps:$4 sm:$0xff]  }
 0x611   :  { %6114 = vmatpush1.bf16.msra.mxu0 %v7542_v2  ;;  %5951 = vmatprep.subr.bf16.mxu1 %v7547_v59  ;;  %v7622_v2 = vld [vmem:[#allocation21 + $0xa2c] ss:$24 sps:$4 sm:$0xff]   ;;  %v7617_v59 = vld [vmem:[#allocation21 + $0xa20] ss:$24 sps:$4 sm:$0xff]  }
 0x612   :  { %6115 = vmatprep.subr.bf16.mxu0 %v7550_v7  ;;  %v7620_v7 = vld [vmem:[#allocation21 + $0xa28] ss:$24 sps:$4 sm:$0xff]  }
 0x614   :  { %5952 = vmatpush1.bf16.msra.mxu1 %v7545_v6  ;;  %v7625_v6 = vld [vmem:[#allocation21 + $0xa54] ss:$24 sps:$4 sm:$0xff]  }
 0x615   :  { %6116 = vmatpush1.bf16.msra.mxu0 %v7548_v14  ;;  %5953 = vmatprep.subr.bf16.mxu1 %v7553_v33  ;;  %v7628_v14 = vld [vmem:[#allocation21 + $0xa5c] ss:$24 sps:$4 sm:$0xff]   ;;  %v7623_v33 = vld [vmem:[#allocation21 + $0xa50] ss:$24 sps:$4 sm:$0xff]  }
 0x616   :  { %6117 = vmatprep.subr.bf16.mxu0 %v7556_v15  ;;  %v7626_v15 = vld [vmem:[#allocation21 + $0xa58] ss:$24 sps:$4 sm:$0xff]  }
 0x618   :  { %5954 = vmatpush1.bf16.msra.mxu1 %v7551_v39  ;;  %v7631_v39 = vld [vmem:[#allocation21 + $0xa84] ss:$24 sps:$4 sm:$0xff]  }
 0x619   :  { %6118 = vmatpush1.bf16.msra.mxu0 %v7554_v16  ;;  %5955 = vmatprep.subr.bf16.mxu1 %v7559_v17  ;;  %v7634_v16 = vld [vmem:[#allocation21 + $0xa8c] ss:$24 sps:$4 sm:$0xff]   ;;  %v7629_v17 = vld [vmem:[#allocation21 + $0xa80] ss:$24 sps:$4 sm:$0xff]  }
 0x61a   :  { %6119 = vmatprep.subr.bf16.mxu0 %v7562_v18  ;;  %v7632_v18 = vld [vmem:[#allocation21 + $0xa88] ss:$24 sps:$4 sm:$0xff]  }
 0x61c   :  { %5956 = vmatpush1.bf16.msra.mxu1 %v7557_v28  ;;  %v7637_v28 = vld [vmem:[#allocation21 + $0xab4] ss:$24 sps:$4 sm:$0xff]  }
 0x61d   :  { %6120 = vmatpush1.bf16.msra.mxu0 %v7560_v22  ;;  %5957 = vmatprep.subr.bf16.mxu1 %v7565_v44  ;;  %v7640_v22 = vld [vmem:[#allocation21 + $0xabc] ss:$24 sps:$4 sm:$0xff]   ;;  %v7635_v44 = vld [vmem:[#allocation21 + $0xab0] ss:$24 sps:$4 sm:$0xff]  }
 0x61e   :  { %6121 = vmatprep.subr.bf16.mxu0 %v7568_v29  ;;  %v7638_v29 = vld [vmem:[#allocation21 + $0xab8] ss:$24 sps:$4 sm:$0xff]  }
 0x620   :  { %5958 = vmatpush1.bf16.msra.mxu1 %v7563_v37  ;;  %v7643_v37 = vld [vmem:[#allocation21 + $0xae4] ss:$24 sps:$4 sm:$0xff]  }
 0x621   :  { %6122 = vmatpush1.bf16.msra.mxu0 %v7566_v10  ;;  %5959 = vmatprep.subr.bf16.mxu1 %v7571_v42  ;;  %v7646_v10 = vld [vmem:[#allocation21 + $0xaec] ss:$24 sps:$4 sm:$0xff]   ;;  %v7641_v42 = vld [vmem:[#allocation21 + $0xae0] ss:$24 sps:$4 sm:$0xff]  }
 0x622   :  { %6123 = vmatprep.subr.bf16.mxu0 %v7574_v31  ;;  %v7644_v31 = vld [vmem:[#allocation21 + $0xae8] ss:$24 sps:$4 sm:$0xff]  }
 0x624   :  { %5960 = vmatpush1.bf16.msra.mxu1 %v7569_v20  ;;  %v7649_v20 = vld [vmem:[#allocation21 + $0xb14] ss:$24 sps:$4 sm:$0xff]  }
 0x625   :  { %6124 = vmatpush1.bf16.msra.mxu0 %v7572_v24  ;;  %5961 = vmatprep.subr.bf16.mxu1 %v7577_v62  ;;  %v7652_v24 = vld [vmem:[#allocation21 + $0xb1c] ss:$24 sps:$4 sm:$0xff]   ;;  %v7647_v62 = vld [vmem:[#allocation21 + $0xb10] ss:$24 sps:$4 sm:$0xff]  }
 0x626   :  { %6125 = vmatprep.subr.bf16.mxu0 %v7580_v53  ;;  %v7650_v53 = vld [vmem:[#allocation21 + $0xb18] ss:$24 sps:$4 sm:$0xff]  }
 0x628   :  { %5962 = vmatpush1.bf16.msra.mxu1 %v7575_v0  ;;  %v7655_v0 = vld [vmem:[#allocation21 + $0xb44] ss:$24 sps:$4 sm:$0xff]  }
 0x629   :  { %6126 = vmatpush1.bf16.msra.mxu0 %v7578_v11  ;;  %5972 = vmatprep.subr.bf16.mxu1 %v7583_v4  ;;  %v7658_v11 = vld [vmem:[#allocation21 + $0xb4c] ss:$24 sps:$4 sm:$0xff]   ;;  %v7653_v4 = vld [vmem:[#allocation21 + $0xb40] ss:$24 sps:$4 sm:$0xff]  }
 0x62a   :  { %6136 = vmatprep.subr.bf16.mxu0 %v7586_v43  ;;  %v7656_v43 = vld [vmem:[#allocation21 + $0xb48] ss:$24 sps:$4 sm:$0xff]  }
 0x62b   :  { %5964 = vmatmul.mubr.bf16.vlgmr.msra.gmra.mrb[8].mxu1 %v8840_v45 }
 0x62c   :  { %6128 = vmatmul.mubr.bf16.vlgmr.msra.gmra.mrb[24].mxu0 %v8840_v45  ;;  %5973 = vmatpush1.bf16.msra.mxu1 %v7581_v19  ;;  %v7661_v19 = vld [vmem:[#allocation21 + $0xb74] ss:$24 sps:$4 sm:$0xff]  }
 0x62d   :  { %6004 = vmatprep.mubr.bf16.mxu1 %v8845_v13  ;;  %6137 = vmatpush1.bf16.msra.mxu0 %v7584_v27  ;;  %v7664_v27 = vld [vmem:[#allocation21 + $0xb7c] ss:$24 sps:$4 sm:$0xff]  }
 0x62e   :  { %6168 = vmatprep.mubr.bf16.mxu0 %v8845_v13  ;;  %5974 = vmatprep.subr.bf16.mxu1 %v7589_v23  ;;  %v7659_v23 = vld [vmem:[#allocation21 + $0xb70] ss:$24 sps:$4 sm:$0xff]  }
 0x62f   :  { %6138 = vmatprep.subr.bf16.mxu0 %v7592_v40  ;;  %v7662_v40 = vld [vmem:[#allocation21 + $0xb78] ss:$24 sps:$4 sm:$0xff]  }
 0x630   :  { %5975 = vmatpush1.bf16.msra.mxu1 %v7587_v5  ;;  %v7667_v5 = vld [vmem:[#allocation21 + $0xba4] ss:$24 sps:$4 sm:$0xff]  }
 0x631   :  { %6139 = vmatpush1.bf16.msra.mxu0 %v7590_v63  ;;  %5976 = vmatprep.subr.bf16.mxu1 %v7595_v41  ;;  %v7670_v63 = vld [vmem:[#allocation21 + $0xbac] ss:$24 sps:$4 sm:$0xff]   ;;  %v7665_v41 = vld [vmem:[#allocation21 + $0xba0] ss:$24 sps:$4 sm:$0xff]  }
 0x632   :  { %6140 = vmatprep.subr.bf16.mxu0 %v7598_v34  ;;  %v7668_v34 = vld [vmem:[#allocation21 + $0xba8] ss:$24 sps:$4 sm:$0xff]  }
 0x634   :  { %5977 = vmatpush1.bf16.msra.mxu1 %v7593_v36  ;;  %v7673_v36 = vld [vmem:[#allocation21 + $0xbd4] ss:$24 sps:$4 sm:$0xff]  }
 0x635   :  { %6141 = vmatpush1.bf16.msra.mxu0 %v7596_v8  ;;  %5978 = vmatprep.subr.bf16.mxu1 %v7601_v38  ;;  %v7676_v8 = vld [vmem:[#allocation21 + $0xbdc] ss:$24 sps:$4 sm:$0xff]   ;;  %v7671_v38 = vld [vmem:[#allocation21 + $0xbd0] ss:$24 sps:$4 sm:$0xff]  }
 0x636   :  { %6142 = vmatprep.subr.bf16.mxu0 %v7604_v48  ;;  %v7674_v48 = vld [vmem:[#allocation21 + $0xbd8] ss:$24 sps:$4 sm:$0xff]  }
 0x638   :  { %5979 = vmatpush1.bf16.msra.mxu1 %v7599_v30  ;;  %v7679_v30 = vld [vmem:[#allocation21 + $0x14] ss:$24 sps:$4 sm:$0xff]  }
 0x639   :  { %6143 = vmatpush1.bf16.msra.mxu0 %v7602_v25  ;;  %5980 = vmatprep.subr.bf16.mxu1 %v7607_v49  ;;  %v7677_v25 = vld [vmem:[#allocation21 + $0x10] ss:$24 sps:$4 sm:$0xff]   ;;  %v8852_v49 = vpack.c.bf16 %v8812_v9, %v8812_v9  ;;  %v7691_v9 = vld [vmem:[#allocation21 + $0xd4] ss:$24 sps:$4 sm:$0xff]  }
 0x63a   :  { %6144 = vmatprep.subr.bf16.mxu0 %v7610_v50  ;;  %v7682_v50 = vld [vmem:[#allocation21 + $0x44] ss:$24 sps:$4 sm:$0xff]  }
 0x63c   :  { %5981 = vmatpush1.bf16.msra.mxu1 %v7605_v47  ;;  %v7680_v47 = vld [vmem:[#allocation21 + $0x40] ss:$24 sps:$4 sm:$0xff]  }
 0x63d   :  { %6145 = vmatpush1.bf16.msra.mxu0 %v7608_v51  ;;  %5982 = vmatprep.subr.bf16.mxu1 %v7613_v60  ;;  %v7685_v51 = vld [vmem:[#allocation21 + $0x74] ss:$24 sps:$4 sm:$0xff]   ;;  %v7683_v60 = vld [vmem:[#allocation21 + $0x70] ss:$24 sps:$4 sm:$0xff]  }
 0x63e   :  { %6146 = vmatprep.subr.bf16.mxu0 %v7616_v58  ;;  %v7688_v58 = vld [vmem:[#allocation21 + $0xa4] ss:$24 sps:$4 sm:$0xff]  }
 0x640   :  { %5983 = vmatpush1.bf16.msra.mxu1 %v7611_v32  ;;  %v7686_v32 = vld [vmem:[#allocation21 + $0xa0] ss:$24 sps:$4 sm:$0xff]  }
 0x641   :  { %6147 = vmatpush1.bf16.msra.mxu0 %v7614_v61  ;;  %5984 = vmatprep.subr.bf16.mxu1 %v7619_v1  ;;  %v7689_v61 = vld [vmem:[#allocation21 + $0xd0] ss:$24 sps:$4 sm:$0xff]   ;;  %v7694_v1 = vld [vmem:[#allocation21 + $0x104] ss:$24 sps:$4 sm:$0xff]  }
 0x642   :  { %6148 = vmatprep.subr.bf16.mxu0 %v7622_v2  ;;  %v7692_v2 = vld [vmem:[#allocation21 + $0x100] ss:$24 sps:$4 sm:$0xff]  }
 0x644   :  { %5985 = vmatpush1.bf16.msra.mxu1 %v7617_v59  ;;  %v7697_v59 = vld [vmem:[#allocation21 + $0x134] ss:$24 sps:$4 sm:$0xff]  }
 0x645   :  { %6149 = vmatpush1.bf16.msra.mxu0 %v7620_v7  ;;  %5986 = vmatprep.subr.bf16.mxu1 %v7625_v6  ;;  %v7700_v7 = vld [vmem:[#allocation21 + $0x164] ss:$24 sps:$4 sm:$0xff]   ;;  %v7698_v6 = vld [vmem:[#allocation21 + $0x160] ss:$24 sps:$4 sm:$0xff]  }
 0x646   :  { %6150 = vmatprep.subr.bf16.mxu0 %v7628_v14  ;;  %v7703_v14 = vld [vmem:[#allocation21 + $0x194] ss:$24 sps:$4 sm:$0xff]  }
 0x648   :  { %5987 = vmatpush1.bf16.msra.mxu1 %v7623_v33  ;;  %v7701_v33 = vld [vmem:[#allocation21 + $0x190] ss:$24 sps:$4 sm:$0xff]  }
 0x649   :  { %6151 = vmatpush1.bf16.msra.mxu0 %v7626_v15  ;;  %5988 = vmatprep.subr.bf16.mxu1 %v7631_v39  ;;  %v7706_v15 = vld [vmem:[#allocation21 + $0x1c4] ss:$24 sps:$4 sm:$0xff]   ;;  %v7704_v39 = vld [vmem:[#allocation21 + $0x1c0] ss:$24 sps:$4 sm:$0xff]  }
 0x64a   :  { %6152 = vmatprep.subr.bf16.mxu0 %v7634_v16  ;;  %v7709_v16 = vld [vmem:[#allocation21 + $0x1f4] ss:$24 sps:$4 sm:$0xff]  }
 0x64c   :  { %5989 = vmatpush1.bf16.msra.mxu1 %v7629_v17  ;;  %v7707_v17 = vld [vmem:[#allocation21 + $0x1f0] ss:$24 sps:$4 sm:$0xff]  }
 0x64d   :  { %6153 = vmatpush1.bf16.msra.mxu0 %v7632_v18  ;;  %5990 = vmatprep.subr.bf16.mxu1 %v7637_v28  ;;  %v7712_v18 = vld [vmem:[#allocation21 + $0x224] ss:$24 sps:$4 sm:$0xff]   ;;  %v7710_v28 = vld [vmem:[#allocation21 + $0x220] ss:$24 sps:$4 sm:$0xff]  }
 0x64e   :  { %6154 = vmatprep.subr.bf16.mxu0 %v7640_v22  ;;  %v7715_v22 = vld [vmem:[#allocation21 + $0x254] ss:$24 sps:$4 sm:$0xff]  }
 0x650   :  { %5991 = vmatpush1.bf16.msra.mxu1 %v7635_v44  ;;  %v7713_v44 = vld [vmem:[#allocation21 + $0x250] ss:$24 sps:$4 sm:$0xff]  }
 0x651   :  { %6155 = vmatpush1.bf16.msra.mxu0 %v7638_v29  ;;  %5992 = vmatprep.subr.bf16.mxu1 %v7643_v37  ;;  %v7718_v29 = vld [vmem:[#allocation21 + $0x284] ss:$24 sps:$4 sm:$0xff]   ;;  %v7716_v37 = vld [vmem:[#allocation21 + $0x280] ss:$24 sps:$4 sm:$0xff]  }
 0x652   :  { %6156 = vmatprep.subr.bf16.mxu0 %v7646_v10  ;;  %v7721_v10 = vld [vmem:[#allocation21 + $0x2b4] ss:$24 sps:$4 sm:$0xff]  }
 0x654   :  { %5993 = vmatpush1.bf16.msra.mxu1 %v7641_v42  ;;  %v7719_v42 = vld [vmem:[#allocation21 + $0x2b0] ss:$24 sps:$4 sm:$0xff]  }
 0x655   :  { %6157 = vmatpush1.bf16.msra.mxu0 %v7644_v31  ;;  %5994 = vmatprep.subr.bf16.mxu1 %v7649_v20  ;;  %v7724_v31 = vld [vmem:[#allocation21 + $0x2e4] ss:$24 sps:$4 sm:$0xff]   ;;  %v7722_v20 = vld [vmem:[#allocation21 + $0x2e0] ss:$24 sps:$4 sm:$0xff]  }
 0x656   :  { %6158 = vmatprep.subr.bf16.mxu0 %v7652_v24  ;;  %v7727_v24 = vld [vmem:[#allocation21 + $0x314] ss:$24 sps:$4 sm:$0xff]  }
 0x658   :  { %5995 = vmatpush1.bf16.msra.mxu1 %v7647_v62  ;;  %v7725_v62 = vld [vmem:[#allocation21 + $0x310] ss:$24 sps:$4 sm:$0xff]  }
 0x659   :  { %6159 = vmatpush1.bf16.msra.mxu0 %v7650_v53  ;;  %5996 = vmatprep.subr.bf16.mxu1 %v7655_v0  ;;  %v7730_v53 = vld [vmem:[#allocation21 + $0x344] ss:$24 sps:$4 sm:$0xff]   ;;  %v7728_v0 = vld [vmem:[#allocation21 + $0x340] ss:$24 sps:$4 sm:$0xff]  }
 0x65a   :  { %6160 = vmatprep.subr.bf16.mxu0 %v7658_v11  ;;  %v7733_v11 = vld [vmem:[#allocation21 + $0x374] ss:$24 sps:$4 sm:$0xff]  }
 0x65c   :  { %5997 = vmatpush1.bf16.msra.mxu1 %v7653_v4  ;;  %v7731_v4 = vld [vmem:[#allocation21 + $0x370] ss:$24 sps:$4 sm:$0xff]  }
 0x65d   :  { %6161 = vmatpush1.bf16.msra.mxu0 %v7656_v43  ;;  %5998 = vmatprep.subr.bf16.mxu1 %v7661_v19  ;;  %v7736_v43 = vld [vmem:[#allocation21 + $0x3a4] ss:$24 sps:$4 sm:$0xff]   ;;  %v7734_v19 = vld [vmem:[#allocation21 + $0x3a0] ss:$24 sps:$4 sm:$0xff]  }
 0x65e   :  { %6162 = vmatprep.subr.bf16.mxu0 %v7664_v27  ;;  %v7739_v27 = vld [vmem:[#allocation21 + $0x3d4] ss:$24 sps:$4 sm:$0xff]  }
 0x660   :  { %5999 = vmatpush1.bf16.msra.mxu1 %v7659_v23  ;;  %v7737_v23 = vld [vmem:[#allocation21 + $0x3d0] ss:$24 sps:$4 sm:$0xff]  }
 0x661   :  { %6163 = vmatpush1.bf16.msra.mxu0 %v7662_v40  ;;  %6000 = vmatprep.subr.bf16.mxu1 %v7667_v5  ;;  %v7742_v40 = vld [vmem:[#allocation21 + $0x404] ss:$24 sps:$4 sm:$0xff]   ;;  %v7745_v5 = vld [vmem:[#allocation21 + $0x434] ss:$24 sps:$4 sm:$0xff]  }
 0x662   :  { %6164 = vmatprep.subr.bf16.mxu0 %v7670_v63  ;;  %v7748_v63 = vld [vmem:[#allocation21 + $0x464] ss:$24 sps:$4 sm:$0xff]  }
 0x664   :  { %6001 = vmatpush1.bf16.msra.mxu1 %v7665_v41  ;;  %v7746_v41 = vld [vmem:[#allocation21 + $0x460] ss:$24 sps:$4 sm:$0xff]  }
 0x665   :  { %6165 = vmatpush1.bf16.msra.mxu0 %v7668_v34  ;;  %6002 = vmatprep.subr.bf16.mxu1 %v7673_v36  ;;  %v7751_v34 = vld [vmem:[#allocation21 + $0x494] ss:$24 sps:$4 sm:$0xff]   ;;  %v7749_v36 = vld [vmem:[#allocation21 + $0x490] ss:$24 sps:$4 sm:$0xff]  }
 0x666   :  { %6166 = vmatprep.subr.bf16.mxu0 %v7676_v8  ;;  %v7754_v8 = vld [vmem:[#allocation21 + $0x4c4] ss:$24 sps:$4 sm:$0xff]  }
 0x668   :  { %6003 = vmatpush1.bf16.msra.mxu1 %v7671_v38  ;;  %v7752_v38 = vld [vmem:[#allocation21 + $0x4c0] ss:$24 sps:$4 sm:$0xff]  }
 0x669   :  { %6167 = vmatpush1.bf16.msra.mxu0 %v7674_v48  ;;  %6177 = vmatprep.subr.bf16.mxu1 %v7679_v30  ;;  %v7757_v48 = vld [vmem:[#allocation21 + $0x4f4] ss:$24 sps:$4 sm:$0xff]   ;;  %v7755_v30 = vld [vmem:[#allocation21 + $0x4f0] ss:$24 sps:$4 sm:$0xff]  }
 0x66b   :  { %6005 = vmatmul.mubr.bf16.vlgmr.msra.gmra.mrb[8].mxu1 %v8852_v49 }
 0x66c   :  { %6169 = vmatmul.mubr.bf16.vlgmr.msra.gmra.mrb[24].mxu0 %v8852_v49  ;;  %6178 = vmatpush1.bf16.msra.mxu1 %v7677_v25  ;;  %v7760_v25 = vld [vmem:[#allocation21 + $0x524] ss:$24 sps:$4 sm:$0xff]  }
 0x66d   :  { %6209 = vmatprep.mubr.bf16.mxu1 %v8814_v12  ;;  %6179 = vmatprep.subr.bf16.mxu1 %v7682_v50  ;;  %v7695_v12 = vld [vmem:[#allocation21 + $0x130] ss:$24 sps:$4 sm:$0xff]   ;;  %v7758_v50 = vld [vmem:[#allocation21 + $0x520] ss:$24 sps:$4 sm:$0xff]  }
 0x670   :  { %6180 = vmatpush1.bf16.msra.mxu1 %v7680_v47  ;;  %v7763_v47 = vld [vmem:[#allocation21 + $0x554] ss:$24 sps:$4 sm:$0xff]  }
 0x671   :  { %6181 = vmatprep.subr.bf16.mxu1 %v7685_v51  ;;  %v7761_v51 = vld [vmem:[#allocation21 + $0x550] ss:$24 sps:$4 sm:$0xff]  }
 0x674   :  { %6182 = vmatpush1.bf16.msra.mxu1 %v7683_v60  ;;  %v7766_v60 = vld [vmem:[#allocation21 + $0x584] ss:$24 sps:$4 sm:$0xff]  }
 0x675   :  { %6183 = vmatprep.subr.bf16.mxu1 %v7688_v58  ;;  %v7764_v58 = vld [vmem:[#allocation21 + $0x580] ss:$24 sps:$4 sm:$0xff]  }
 0x678   :  { %6184 = vmatpush1.bf16.msra.mxu1 %v7686_v32  ;;  %v7769_v32 = vld [vmem:[#allocation21 + $0x5b4] ss:$24 sps:$4 sm:$0xff]  }
 0x679   :  { %6185 = vmatprep.subr.bf16.mxu1 %v7691_v9  ;;  %v7767_v9 = vld [vmem:[#allocation21 + $0x5b0] ss:$24 sps:$4 sm:$0xff]  }
 0x67c   :  { %6186 = vmatpush1.bf16.msra.mxu1 %v7689_v61  ;;  %v7772_v61 = vld [vmem:[#allocation21 + $0x5e4] ss:$24 sps:$4 sm:$0xff]  }
 0x67d   :  { %6187 = vmatprep.subr.bf16.mxu1 %v7694_v1  ;;  %v7770_v1 = vld [vmem:[#allocation21 + $0x5e0] ss:$24 sps:$4 sm:$0xff]  }
 0x680   :  { %6188 = vmatpush1.bf16.msra.mxu1 %v7692_v2  ;;  %v7775_v2 = vld [vmem:[#allocation21 + $0x614] ss:$24 sps:$4 sm:$0xff]  }
 0x681   :  { %6189 = vmatprep.subr.bf16.mxu1 %v7697_v59  ;;  %v7773_v59 = vld [vmem:[#allocation21 + $0x610] ss:$24 sps:$4 sm:$0xff]  }
 0x684   :  { %6190 = vmatpush1.bf16.msra.mxu1 %v7695_v12  ;;  %v7778_v12 = vld [vmem:[#allocation21 + $0x644] ss:$24 sps:$4 sm:$0xff]  }
 0x685   :  { %6191 = vmatprep.subr.bf16.mxu1 %v7700_v7  ;;  %v7776_v7 = vld [vmem:[#allocation21 + $0x640] ss:$24 sps:$4 sm:$0xff]  }
 0x688   :  { %6192 = vmatpush1.bf16.msra.mxu1 %v7698_v6  ;;  %v7781_v6 = vld [vmem:[#allocation21 + $0x674] ss:$24 sps:$4 sm:$0xff]  }
 0x689   :  { %6193 = vmatprep.subr.bf16.mxu1 %v7703_v14  ;;  %v7779_v14 = vld [vmem:[#allocation21 + $0x670] ss:$24 sps:$4 sm:$0xff]  }
 0x68c   :  { %6194 = vmatpush1.bf16.msra.mxu1 %v7701_v33  ;;  %v7784_v33 = vld [vmem:[#allocation21 + $0x6a4] ss:$24 sps:$4 sm:$0xff]  }
 0x68d   :  { %6195 = vmatprep.subr.bf16.mxu1 %v7706_v15  ;;  %v7782_v15 = vld [vmem:[#allocation21 + $0x6a0] ss:$24 sps:$4 sm:$0xff]  }
 0x690   :  { %6196 = vmatpush1.bf16.msra.mxu1 %v7704_v39  ;;  %v7787_v39 = vld [vmem:[#allocation21 + $0x6d4] ss:$24 sps:$4 sm:$0xff]  }
 0x691   :  { %6197 = vmatprep.subr.bf16.mxu1 %v7709_v16  ;;  %v7785_v16 = vld [vmem:[#allocation21 + $0x6d0] ss:$24 sps:$4 sm:$0xff]  }
 0x694   :  { %6198 = vmatpush1.bf16.msra.mxu1 %v7707_v17  ;;  %v7790_v17 = vld [vmem:[#allocation21 + $0x704] ss:$24 sps:$4 sm:$0xff]  }
 0x695   :  { %6199 = vmatprep.subr.bf16.mxu1 %v7712_v18  ;;  %v7793_v18 = vld [vmem:[#allocation21 + $0x734] ss:$24 sps:$4 sm:$0xff]  }
 0x698   :  { %6200 = vmatpush1.bf16.msra.mxu1 %v7710_v28  ;;  %v7796_v28 = vld [vmem:[#allocation21 + $0x764] ss:$24 sps:$4 sm:$0xff]  }
 0x699   :  { %6201 = vmatprep.subr.bf16.mxu1 %v7715_v22  ;;  %v7794_v22 = vld [vmem:[#allocation21 + $0x760] ss:$24 sps:$4 sm:$0xff]  }
 0x69c   :  { %6202 = vmatpush1.bf16.msra.mxu1 %v7713_v44  ;;  %v7799_v44 = vld [vmem:[#allocation21 + $0x794] ss:$24 sps:$4 sm:$0xff]  }
 0x69d   :  { %6203 = vmatprep.subr.bf16.mxu1 %v7718_v29  ;;  %v7797_v29 = vld [vmem:[#allocation21 + $0x790] ss:$24 sps:$4 sm:$0xff]  }
 0x6a0   :  { %6204 = vmatpush1.bf16.msra.mxu1 %v7716_v37  ;;  %v7802_v37 = vld [vmem:[#allocation21 + $0x7c4] ss:$24 sps:$4 sm:$0xff]  }
 0x6a1   :  { %6205 = vmatprep.subr.bf16.mxu1 %v7721_v10  ;;  %v7800_v10 = vld [vmem:[#allocation21 + $0x7c0] ss:$24 sps:$4 sm:$0xff]  }
 0x6a4   :  { %6206 = vmatpush1.bf16.msra.mxu1 %v7719_v42  ;;  %v7805_v42 = vld [vmem:[#allocation21 + $0x7f4] ss:$24 sps:$4 sm:$0xff]  }
 0x6a5   :  { %6207 = vmatprep.subr.bf16.mxu1 %v7724_v31  ;;  %v7803_v31 = vld [vmem:[#allocation21 + $0x7f0] ss:$24 sps:$4 sm:$0xff]  }
 0x6a8   :  { %6208 = vmatpush1.bf16.msra.mxu1 %v7722_v20  ;;  %v7808_v20 = vld [vmem:[#allocation21 + $0x824] ss:$24 sps:$4 sm:$0xff]  }
 0x6a9   :  { %6218 = vmatprep.subr.bf16.mxu1 %v7727_v24  ;;  %v7806_v24 = vld [vmem:[#allocation21 + $0x820] ss:$24 sps:$4 sm:$0xff]  }
 0x6ab   :  { %6210 = vmatmul.mubr.bf16.vlgmr.msra.gmra.mrb[12].mxu1 %v8816_v46  ;;  %v7740_v46 = vld [vmem:[#allocation21 + $0x400] ss:$24 sps:$4 sm:$0xff]  }
 0x6ac   :  { %6219 = vmatpush1.bf16.msra.mxu1 %v7725_v62  ;;  %6250 = vmatprep.mubr.bf16.mxu1 %v8822_v3  ;;  %v7743_v3 = vld [vmem:[#allocation21 + $0x430] ss:$24 sps:$4 sm:$0xff]   ;;  %v7811_v62 = vld [vmem:[#allocation21 + $0x854] ss:$24 sps:$4 sm:$0xff]  }
 0x6ad   :  { %6220 = vmatprep.subr.bf16.mxu1 %v7730_v53  ;;  %v7809_v53 = vld [vmem:[#allocation21 + $0x850] ss:$24 sps:$4 sm:$0xff]  }
 0x6b0   :  { %6221 = vmatpush1.bf16.msra.mxu1 %v7728_v0  ;;  %v7814_v0 = vld [vmem:[#allocation21 + $0x884] ss:$24 sps:$4 sm:$0xff]  }
 0x6b1   :  { %6222 = vmatprep.subr.bf16.mxu1 %v7733_v11  ;;  %v7812_v11 = vld [vmem:[#allocation21 + $0x880] ss:$24 sps:$4 sm:$0xff]  }
 0x6b4   :  { %6223 = vmatpush1.bf16.msra.mxu1 %v7731_v4  ;;  %v7817_v4 = vld [vmem:[#allocation21 + $0x8b4] ss:$24 sps:$4 sm:$0xff]  }
 0x6b5   :  { %6224 = vmatprep.subr.bf16.mxu1 %v7736_v43  ;;  %v7815_v43 = vld [vmem:[#allocation21 + $0x8b0] ss:$24 sps:$4 sm:$0xff]  }
 0x6b8   :  { %6225 = vmatpush1.bf16.msra.mxu1 %v7734_v19  ;;  %v7820_v19 = vld [vmem:[#allocation21 + $0x8e4] ss:$24 sps:$4 sm:$0xff]  }
 0x6b9   :  { %6226 = vmatprep.subr.bf16.mxu1 %v7739_v27  ;;  %v7818_v27 = vld [vmem:[#allocation21 + $0x8e0] ss:$24 sps:$4 sm:$0xff]  }
 0x6bc   :  { %6227 = vmatpush1.bf16.msra.mxu1 %v7737_v23  ;;  %v7823_v23 = vld [vmem:[#allocation21 + $0x914] ss:$24 sps:$4 sm:$0xff]  }
 0x6bd   :  { %6228 = vmatprep.subr.bf16.mxu1 %v7742_v40  ;;  %v7821_v40 = vld [vmem:[#allocation21 + $0x910] ss:$24 sps:$4 sm:$0xff]  }
 0x6c0   :  { %6229 = vmatpush1.bf16.msra.mxu1 %v7740_v46  ;;  %v7826_v46 = vld [vmem:[#allocation21 + $0x944] ss:$24 sps:$4 sm:$0xff]  }
 0x6c1   :  { %6230 = vmatprep.subr.bf16.mxu1 %v7745_v5  ;;  %v7824_v5 = vld [vmem:[#allocation21 + $0x940] ss:$24 sps:$4 sm:$0xff]  }
 0x6c4   :  { %6231 = vmatpush1.bf16.msra.mxu1 %v7743_v3  ;;  %v7829_v3 = vld [vmem:[#allocation21 + $0x974] ss:$24 sps:$4 sm:$0xff]  }
 0x6c5   :  { %6232 = vmatprep.subr.bf16.mxu1 %v7748_v63  ;;  %v7827_v63 = vld [vmem:[#allocation21 + $0x970] ss:$24 sps:$4 sm:$0xff]  }
 0x6c8   :  { %6233 = vmatpush1.bf16.msra.mxu1 %v7746_v41  ;;  %v7832_v41 = vld [vmem:[#allocation21 + $0x9a4] ss:$24 sps:$4 sm:$0xff]  }
 0x6c9   :  { %6234 = vmatprep.subr.bf16.mxu1 %v7751_v34  ;;  %v7830_v34 = vld [vmem:[#allocation21 + $0x9a0] ss:$24 sps:$4 sm:$0xff]  }
 0x6cc   :  { %6235 = vmatpush1.bf16.msra.mxu1 %v7749_v36  ;;  %v7835_v36 = vld [vmem:[#allocation21 + $0x9d4] ss:$24 sps:$4 sm:$0xff]  }
 0x6cd   :  { %6236 = vmatprep.subr.bf16.mxu1 %v7754_v8  ;;  %v7833_v8 = vld [vmem:[#allocation21 + $0x9d0] ss:$24 sps:$4 sm:$0xff]  }
 0x6d0   :  { %6237 = vmatpush1.bf16.msra.mxu1 %v7752_v38  ;;  %v8863_v38 = vld [vmem:[#allocation22] sm:$0x3f] }
 0x6d1   :  { %6238 = vmatprep.subr.bf16.mxu1 %v7757_v48  ;;  %v3910_v48 = vrot.slane %v8863_v38, %v8579_v55 }
 0x6d4   :  { %6239 = vmatpush1.bf16.msra.mxu1 %v7755_v30  ;;  %v3906_v30 = vrot.slane %v8863_v38, %v8514_v56 }
 0x6d5   :  { %6240 = vmatprep.subr.bf16.mxu1 %v7760_v25  ;;  %v7836_v25 = vld [vmem:[#allocation21 + $0xa00] ss:$24 sps:$4 sm:$0xff]  }
 0x6d8   :  { %6241 = vmatpush1.bf16.msra.mxu1 %v7758_v50  ;;  %v3914_v50 = vrot.slane %v8863_v38, %v8582_v57 }
 0x6d9   :  { %6242 = vmatprep.subr.bf16.mxu1 %v7763_v47  ;;  %v7841_v47 = vld [vmem:[#allocation21 + $0xa34] ss:$24 sps:$4 sm:$0xff]  }
 0x6dc   :  { %6243 = vmatpush1.bf16.msra.mxu1 %v7761_v51 }
 0x6dd   :  { %6244 = vmatprep.subr.bf16.mxu1 %v7766_v60 }
 0x6e0   :  { %6245 = vmatpush1.bf16.msra.mxu1 %v7764_v58 }
 0x6e1   :  { %6246 = vmatprep.subr.bf16.mxu1 %v7769_v32 }
 0x6e4   :  { %6247 = vmatpush1.bf16.msra.mxu1 %v7767_v9 }
 0x6e5   :  { %6248 = vmatprep.subr.bf16.mxu1 %v7772_v61 }
 0x6e8   :  { %6249 = vmatpush1.bf16.msra.mxu1 %v7770_v1 }
 0x6e9   :  { %6259 = vmatprep.subr.bf16.mxu1 %v7775_v2  ;;  %v7839_v2 = vld [vmem:[#allocation21 + $0xa30] ss:$24 sps:$4 sm:$0xff]  }
 0x6eb   :  { %6251 = vmatmul.mubr.bf16.vlgmr.msra.gmra.mrb[12].mxu1 %v8828_v26  ;;  %v7788_v26 = vld [vmem:[#allocation21 + $0x700] ss:$24 sps:$4 sm:$0xff]  }
 0x6ec   :  { %6260 = vmatpush1.bf16.msra.mxu1 %v7773_v59  ;;  %6291 = vmatprep.mubr.bf16.mxu1 %v8832_v35  ;;  %v7791_v35 = vld [vmem:[#allocation21 + $0x730] ss:$24 sps:$4 sm:$0xff]  }
 0x6ed   :  { %6261 = vmatprep.subr.bf16.mxu1 %v7778_v12  ;;  %v7844_v12 = vld [vmem:[#allocation21 + $0xa64] ss:$24 sps:$4 sm:$0xff]  }
 0x6f0   :  { %6262 = vmatpush1.bf16.msra.mxu1 %v7776_v7  ;;  %v7842_v7 = vld [vmem:[#allocation21 + $0xa60] ss:$24 sps:$4 sm:$0xff]  }
 0x6f1   :  { %6263 = vmatprep.subr.bf16.mxu1 %v7781_v6  ;;  %v7847_v6 = vld [vmem:[#allocation21 + $0xa94] ss:$24 sps:$4 sm:$0xff]  }
 0x6f4   :  { %6264 = vmatpush1.bf16.msra.mxu1 %v7779_v14  ;;  %v7845_v14 = vld [vmem:[#allocation21 + $0xa90] ss:$24 sps:$4 sm:$0xff]  }
 0x6f5   :  { %6265 = vmatprep.subr.bf16.mxu1 %v7784_v33  ;;  %v7850_v33 = vld [vmem:[#allocation21 + $0xac4] ss:$24 sps:$4 sm:$0xff]  }
 0x6f8   :  { %6266 = vmatpush1.bf16.msra.mxu1 %v7782_v15 }
 0x6f9   :  { %6267 = vmatprep.subr.bf16.mxu1 %v7787_v39 }
 0x6fc   :  { %6268 = vmatpush1.bf16.msra.mxu1 %v7785_v16  ;;  %v7848_v16 = vld [vmem:[#allocation21 + $0xac0] ss:$24 sps:$4 sm:$0xff]  }
 0x6fd   :  { %6269 = vmatprep.subr.bf16.mxu1 %v7790_v17 }
 0x700   :  { %6270 = vmatpush1.bf16.msra.mxu1 %v7788_v26  ;;  %v7853_v26 = vld [vmem:[#allocation21 + $0xaf4] ss:$24 sps:$4 sm:$0xff]  }
 0x701   :  { %6271 = vmatprep.subr.bf16.mxu1 %v7793_v18 }
 0x704   :  { %6272 = vmatpush1.bf16.msra.mxu1 %v7791_v35  ;;  %v7851_v35 = vld [vmem:[#allocation21 + $0xaf0] ss:$24 sps:$4 sm:$0xff]  }
 0x705   :  { %6273 = vmatprep.subr.bf16.mxu1 %v7796_v28  ;;  %v7856_v28 = vld [vmem:[#allocation21 + $0xb24] ss:$24 sps:$4 sm:$0xff]  }
 0x708   :  { %6274 = vmatpush1.bf16.msra.mxu1 %v7794_v22  ;;  %v7854_v22 = vld [vmem:[#allocation21 + $0xb20] ss:$24 sps:$4 sm:$0xff]  }
 0x709   :  { %6275 = vmatprep.subr.bf16.mxu1 %v7799_v44  ;;  %v7859_v44 = vld [vmem:[#allocation21 + $0xb54] ss:$24 sps:$4 sm:$0xff]  }
 0x70c   :  { %6276 = vmatpush1.bf16.msra.mxu1 %v7797_v29  ;;  %v7857_v29 = vld [vmem:[#allocation21 + $0xb50] ss:$24 sps:$4 sm:$0xff]  }
 0x70d   :  { %6277 = vmatprep.subr.bf16.mxu1 %v7802_v37  ;;  %v7862_v37 = vld [vmem:[#allocation21 + $0xb84] ss:$24 sps:$4 sm:$0xff]  }
 0x710   :  { %6278 = vmatpush1.bf16.msra.mxu1 %v7800_v10  ;;  %v7860_v10 = vld [vmem:[#allocation21 + $0xb80] ss:$24 sps:$4 sm:$0xff]  }
 0x711   :  { %6279 = vmatprep.subr.bf16.mxu1 %v7805_v42  ;;  %v7865_v42 = vld [vmem:[#allocation21 + $0xbb4] ss:$24 sps:$4 sm:$0xff]  }
 0x714   :  { %6280 = vmatpush1.bf16.msra.mxu1 %v7803_v31  ;;  %v7863_v31 = vld [vmem:[#allocation21 + $0xbb0] ss:$24 sps:$4 sm:$0xff]  }
 0x715   :  { %6281 = vmatprep.subr.bf16.mxu1 %v7808_v20  ;;  %v7868_v20 = vld [vmem:[#allocation21 + $0xbe4] ss:$24 sps:$4 sm:$0xff]  }
 0x718   :  { %6282 = vmatpush1.bf16.msra.mxu1 %v7806_v24  ;;  %v7866_v24 = vld [vmem:[#allocation21 + $0xbe0] ss:$24 sps:$4 sm:$0xff]  }
 0x719   :  { %6283 = vmatprep.subr.bf16.mxu1 %v7811_v62  ;;  %v3918_v62 = vrot.slane %v8863_v38, %v8708_v21 }
 0x71c   :  { %6284 = vmatpush1.bf16.msra.mxu1 %v7809_v53  ;;  %v3922_v53 = vrot.slane %v8863_v38, %v8711_v52 }
 0x71d   :  { %6285 = vmatprep.subr.bf16.mxu1 %v7814_v0 }
 0x720   :  { %6286 = vmatpush1.bf16.msra.mxu1 %v7812_v11 }
 0x721   :  { %6287 = vmatprep.subr.bf16.mxu1 %v7817_v4 }
 0x724   :  { %6288 = vmatpush1.bf16.msra.mxu1 %v7815_v43 }
 0x725   :  { %6289 = vmatprep.subr.bf16.mxu1 %v7820_v19 }
 0x728   :  { %6290 = vmatpush1.bf16.msra.mxu1 %v7818_v27 }
 0x729   :  { %6300 = vmatprep.subr.bf16.mxu1 %v7823_v23 }
 0x72b   :  { %6292 = vmatmul.mubr.bf16.vlgmr.msra.gmra.mrb[12].mxu1 %v8840_v45  ;;  %v7838_v45 = vld [vmem:[#allocation21 + $0xa04] ss:$24 sps:$4 sm:$0xff]  }
 0x72c   :  { %6301 = vmatpush1.bf16.msra.mxu1 %v7821_v40  ;;  %6332 = vmatprep.mubr.bf16.mxu1 %v8845_v13  ;;  %v3902_v13 = vrot.slane %v8863_v38, %v8511_v54 }
 0x72d   :  { %6302 = vmatprep.subr.bf16.mxu1 %v7826_v46 }
 0x730   :  { %6303 = vmatpush1.bf16.msra.mxu1 %v7824_v5 }
 0x731   :  { %6304 = vmatprep.subr.bf16.mxu1 %v7829_v3 }
 0x734   :  { %6305 = vmatpush1.bf16.msra.mxu1 %v7827_v63 }
 0x735   :  { %6306 = vmatprep.subr.bf16.mxu1 %v7832_v41 }
 0x738   :  { %6307 = vmatpush1.bf16.msra.mxu1 %v7830_v34 }
 0x739   :  { %6308 = vmatprep.subr.bf16.mxu1 %v7835_v36 }
 0x73c   :  { %6309 = vmatpush1.bf16.msra.mxu1 %v7833_v8 }
 0x73d   :  { %6310 = vmatprep.subr.bf16.mxu1 %v7838_v45 }
 0x73e   :  { %v6006_v51 = vpop.f32.mrb[8].mxu1 }
 0x73f   :  { %v7095_v60 = vadd.f32 %v6006_v51, %v3902_v13  ;;  %v6170_v58 = vpop.f32.mrb[24].mxu0  ;;  %v6008_v32 = vpop.f32.mrb[9].mxu1 }
 0x740   :  { %v7097_v9 = vadd.f32 %v6170_v58, %v3910_v48  ;;  %v7096_v61 = vadd.f32 %v6008_v32, %v3906_v30  ;;  %v6172_v54 = vpop.f32.mrb[25].mxu0  ;;  %v6010_v1 = vpop.f32.mrb[10].mxu1  ;;  %6311 = vmatpush1.bf16.msra.mxu1 %v7836_v25 }
 0x741   :  { %7897 = vtanh.f32 %v7095_v60  ;;  %v7098_v55 = vadd.f32 %v6172_v54, %v3914_v50  ;;  %v6174_v59 = vpop.f32.mrb[26].mxu0  ;;  %v6011_v56 = vpop.f32.mrb[11].mxu1  ;;  %6312 = vmatprep.subr.bf16.mxu1 %v7841_v47 }
 0x742   :  { %7899 = vtanh.f32 %v7097_v9  ;;  %v6175_v57 = vpop.f32.mrb[27].mxu0 }
 0x743   :  { %7901 = vtanh.f32 %v7096_v61 }
 0x744   :  { %7903 = vtanh.f32 %v7098_v55  ;;  %6313 = vmatpush1.bf16.msra.mxu1 %v7839_v2 }
 0x745   :  { %6314 = vmatprep.subr.bf16.mxu1 %v7844_v12 }
 0x748   :  { %6315 = vmatpush1.bf16.msra.mxu1 %v7842_v7 }
 0x749   :  { %6316 = vmatprep.subr.bf16.mxu1 %v7847_v6 }
 0x74b   :  { %v7898_v15 = vpop.eup %7897 }
 0x74c   :  { %v7900_v39 = vpop.eup %7899  ;;  %6347 = vst [vmem:[%s8911_s15] sm:$0xff] %v7898_v15  ;;  %6317 = vmatpush1.bf16.msra.mxu1 %v7845_v14 }
 0x74d   :  { %v7902_v17 = vpop.eup %7901  ;;  %6349 = vst [vmem:[%s8911_s15 + $0x10] sm:$0xff] %v7900_v39  ;;  %6318 = vmatprep.subr.bf16.mxu1 %v7850_v33 }
 0x74e   :  { %v7904_v18 = vpop.eup %7903  ;;  %6348 = vst [vmem:[%s8911_s15 + $0x8] sm:$0xff] %v7902_v17 }
 0x74f   :  { %6350 = vst [vmem:[%s8911_s15 + $0x18] sm:$0xff] %v7904_v18 }
 0x750   :  { %6319 = vmatpush1.bf16.msra.mxu1 %v7848_v16 }
 0x751   :  { %6320 = vmatprep.subr.bf16.mxu1 %v7853_v26 }
 0x754   :  { %6321 = vmatpush1.bf16.msra.mxu1 %v7851_v35 }
 0x755   :  { %6322 = vmatprep.subr.bf16.mxu1 %v7856_v28 }
 0x758   :  { %6323 = vmatpush1.bf16.msra.mxu1 %v7854_v22 }
 0x759   :  { %6324 = vmatprep.subr.bf16.mxu1 %v7859_v44 }
 0x75c   :  { %6325 = vmatpush1.bf16.msra.mxu1 %v7857_v29 }
 0x75d   :  { %6326 = vmatprep.subr.bf16.mxu1 %v7862_v37 }
 0x760   :  { %6327 = vmatpush1.bf16.msra.mxu1 %v7860_v10 }
 0x761   :  { %6328 = vmatprep.subr.bf16.mxu1 %v7865_v42 }
 0x764   :  { %6329 = vmatpush1.bf16.msra.mxu1 %v7863_v31 }
 0x765   :  { %6330 = vmatprep.subr.bf16.mxu1 %v7868_v20 }
 0x768   :  { %6331 = vmatpush1.bf16.msra.mxu1 %v7866_v24 }
 0x76b   :  { %6333 = vmatmul.mubr.bf16.vlgmr.msra.gmra.mrb[12].mxu1 %v8852_v49 }
 0x83e   :  { %v6334_v0 = vpop.f32.mrb[12].mxu1 }
 0x83f   :  { %v7099_v11 = vadd.f32 %v6334_v0, %v3918_v62  ;;  %v6336_v4 = vpop.f32.mrb[13].mxu1 }
 0x840   :  { %v7100_v43 = vadd.f32 %v6336_v4, %v3922_v53  ;;  %v6338_v19 = vpop.f32.mrb[14].mxu1 }
 0x841   :  { %7905 = vtanh.f32 %v7099_v11  ;;  %v6339_v27 = vpop.f32.mrb[15].mxu1 }
 0x842   :  { %7907 = vtanh.f32 %v7100_v43 }
 0x84b   :  { %v7906_v23 = vpop.eup %7905 }
 0x84c   :  { %v7908_v40 = vpop.eup %7907  ;;  %6351 = vst [vmem:[%s8911_s15 + $0x20] sm:$0xff] %v7906_v23 }
 0x84d   :  { %6352 = vst [vmem:[%s8911_s15 + $0x28] sm:$0xff] %v7908_v40 }
 0x84e   :  { %6357 = vsyncpa [#allocation3], 1 }
 0x84f   :  { %6358 = vsyncpa [#allocation5], 1 }
 0x850   :  { %6359 = vsyncpa [#allocation8], 1 }
 0x851   :  { %6360 = vsyncpa [#allocation11], 1 }
 0x852   :  { %6361 = vsyncpa [#allocation14], 1 }
 0x853   :  { %6362 = vsyncpa [#allocation17], 1 }
 0x854   :  { %6363 = vsyncpa [#allocation20], 1 }
 0x855   :  { %6364 = vsyncpa [#allocation23], 1 }

</bundles_post_ra>
